<compile_context>
chip_gen: v7x
topology: tpu7x:2x2x1
jax: 0.10.0
libtpu: 0.0.40
codegen_flags: <defaults>
</compile_context>

<pallas_src>
import functools

import jax
import jax.numpy as jnp
from jax.experimental import pallas as pl
from jax.experimental.pallas import tpu as pltpu


# ------------------------------- Pallas kernel -------------------------------
# Spatial positions are flattened as q = row * Wrow + col with Wrow = Wo + 2
# (conv2's halo width).  Columns >= Wo of each row are wrap-around garbage;
# they are zeroed (cmask) before being stored into the conv2 halo scratch and
# are sliced off the final output outside the kernel.

def _residual_block_kernel(*refs, stride, Ho, Wo, Cin, Cout, use_1x1conv):
    if use_1x1conv:
        (x_ref, cmask_ref, w1_ref, s1_ref, w2_ref, s2_ref, w3_ref,
         o_ref, y1p_ref) = refs
    else:
        (x_ref, cmask_ref, w1_ref, s1_ref, w2_ref, s2_ref,
         o_ref, y1p_ref) = refs

    Wrow = Wo + 2
    M = Ho * Wrow

    def x_tap(t):
        di, dj = t // 3, t % 3
        if stride == 1:
            # x_ref: (1, (Ho+3)*Wrow, Cin) zero-padded, flattened NHWC image.
            off = di * Wrow + dj
            return x_ref[0, off:off + M, :]
        # stride 2: x_ref holds the 4 space-to-depth parity planes of the
        # padded image, each zero-padded to (Ho+2, Wrow) and flattened, so a
        # strided tap is a contiguous slice of plane (di % 2, dj % 2).
        p = (di % 2) * 2 + (dj % 2)
        off = (di // 2) * Wrow + (dj // 2)
        return x_ref[0, p, off:off + M, :]

    # ---- conv1 (3x3, stride) + folded BN1 + ReLU ---------------------------
    acc = jnp.zeros((M, Cout), jnp.float32)
    for t in range(9):
        acc = acc + jnp.dot(x_tap(t), w1_ref[t],
                            preferred_element_type=jnp.float32)
    y1 = jnp.maximum(acc + s1_ref[...], 0.0) * cmask_ref[...]

    # conv1's output never leaves VMEM: store it (inside a zero halo) into the
    # scratch buffer conv2 reads back.
    y1p_ref[...] = jnp.zeros_like(y1p_ref)
    y1p_ref[Wrow + 1:Wrow + 1 + M, :] = y1

    # ---- conv2 (3x3, stride 1) + folded BN2 --------------------------------
    acc = jnp.zeros((M, Cout), jnp.float32)
    for t in range(9):
        di, dj = t // 3, t % 3
        off = di * Wrow + dj
        patch = y1p_ref[off:off + M, :].astype(jnp.bfloat16)
        acc = acc + jnp.dot(patch, w2_ref[t],
                            preferred_element_type=jnp.float32)
    acc = acc + s2_ref[...]

    # ---- skip branch (fused) + final ReLU ----------------------------------
    if use_1x1conv:
        # 1x1 projection skip: its strided input sample is already resident in
        # VMEM (interior of the padded image / parity plane (1, 1)).
        if stride == 1:
            xs = x_ref[0, Wrow + 1:Wrow + 1 + M, :]
        else:
            xs = x_ref[0, 3, 0:M, :]
        acc = acc + jnp.dot(xs, w3_ref[...], preferred_element_type=jnp.float32)
    else:
        # Identity skip (stride == 1, Cin == Cout).
        acc = acc + x_ref[0, Wrow + 1:Wrow + 1 + M, :].astype(jnp.float32)

    o_ref[0] = jnp.maximum(acc, 0.0).astype(o_ref.dtype)


# ------------------------------- kernel wrapper ------------------------------

def residual_forward(folded, x_nchw, *, stride, use_1x1conv):
    """Y = relu(bn2(conv2(relu(bn1(conv1(X))))) + skip(X)); NCHW in / NCHW out."""
    N, Cin, H, W = x_nchw.shape
    Cout = folded["w1"].shape[-1]
    if stride not in (1, 2):
        raise NotImplementedError("stride must be 1 or 2")
    if not use_1x1conv:
        assert stride == 1 and Cin == Cout, "identity skip needs matching shapes"

    Ho = (H - 1) // stride + 1
    Wo = (W - 1) // stride + 1
    Wrow = Wo + 2
    M = Ho * Wrow

    # NCHW -> NHWC (lane-dense channels) + bf16 once at the module boundary.
    x = jnp.transpose(x_nchw, (0, 2, 3, 1)).astype(jnp.bfloat16)

    if stride == 1:
        # Padded image, flattened row-major; one extra zero row keeps the last
        # tap's slice in bounds.
        xp = jnp.pad(x, ((0, 0), (1, 2), (1, 1), (0, 0)))
        xk = xp.reshape(N, (Ho + 3) * Wrow, Cin)
        x_spec = pl.BlockSpec((1, xk.shape[1], Cin), lambda n: (n, 0, 0))
    else:
        # One-pass space-to-depth: 4 parity planes of the padded image (same
        # total bytes as the input), each padded to (Ho+2, Wrow) and flattened
        # so stride-2 taps become contiguous slices.
        xp = jnp.pad(x, ((0, 0), (1, 1), (1, 1), (0, 0)))
        Hp, Wp = H + 2, W + 2
        Hpe, Wpe = Hp + (Hp % 2), Wp + (Wp % 2)
        xp = jnp.pad(xp, ((0, 0), (0, Hpe - Hp), (0, Wpe - Wp), (0, 0)))
        Hs, Ws = Hpe // 2, Wpe // 2
        planes = xp.reshape(N, Hs, 2, Ws, 2, Cin).transpose(0, 2, 4, 1, 3, 5)
        planes = planes.reshape(N, 4, Hs, Ws, Cin)
        planes = jnp.pad(
            planes, ((0, 0), (0, 0), (0, Ho + 2 - Hs), (0, Wrow - Ws), (0, 0)))
        xk = planes.reshape(N, 4, (Ho + 2) * Wrow, Cin)
        x_spec = pl.BlockSpec((1, 4, xk.shape[2], Cin), lambda n: (n, 0, 0, 0))

    # Validity mask for the wrap-around columns (j >= Wo) of each flattened row.
    cmask = (jnp.arange(M, dtype=jnp.int32) % Wrow < Wo)
    cmask = cmask.astype(jnp.float32).reshape(M, 1)

    def full_spec(a):
        zeros = (0,) * a.ndim
        return pl.BlockSpec(a.shape, lambda n: zeros)

    args = [xk, cmask, folded["w1"], folded["s1"], folded["w2"], folded["s2"]]
    in_specs = [x_spec] + [full_spec(a) for a in args[1:]]
    if use_1x1conv:
        args.append(folded["w3"])
        in_specs.append(full_spec(folded["w3"]))

    kernel = functools.partial(
        _residual_block_kernel, stride=stride, Ho=Ho, Wo=Wo,
        Cin=Cin, Cout=Cout, use_1x1conv=use_1x1conv)

    flops = 2 * N * M * (9 * Cin * Cout + 9 * Cout * Cout
                         + (Cin * Cout if use_1x1conv else 0))
    bytes_accessed = int(xk.size * 2 + cmask.size * 4
                         + sum(int(a.size) * a.dtype.itemsize for a in args[2:])
                         + N * M * Cout * 4)

    out = pl.pallas_call(
        kernel,
        out_shape=jax.ShapeDtypeStruct((N, M, Cout), jnp.float32),
        grid=(N,),
        in_specs=in_specs,
        out_specs=pl.BlockSpec((1, M, Cout), lambda n: (n, 0, 0)),
        scratch_shapes=[pltpu.VMEM(((Ho + 3) * Wrow, Cout), jnp.float32)],
        compiler_params=pltpu.CompilerParams(
            dimension_semantics=("parallel",)),
        cost_estimate=pl.CostEstimate(flops=flops, transcendentals=0,
                                      bytes_accessed=bytes_accessed),
    )(*args)

    # Drop the 2 wrap-around columns and return to NCHW at the module boundary
    # (one fused XLA slice+transpose pass).
    out = out.reshape(N, Ho, Wrow, Cout)[:, :, :Wo, :]
    return jnp.transpose(out, (0, 3, 1, 2))


# ------------------------ parameter init / folding ---------------------------

def init_params(key, in_channels, out_channels, use_1x1conv):
    ks = jax.random.split(key, 14)

    def nrm(k, shape, scale=0.1):
        return (scale * jax.random.normal(k, shape)).astype(jnp.float32)

    p = {
        "conv1_w": nrm(ks[0], (out_channels, in_channels, 3, 3)),
        "conv1_b": nrm(ks[1], (out_channels,)),
        "conv2_w": nrm(ks[2], (out_channels, out_channels, 3, 3)),
        "conv2_b": nrm(ks[3], (out_channels,)),
        "bn1_gamma": 1.0 + nrm(ks[4], (out_channels,)),
        "bn1_beta": nrm(ks[5], (out_channels,)),
        "bn1_mean": nrm(ks[6], (out_channels,)),
        "bn1_var": 1.0 + 0.1 * jax.random.uniform(ks[7], (out_channels,)),
        "bn2_gamma": 1.0 + nrm(ks[8], (out_channels,)),
        "bn2_beta": nrm(ks[9], (out_channels,)),
        "bn2_mean": nrm(ks[10], (out_channels,)),
        "bn2_var": 1.0 + 0.1 * jax.random.uniform(ks[11], (out_channels,)),
    }
    if use_1x1conv:
        p["conv3_w"] = nrm(ks[12], (out_channels, in_channels, 1, 1))
        p["conv3_b"] = nrm(ks[13], (out_channels,))
    return p


def fold_params(p, *, use_1x1conv, eps=1e-5):
    """One-time weight packing + BatchNorm folding (outside the jitted hot path).

    Conv weight (O, I, 3, 3) -> (9, I, O) bf16 with the BN scale folded into
    the output columns, so the kernel epilogue is just `acc + shift`.
    bn(conv(x) + b) == conv_scaled(x) + shift; conv3's bias is folded into
    shift2 (it lands in the same pre-ReLU sum).
    """
    def pack3x3(w, col_scale):
        O, I, KH, KW = w.shape
        wt = jnp.transpose(w, (2, 3, 1, 0)).reshape(KH * KW, I, O)
        return (wt * col_scale.reshape(1, 1, O)).astype(jnp.bfloat16)

    out = {}
    for i in ("1", "2"):
        inv = p[f"bn{i}_gamma"] / jnp.sqrt(p[f"bn{i}_var"] + eps)
        shift = p[f"bn{i}_beta"] + (p[f"conv{i}_b"] - p[f"bn{i}_mean"]) * inv
        out[f"w{i}"] = pack3x3(p[f"conv{i}_w"], inv)
        out[f"s{i}"] = shift.reshape(1, -1).astype(jnp.float32)
    if use_1x1conv:
        out["w3"] = jnp.transpose(p["conv3_w"][:, :, 0, 0], (1, 0)).astype(jnp.bfloat16)
        out["s2"] = out["s2"] + p["conv3_b"].reshape(1, -1).astype(jnp.float32)
    return out


# ----------------------------- pure-JAX reference ----------------------------

def residual_reference(p, x, *, stride, use_1x1conv, eps=1e-5):
    def conv(x, w, b, s, pad):
        y = jax.lax.conv_general_dilated(
            x, w, window_strides=(s, s), padding=((pad, pad), (pad, pad)),
            dimension_numbers=("NCHW", "OIHW", "NCHW"))
        return y + b.reshape(1, -1, 1, 1)

    def bn(x, i):
        g = p[f"bn{i}_gamma"].reshape(1, -1, 1, 1)
        bt = p[f"bn{i}_beta"].reshape(1, -1, 1, 1)
        m = p[f"bn{i}_mean"].reshape(1, -1, 1, 1)
        v = p[f"bn{i}_var"].reshape(1, -1, 1, 1)
        return g * (x - m) / jnp.sqrt(v + eps) + bt

    y = jax.nn.relu(bn(conv(x, p["conv1_w"], p["conv1_b"], stride, 1), "1"))
    y = bn(conv(y, p["conv2_w"], p["conv2_b"], 1, 1), "2")
    skip = conv(x, p["conv3_w"], p["conv3_b"], stride, 0) if use_1x1conv else x
    return jax.nn.relu(y + skip)


if __name__ == "__main__":
    key = jax.random.PRNGKey(0)
    kx, kpa, kpb = jax.random.split(key, 3)
    x = jax.random.normal(kx, (2, 4, 16, 16), dtype=jnp.float32)

    # Config A: identity skip (in == out channels, stride 1)
    pA = init_params(kpa, 4, 4, use_1x1conv=False)
    fA = fold_params(pA, use_1x1conv=False)
    fwdA = jax.jit(functools.partial(residual_forward, stride=1, use_1x1conv=False))
    outA = jax.block_until_ready(fwdA(fA, x))
    refA = residual_reference(pA, x, stride=1, use_1x1conv=False)
    assert outA.shape == (2, 4, 16, 16) and outA.dtype == jnp.float32
    assert float(jnp.max(jnp.abs(outA - refA))) < 5e-2

    # Config B: 1x1-conv projection skip, stride 2, 4 -> 8 channels
    pB = init_params(kpb, 4, 8, use_1x1conv=True)
    fB = fold_params(pB, use_1x1conv=True)
    fwdB = jax.jit(functools.partial(residual_forward, stride=2, use_1x1conv=True))
    outB = jax.block_until_ready(fwdB(fB, x))
    refB = residual_reference(pB, x, stride=2, use_1x1conv=True)
    assert outB.shape == (2, 8, 8, 8) and outB.dtype == jnp.float32
    assert float(jnp.max(jnp.abs(outB - refB))) < 5e-2

    print("KERNEL_OK")
</pallas_src>

<mosaic_0001>
module attributes {stable_mosaic.version = 11 : i64} {
  func.func @_residual_block_kernel(%arg0: i32, %arg1: memref<1x342x4xbf16, #tpu.memory_space<vmem>>, %arg2: memref<288x1xf32, #tpu.memory_space<vmem>>, %arg3: memref<9x4x4xbf16, #tpu.memory_space<vmem>>, %arg4: memref<1x4xf32, #tpu.memory_space<vmem>>, %arg5: memref<9x4x4xbf16, #tpu.memory_space<vmem>>, %arg6: memref<1x4xf32, #tpu.memory_space<vmem>>, %arg7: memref<1x288x4xf32, #tpu.memory_space<vmem>>, %arg8: memref<342x4xf32, #tpu.memory_space<vmem>>) attributes {dimension_semantics = [#tpu.dimension_semantics<parallel>], iteration_bounds = array<i64: 2>, scalar_prefetch = 0 : i64, scratch_operands = 1 : i64, tpu.core_type = #tpu.core_type<tc>, window_params = [{transform_indices = @transform_0, window_bounds = array<i64: 1, 342, 4>}, {pipeline_mode = #tpu.pipeline_mode<synchronous>, transform_indices = @transform_1, window_bounds = array<i64: 288, 1>}, {pipeline_mode = #tpu.pipeline_mode<synchronous>, transform_indices = @transform_2, window_bounds = array<i64: 9, 4, 4>}, {pipeline_mode = #tpu.pipeline_mode<synchronous>, transform_indices = @transform_3, window_bounds = array<i64: 1, 4>}, {pipeline_mode = #tpu.pipeline_mode<synchronous>, transform_indices = @transform_4, window_bounds = array<i64: 9, 4, 4>}, {pipeline_mode = #tpu.pipeline_mode<synchronous>, transform_indices = @transform_5, window_bounds = array<i64: 1, 4>}, {transform_indices = @transform_6, window_bounds = array<i64: 1, 288, 4>}]} {
    %cst = arith.constant 0.000000e+00 : f32
    %0 = vector.broadcast %cst : f32 to vector<288x4xf32>
    %c0 = arith.constant 0 : index
    %c0_0 = arith.constant 0 : index
    %c0_1 = arith.constant 0 : index
    %1 = vector.load %arg1[%c0, %c0_0, %c0_1] : memref<1x342x4xbf16, #tpu.memory_space<vmem>>, vector<1x288x4xbf16>
    %2 = vector.shape_cast %1 : vector<1x288x4xbf16> to vector<288x4xbf16>
    %c0_2 = arith.constant 0 : index
    %c0_3 = arith.constant 0 : index
    %c0_4 = arith.constant 0 : index
    %3 = vector.load %arg3[%c0_2, %c0_3, %c0_4] : memref<9x4x4xbf16, #tpu.memory_space<vmem>>, vector<1x4x4xbf16>
    %4 = vector.shape_cast %3 : vector<1x4x4xbf16> to vector<4x4xbf16>
    %cst_5 = arith.constant dense<0.000000e+00> : vector<288x4xf32>
    %5 = tpu.matmul %2, %4, %cst_5 {dimension_numbers = #tpu.dot_dimension_numbers<[1], [0], [0], [1], [0, 0, 1, 1], [], []>} : vector<288x4xbf16>, vector<4x4xbf16>, vector<288x4xf32> -> vector<288x4xf32>
    %6 = arith.addf %0, %5 : vector<288x4xf32>
    %c0_6 = arith.constant 0 : index
    %c1 = arith.constant 1 : index
    %c0_7 = arith.constant 0 : index
    %7 = vector.load %arg1[%c0_6, %c1, %c0_7] : memref<1x342x4xbf16, #tpu.memory_space<vmem>>, vector<1x288x4xbf16>
    %8 = vector.shape_cast %7 : vector<1x288x4xbf16> to vector<288x4xbf16>
    %c1_8 = arith.constant 1 : index
    %c0_9 = arith.constant 0 : index
    %c0_10 = arith.constant 0 : index
    %9 = vector.load %arg3[%c1_8, %c0_9, %c0_10] : memref<9x4x4xbf16, #tpu.memory_space<vmem>>, vector<1x4x4xbf16>
    %10 = vector.shape_cast %9 : vector<1x4x4xbf16> to vector<4x4xbf16>
    %cst_11 = arith.constant dense<0.000000e+00> : vector<288x4xf32>
    %11 = tpu.matmul %8, %10, %cst_11 {dimension_numbers = #tpu.dot_dimension_numbers<[1], [0], [0], [1], [0, 0, 1, 1], [], []>} : vector<288x4xbf16>, vector<4x4xbf16>, vector<288x4xf32> -> vector<288x4xf32>
    %12 = arith.addf %6, %11 : vector<288x4xf32>
    %c0_12 = arith.constant 0 : index
    %c2 = arith.constant 2 : index
    %c0_13 = arith.constant 0 : index
    %13 = vector.load %arg1[%c0_12, %c2, %c0_13] : memref<1x342x4xbf16, #tpu.memory_space<vmem>>, vector<1x288x4xbf16>
    %14 = vector.shape_cast %13 : vector<1x288x4xbf16> to vector<288x4xbf16>
    %c2_14 = arith.constant 2 : index
    %c0_15 = arith.constant 0 : index
    %c0_16 = arith.constant 0 : index
    %15 = vector.load %arg3[%c2_14, %c0_15, %c0_16] : memref<9x4x4xbf16, #tpu.memory_space<vmem>>, vector<1x4x4xbf16>
    %16 = vector.shape_cast %15 : vector<1x4x4xbf16> to vector<4x4xbf16>
    %cst_17 = arith.constant dense<0.000000e+00> : vector<288x4xf32>
    %17 = tpu.matmul %14, %16, %cst_17 {dimension_numbers = #tpu.dot_dimension_numbers<[1], [0], [0], [1], [0, 0, 1, 1], [], []>} : vector<288x4xbf16>, vector<4x4xbf16>, vector<288x4xf32> -> vector<288x4xf32>
    %18 = arith.addf %12, %17 : vector<288x4xf32>
    %c0_18 = arith.constant 0 : index
    %c18 = arith.constant 18 : index
    %c0_19 = arith.constant 0 : index
    %19 = vector.load %arg1[%c0_18, %c18, %c0_19] : memref<1x342x4xbf16, #tpu.memory_space<vmem>>, vector<1x288x4xbf16>
    %20 = vector.shape_cast %19 : vector<1x288x4xbf16> to vector<288x4xbf16>
    %c3 = arith.constant 3 : index
    %c0_20 = arith.constant 0 : index
    %c0_21 = arith.constant 0 : index
    %21 = vector.load %arg3[%c3, %c0_20, %c0_21] : memref<9x4x4xbf16, #tpu.memory_space<vmem>>, vector<1x4x4xbf16>
    %22 = vector.shape_cast %21 : vector<1x4x4xbf16> to vector<4x4xbf16>
    %cst_22 = arith.constant dense<0.000000e+00> : vector<288x4xf32>
    %23 = tpu.matmul %20, %22, %cst_22 {dimension_numbers = #tpu.dot_dimension_numbers<[1], [0], [0], [1], [0, 0, 1, 1], [], []>} : vector<288x4xbf16>, vector<4x4xbf16>, vector<288x4xf32> -> vector<288x4xf32>
    %24 = arith.addf %18, %23 : vector<288x4xf32>
    %c0_23 = arith.constant 0 : index
    %c19 = arith.constant 19 : index
    %c0_24 = arith.constant 0 : index
    %25 = vector.load %arg1[%c0_23, %c19, %c0_24] : memref<1x342x4xbf16, #tpu.memory_space<vmem>>, vector<1x288x4xbf16>
    %26 = vector.shape_cast %25 : vector<1x288x4xbf16> to vector<288x4xbf16>
    %c4 = arith.constant 4 : index
    %c0_25 = arith.constant 0 : index
    %c0_26 = arith.constant 0 : index
    %27 = vector.load %arg3[%c4, %c0_25, %c0_26] : memref<9x4x4xbf16, #tpu.memory_space<vmem>>, vector<1x4x4xbf16>
    %28 = vector.shape_cast %27 : vector<1x4x4xbf16> to vector<4x4xbf16>
    %cst_27 = arith.constant dense<0.000000e+00> : vector<288x4xf32>
    %29 = tpu.matmul %26, %28, %cst_27 {dimension_numbers = #tpu.dot_dimension_numbers<[1], [0], [0], [1], [0, 0, 1, 1], [], []>} : vector<288x4xbf16>, vector<4x4xbf16>, vector<288x4xf32> -> vector<288x4xf32>
    %30 = arith.addf %24, %29 : vector<288x4xf32>
    %c0_28 = arith.constant 0 : index
    %c20 = arith.constant 20 : index
    %c0_29 = arith.constant 0 : index
    %31 = vector.load %arg1[%c0_28, %c20, %c0_29] : memref<1x342x4xbf16, #tpu.memory_space<vmem>>, vector<1x288x4xbf16>
    %32 = vector.shape_cast %31 : vector<1x288x4xbf16> to vector<288x4xbf16>
    %c5 = arith.constant 5 : index
    %c0_30 = arith.constant 0 : index
    %c0_31 = arith.constant 0 : index
    %33 = vector.load %arg3[%c5, %c0_30, %c0_31] : memref<9x4x4xbf16, #tpu.memory_space<vmem>>, vector<1x4x4xbf16>
    %34 = vector.shape_cast %33 : vector<1x4x4xbf16> to vector<4x4xbf16>
    %cst_32 = arith.constant dense<0.000000e+00> : vector<288x4xf32>
    %35 = tpu.matmul %32, %34, %cst_32 {dimension_numbers = #tpu.dot_dimension_numbers<[1], [0], [0], [1], [0, 0, 1, 1], [], []>} : vector<288x4xbf16>, vector<4x4xbf16>, vector<288x4xf32> -> vector<288x4xf32>
    %36 = arith.addf %30, %35 : vector<288x4xf32>
    %c0_33 = arith.constant 0 : index
    %c36 = arith.constant 36 : index
    %c0_34 = arith.constant 0 : index
    %37 = vector.load %arg1[%c0_33, %c36, %c0_34] : memref<1x342x4xbf16, #tpu.memory_space<vmem>>, vector<1x288x4xbf16>
    %38 = vector.shape_cast %37 : vector<1x288x4xbf16> to vector<288x4xbf16>
    %c6 = arith.constant 6 : index
    %c0_35 = arith.constant 0 : index
    %c0_36 = arith.constant 0 : index
    %39 = vector.load %arg3[%c6, %c0_35, %c0_36] : memref<9x4x4xbf16, #tpu.memory_space<vmem>>, vector<1x4x4xbf16>
    %40 = vector.shape_cast %39 : vector<1x4x4xbf16> to vector<4x4xbf16>
    %cst_37 = arith.constant dense<0.000000e+00> : vector<288x4xf32>
    %41 = tpu.matmul %38, %40, %cst_37 {dimension_numbers = #tpu.dot_dimension_numbers<[1], [0], [0], [1], [0, 0, 1, 1], [], []>} : vector<288x4xbf16>, vector<4x4xbf16>, vector<288x4xf32> -> vector<288x4xf32>
    %42 = arith.addf %36, %41 : vector<288x4xf32>
    %c0_38 = arith.constant 0 : index
    %c37 = arith.constant 37 : index
    %c0_39 = arith.constant 0 : index
    %43 = vector.load %arg1[%c0_38, %c37, %c0_39] : memref<1x342x4xbf16, #tpu.memory_space<vmem>>, vector<1x288x4xbf16>
    %44 = vector.shape_cast %43 : vector<1x288x4xbf16> to vector<288x4xbf16>
    %c7 = arith.constant 7 : index
    %c0_40 = arith.constant 0 : index
    %c0_41 = arith.constant 0 : index
    %45 = vector.load %arg3[%c7, %c0_40, %c0_41] : memref<9x4x4xbf16, #tpu.memory_space<vmem>>, vector<1x4x4xbf16>
    %46 = vector.shape_cast %45 : vector<1x4x4xbf16> to vector<4x4xbf16>
    %cst_42 = arith.constant dense<0.000000e+00> : vector<288x4xf32>
    %47 = tpu.matmul %44, %46, %cst_42 {dimension_numbers = #tpu.dot_dimension_numbers<[1], [0], [0], [1], [0, 0, 1, 1], [], []>} : vector<288x4xbf16>, vector<4x4xbf16>, vector<288x4xf32> -> vector<288x4xf32>
    %48 = arith.addf %42, %47 : vector<288x4xf32>
    %c0_43 = arith.constant 0 : index
    %c38 = arith.constant 38 : index
    %c0_44 = arith.constant 0 : index
    %49 = vector.load %arg1[%c0_43, %c38, %c0_44] : memref<1x342x4xbf16, #tpu.memory_space<vmem>>, vector<1x288x4xbf16>
    %50 = vector.shape_cast %49 : vector<1x288x4xbf16> to vector<288x4xbf16>
    %c8 = arith.constant 8 : index
    %c0_45 = arith.constant 0 : index
    %c0_46 = arith.constant 0 : index
    %51 = vector.load %arg3[%c8, %c0_45, %c0_46] : memref<9x4x4xbf16, #tpu.memory_space<vmem>>, vector<1x4x4xbf16>
    %52 = vector.shape_cast %51 : vector<1x4x4xbf16> to vector<4x4xbf16>
    %cst_47 = arith.constant dense<0.000000e+00> : vector<288x4xf32>
    %53 = tpu.matmul %50, %52, %cst_47 {dimension_numbers = #tpu.dot_dimension_numbers<[1], [0], [0], [1], [0, 0, 1, 1], [], []>} : vector<288x4xbf16>, vector<4x4xbf16>, vector<288x4xf32> -> vector<288x4xf32>
    %54 = arith.addf %48, %53 : vector<288x4xf32>
    %c0_48 = arith.constant 0 : index
    %c0_49 = arith.constant 0 : index
    %55 = vector.load %arg4[%c0_48, %c0_49] : memref<1x4xf32, #tpu.memory_space<vmem>>, vector<1x4xf32>
    %56 = vector.broadcast %55 : vector<1x4xf32> to vector<288x4xf32>
    %57 = arith.addf %54, %56 : vector<288x4xf32>
    %cst_50 = arith.constant 0.000000e+00 : f32
    %58 = vector.broadcast %cst_50 : f32 to vector<288x4xf32>
    %59 = arith.maximumf %57, %58 : vector<288x4xf32>
    %c0_51 = arith.constant 0 : index
    %c0_52 = arith.constant 0 : index
    %60 = vector.load %arg2[%c0_51, %c0_52] : memref<288x1xf32, #tpu.memory_space<vmem>>, vector<288x1xf32>
    %61 = vector.broadcast %60 : vector<288x1xf32> to vector<288x4xf32>
    %62 = arith.mulf %59, %61 : vector<288x4xf32>
    %cst_53 = arith.constant 0.000000e+00 : f32
    %63 = vector.broadcast %cst_53 : f32 to vector<342x4xf32>
    %c0_54 = arith.constant 0 : index
    %c0_55 = arith.constant 0 : index
    %64 = vector.load %arg8[%c0_54, %c0_55] : memref<342x4xf32, #tpu.memory_space<vmem>>, vector<342x4xf32>
    tpu.vector_store %arg8[%c0_54, %c0_55], %63 {strides = array<i32>} : memref<342x4xf32, #tpu.memory_space<vmem>>, vector<342x4xf32>,
    %c19_56 = arith.constant 19 : index
    %c0_57 = arith.constant 0 : index
    %65 = vector.load %arg8[%c19_56, %c0_57] : memref<342x4xf32, #tpu.memory_space<vmem>>, vector<288x4xf32>
    tpu.vector_store %arg8[%c19_56, %c0_57], %62 {strides = array<i32>} : memref<342x4xf32, #tpu.memory_space<vmem>>, vector<288x4xf32>,
    %cst_58 = arith.constant 0.000000e+00 : f32
    %66 = vector.broadcast %cst_58 : f32 to vector<288x4xf32>
    %c0_59 = arith.constant 0 : index
    %c0_60 = arith.constant 0 : index
    %67 = vector.load %arg8[%c0_59, %c0_60] : memref<342x4xf32, #tpu.memory_space<vmem>>, vector<288x4xf32>
    %68 = arith.truncf %67 : vector<288x4xf32> to vector<288x4xbf16>
    %c0_61 = arith.constant 0 : index
    %c0_62 = arith.constant 0 : index
    %c0_63 = arith.constant 0 : index
    %69 = vector.load %arg5[%c0_61, %c0_62, %c0_63] : memref<9x4x4xbf16, #tpu.memory_space<vmem>>, vector<1x4x4xbf16>
    %70 = vector.shape_cast %69 : vector<1x4x4xbf16> to vector<4x4xbf16>
    %cst_64 = arith.constant dense<0.000000e+00> : vector<288x4xf32>
    %71 = tpu.matmul %68, %70, %cst_64 {dimension_numbers = #tpu.dot_dimension_numbers<[1], [0], [0], [1], [0, 0, 1, 1], [], []>} : vector<288x4xbf16>, vector<4x4xbf16>, vector<288x4xf32> -> vector<288x4xf32>
    %72 = arith.addf %66, %71 : vector<288x4xf32>
    %c1_65 = arith.constant 1 : index
    %c0_66 = arith.constant 0 : index
    %73 = vector.load %arg8[%c1_65, %c0_66] : memref<342x4xf32, #tpu.memory_space<vmem>>, vector<288x4xf32>
    %74 = arith.truncf %73 : vector<288x4xf32> to vector<288x4xbf16>
    %c1_67 = arith.constant 1 : index
    %c0_68 = arith.constant 0 : index
    %c0_69 = arith.constant 0 : index
    %75 = vector.load %arg5[%c1_67, %c0_68, %c0_69] : memref<9x4x4xbf16, #tpu.memory_space<vmem>>, vector<1x4x4xbf16>
    %76 = vector.shape_cast %75 : vector<1x4x4xbf16> to vector<4x4xbf16>
    %cst_70 = arith.constant dense<0.000000e+00> : vector<288x4xf32>
    %77 = tpu.matmul %74, %76, %cst_70 {dimension_numbers = #tpu.dot_dimension_numbers<[1], [0], [0], [1], [0, 0, 1, 1], [], []>} : vector<288x4xbf16>, vector<4x4xbf16>, vector<288x4xf32> -> vector<288x4xf32>
    %78 = arith.addf %72, %77 : vector<288x4xf32>
    %c2_71 = arith.constant 2 : index
    %c0_72 = arith.constant 0 : index
    %79 = vector.load %arg8[%c2_71, %c0_72] : memref<342x4xf32, #tpu.memory_space<vmem>>, vector<288x4xf32>
    %80 = arith.truncf %79 : vector<288x4xf32> to vector<288x4xbf16>
    %c2_73 = arith.constant 2 : index
    %c0_74 = arith.constant 0 : index
    %c0_75 = arith.constant 0 : index
    %81 = vector.load %arg5[%c2_73, %c0_74, %c0_75] : memref<9x4x4xbf16, #tpu.memory_space<vmem>>, vector<1x4x4xbf16>
    %82 = vector.shape_cast %81 : vector<1x4x4xbf16> to vector<4x4xbf16>
    %cst_76 = arith.constant dense<0.000000e+00> : vector<288x4xf32>
    %83 = tpu.matmul %80, %82, %cst_76 {dimension_numbers = #tpu.dot_dimension_numbers<[1], [0], [0], [1], [0, 0, 1, 1], [], []>} : vector<288x4xbf16>, vector<4x4xbf16>, vector<288x4xf32> -> vector<288x4xf32>
    %84 = arith.addf %78, %83 : vector<288x4xf32>
    %c18_77 = arith.constant 18 : index
    %c0_78 = arith.constant 0 : index
    %85 = vector.load %arg8[%c18_77, %c0_78] : memref<342x4xf32, #tpu.memory_space<vmem>>, vector<288x4xf32>
    %86 = arith.truncf %85 : vector<288x4xf32> to vector<288x4xbf16>
    %c3_79 = arith.constant 3 : index
    %c0_80 = arith.constant 0 : index
    %c0_81 = arith.constant 0 : index
    %87 = vector.load %arg5[%c3_79, %c0_80, %c0_81] : memref<9x4x4xbf16, #tpu.memory_space<vmem>>, vector<1x4x4xbf16>
    %88 = vector.shape_cast %87 : vector<1x4x4xbf16> to vector<4x4xbf16>
    %cst_82 = arith.constant dense<0.000000e+00> : vector<288x4xf32>
    %89 = tpu.matmul %86, %88, %cst_82 {dimension_numbers = #tpu.dot_dimension_numbers<[1], [0], [0], [1], [0, 0, 1, 1], [], []>} : vector<288x4xbf16>, vector<4x4xbf16>, vector<288x4xf32> -> vector<288x4xf32>
    %90 = arith.addf %84, %89 : vector<288x4xf32>
    %c19_83 = arith.constant 19 : index
    %c0_84 = arith.constant 0 : index
    %91 = vector.load %arg8[%c19_83, %c0_84] : memref<342x4xf32, #tpu.memory_space<vmem>>, vector<288x4xf32>
    %92 = arith.truncf %91 : vector<288x4xf32> to vector<288x4xbf16>
    %c4_85 = arith.constant 4 : index
    %c0_86 = arith.constant 0 : index
    %c0_87 = arith.constant 0 : index
    %93 = vector.load %arg5[%c4_85, %c0_86, %c0_87] : memref<9x4x4xbf16, #tpu.memory_space<vmem>>, vector<1x4x4xbf16>
    %94 = vector.shape_cast %93 : vector<1x4x4xbf16> to vector<4x4xbf16>
    %cst_88 = arith.constant dense<0.000000e+00> : vector<288x4xf32>
    %95 = tpu.matmul %92, %94, %cst_88 {dimension_numbers = #tpu.dot_dimension_numbers<[1], [0], [0], [1], [0, 0, 1, 1], [], []>} : vector<288x4xbf16>, vector<4x4xbf16>, vector<288x4xf32> -> vector<288x4xf32>
    %96 = arith.addf %90, %95 : vector<288x4xf32>
    %c20_89 = arith.constant 20 : index
    %c0_90 = arith.constant 0 : index
    %97 = vector.load %arg8[%c20_89, %c0_90] : memref<342x4xf32, #tpu.memory_space<vmem>>, vector<288x4xf32>
    %98 = arith.truncf %97 : vector<288x4xf32> to vector<288x4xbf16>
    %c5_91 = arith.constant 5 : index
    %c0_92 = arith.constant 0 : index
    %c0_93 = arith.constant 0 : index
    %99 = vector.load %arg5[%c5_91, %c0_92, %c0_93] : memref<9x4x4xbf16, #tpu.memory_space<vmem>>, vector<1x4x4xbf16>
    %100 = vector.shape_cast %99 : vector<1x4x4xbf16> to vector<4x4xbf16>
    %cst_94 = arith.constant dense<0.000000e+00> : vector<288x4xf32>
    %101 = tpu.matmul %98, %100, %cst_94 {dimension_numbers = #tpu.dot_dimension_numbers<[1], [0], [0], [1], [0, 0, 1, 1], [], []>} : vector<288x4xbf16>, vector<4x4xbf16>, vector<288x4xf32> -> vector<288x4xf32>
    %102 = arith.addf %96, %101 : vector<288x4xf32>
    %c36_95 = arith.constant 36 : index
    %c0_96 = arith.constant 0 : index
    %103 = vector.load %arg8[%c36_95, %c0_96] : memref<342x4xf32, #tpu.memory_space<vmem>>, vector<288x4xf32>
    %104 = arith.truncf %103 : vector<288x4xf32> to vector<288x4xbf16>
    %c6_97 = arith.constant 6 : index
    %c0_98 = arith.constant 0 : index
    %c0_99 = arith.constant 0 : index
    %105 = vector.load %arg5[%c6_97, %c0_98, %c0_99] : memref<9x4x4xbf16, #tpu.memory_space<vmem>>, vector<1x4x4xbf16>
    %106 = vector.shape_cast %105 : vector<1x4x4xbf16> to vector<4x4xbf16>
    %cst_100 = arith.constant dense<0.000000e+00> : vector<288x4xf32>
    %107 = tpu.matmul %104, %106, %cst_100 {dimension_numbers = #tpu.dot_dimension_numbers<[1], [0], [0], [1], [0, 0, 1, 1], [], []>} : vector<288x4xbf16>, vector<4x4xbf16>, vector<288x4xf32> -> vector<288x4xf32>
    %108 = arith.addf %102, %107 : vector<288x4xf32>
    %c37_101 = arith.constant 37 : index
    %c0_102 = arith.constant 0 : index
    %109 = vector.load %arg8[%c37_101, %c0_102] : memref<342x4xf32, #tpu.memory_space<vmem>>, vector<288x4xf32>
    %110 = arith.truncf %109 : vector<288x4xf32> to vector<288x4xbf16>
    %c7_103 = arith.constant 7 : index
    %c0_104 = arith.constant 0 : index
    %c0_105 = arith.constant 0 : index
    %111 = vector.load %arg5[%c7_103, %c0_104, %c0_105] : memref<9x4x4xbf16, #tpu.memory_space<vmem>>, vector<1x4x4xbf16>
    %112 = vector.shape_cast %111 : vector<1x4x4xbf16> to vector<4x4xbf16>
    %cst_106 = arith.constant dense<0.000000e+00> : vector<288x4xf32>
    %113 = tpu.matmul %110, %112, %cst_106 {dimension_numbers = #tpu.dot_dimension_numbers<[1], [0], [0], [1], [0, 0, 1, 1], [], []>} : vector<288x4xbf16>, vector<4x4xbf16>, vector<288x4xf32> -> vector<288x4xf32>
    %114 = arith.addf %108, %113 : vector<288x4xf32>
    %c38_107 = arith.constant 38 : index
    %c0_108 = arith.constant 0 : index
    %115 = vector.load %arg8[%c38_107, %c0_108] : memref<342x4xf32, #tpu.memory_space<vmem>>, vector<288x4xf32>
    %116 = arith.truncf %115 : vector<288x4xf32> to vector<288x4xbf16>
    %c8_109 = arith.constant 8 : index
    %c0_110 = arith.constant 0 : index
    %c0_111 = arith.constant 0 : index
    %117 = vector.load %arg5[%c8_109, %c0_110, %c0_111] : memref<9x4x4xbf16, #tpu.memory_space<vmem>>, vector<1x4x4xbf16>
    %118 = vector.shape_cast %117 : vector<1x4x4xbf16> to vector<4x4xbf16>
    %cst_112 = arith.constant dense<0.000000e+00> : vector<288x4xf32>
    %119 = tpu.matmul %116, %118, %cst_112 {dimension_numbers = #tpu.dot_dimension_numbers<[1], [0], [0], [1], [0, 0, 1, 1], [], []>} : vector<288x4xbf16>, vector<4x4xbf16>, vector<288x4xf32> -> vector<288x4xf32>
    %120 = arith.addf %114, %119 : vector<288x4xf32>
    %c0_113 = arith.constant 0 : index
    %c0_114 = arith.constant 0 : index
    %121 = vector.load %arg6[%c0_113, %c0_114] : memref<1x4xf32, #tpu.memory_space<vmem>>, vector<1x4xf32>
    %122 = vector.broadcast %121 : vector<1x4xf32> to vector<288x4xf32>
    %123 = arith.addf %120, %122 : vector<288x4xf32>
    %c0_115 = arith.constant 0 : index
    %c19_116 = arith.constant 19 : index
    %c0_117 = arith.constant 0 : index
    %124 = vector.load %arg1[%c0_115, %c19_116, %c0_117] : memref<1x342x4xbf16, #tpu.memory_space<vmem>>, vector<1x288x4xbf16>
    %125 = vector.shape_cast %124 : vector<1x288x4xbf16> to vector<288x4xbf16>
    %126 = arith.extf %125 : vector<288x4xbf16> to vector<288x4xf32>
    %127 = arith.addf %123, %126 : vector<288x4xf32>
    %cst_118 = arith.constant 0.000000e+00 : f32
    %128 = vector.broadcast %cst_118 : f32 to vector<288x4xf32>
    %129 = arith.maximumf %127, %128 : vector<288x4xf32>
    %c0_119 = arith.constant 0 : index
    %c0_120 = arith.constant 0 : index
    %c0_121 = arith.constant 0 : index
    %130 = vector.load %arg7[%c0_119, %c0_120, %c0_121] : memref<1x288x4xf32, #tpu.memory_space<vmem>>, vector<1x288x4xf32>
    %131 = vector.shape_cast %130 : vector<1x288x4xf32> to vector<288x4xf32>
    %132 = vector.shape_cast %129 : vector<288x4xf32> to vector<1x288x4xf32>
    tpu.vector_store %arg7[%c0_119, %c0_120, %c0_121], %132 {strides = array<i32>} : memref<1x288x4xf32, #tpu.memory_space<vmem>>, vector<1x288x4xf32>,
    return
  }
  func.func @transform_0(%arg0: i32) -> (i32, i32, i32) {
    %c0_i32 = arith.constant 0 : i32
    %c0_i32_0 = arith.constant 0 : i32
    %c0_i32_1 = arith.constant 0 : i32
    return %arg0, %c0_i32, %c0_i32_0 : i32, i32, i32
  }
  func.func @transform_1(%arg0: i32) -> (i32, i32) {
    %c0_i32 = arith.constant 0 : i32
    %c0_i32_0 = arith.constant 0 : i32
    %c0_i32_1 = arith.constant 0 : i32
    return %c0_i32, %c0_i32_0 : i32, i32
  }
  func.func @transform_2(%arg0: i32) -> (i32, i32, i32) {
    %c0_i32 = arith.constant 0 : i32
    %c0_i32_0 = arith.constant 0 : i32
    %c0_i32_1 = arith.constant 0 : i32
    %c0_i32_2 = arith.constant 0 : i32
    return %c0_i32, %c0_i32_0, %c0_i32_1 : i32, i32, i32
  }
  func.func @transform_3(%arg0: i32) -> (i32, i32) {
    %c0_i32 = arith.constant 0 : i32
    %c0_i32_0 = arith.constant 0 : i32
    %c0_i32_1 = arith.constant 0 : i32
    return %c0_i32, %c0_i32_0 : i32, i32
  }
  func.func @transform_4(%arg0: i32) -> (i32, i32, i32) {
    %c0_i32 = arith.constant 0 : i32
    %c0_i32_0 = arith.constant 0 : i32
    %c0_i32_1 = arith.constant 0 : i32
    %c0_i32_2 = arith.constant 0 : i32
    return %c0_i32, %c0_i32_0, %c0_i32_1 : i32, i32, i32
  }
  func.func @transform_5(%arg0: i32) -> (i32, i32) {
    %c0_i32 = arith.constant 0 : i32
    %c0_i32_0 = arith.constant 0 : i32
    %c0_i32_1 = arith.constant 0 : i32
    return %c0_i32, %c0_i32_0 : i32, i32
  }
  func.func @transform_6(%arg0: i32) -> (i32, i32, i32) {
    %c0_i32 = arith.constant 0 : i32
    %c0_i32_0 = arith.constant 0 : i32
    %c0_i32_1 = arith.constant 0 : i32
    return %arg0, %c0_i32, %c0_i32_0 : i32, i32, i32
  }
}

</mosaic_0001>

<bundles_post_ra>
// kernel: residual_forward.1
= control target key start
LH: loop header
LB: loop body
LE: loop exit
PB: predicated region body
PF: predicated region fallthrough
CT: control target
= control target key end

     0   :  { %s9639_s21 = smov 0   ;;  %s11138_s0 = inlined_call_operand.vmem [shape: bf16[2,342,4], index: 0, kind: input, shape index: {}]   ;;  %s11139_s1 = inlined_call_operand.vmem [shape: f32[288,1], index: 1, kind: input, shape index: {}]   ;;  %s11140_s2 = inlined_call_operand.vmem [shape: bf16[9,4,4], index: 2, kind: input, shape index: {}]   ;;  %s11141_s3 = inlined_call_operand.vmem [shape: f32[1,4], index: 3, kind: input, shape index: {}]   ;;  %s11142_s4 = inlined_call_operand.vmem [shape: bf16[9,4,4], index: 4, kind: input, shape index: {}]   ;;  %s11143_s5 = inlined_call_operand.vmem [shape: f32[1,4], index: 5, kind: input, shape index: {}]   ;;  %s11144_s6 = inlined_call_operand.vmem [shape: f32[2,288,4], index: 6, kind: output, shape index: {}]  }
   0x1 LB: > { %s7400_s22 = sadd.s32 4294967295, %s9600_s21   ;;  %p7404_p0 = scmp.ge.s32.totalorder %s9600_s21, 1  ;;  %s9600_s21 = sphi %s9639_s21, %s16_s21  }
   0x2   : > { %p212_p1 = scmp.lt.s32.totalorder %s9600_s21, 3 }
   0x4   : > { %p213_p2 = pnand %p7404_p0, %p212_p1 }
   0x5   : > { %v7407_v0 = vld [vmem:[%s11140_s2 + $0x2] sm:$0x3] (!%p213_p2)  ;;  %vm590_vm0 = vcmask (!%p213_p2), 1041408   ;;  %p242_p3 = scmp.lt.s32.totalorder (!%p213_p2), %s7400_s22, 1  ;;  %v289_v2 = vld [vmem:[%s11140_s2] sm:$0x3] (!%p213_p2) }
   0x6   : > { %216 = sbr.rel (%p213_p2) target bundleno = 1697 (0x6a1), region = 44  ;;  %9500 = vmatprep.subr.msk.bf16.mxu0 (!%p213_p2), %vm590_vm0, %v7407_v0  ;;  %v592_v1 = vsel (!%p213_p2), %vm590_vm0, %v7407_v0, 0  ;;  %vm386_vm1 = vsmask.f32 (!%p213_p2), 7424  ;;  %vm535_vm2 = vcmask (!%p213_p2), 31744   ;;  %v808_v24 = vsel (!%p213_p2), %vm590_vm0, %v289_v2, 0 }
   0x7   : > { %8241 = vmatpush3.bf16.msra.mxu0 (!%p213_p2), %v592_v1  ;;  %v9705_v33 = vld [vmem:[%s11140_s2 + $0x4] sm:$0x3] (!%p213_p2)  ;;  %vm993_vm3 = vcmask (!%p213_p2), 1046528   ;;  %vm1746_vm4 = vsmask.f32 (!%p213_p2), 6400  ;;  %vm2193_vm5 = vcmask (!%p213_p2), 1045504  }
   0x8   : > { %9501 = vmatprep.subr.msk.bf16.mxu0 (!%p213_p2), %vm590_vm0, %v289_v2  ;;  %vm2946_vm6 = vsmask.f32 (!%p213_p2), 5376  ;;  %vm3393_vm7 = vcmask (!%p213_p2), 1044480  }
   0xd   : > { %s11146_s22 = smov (!%p242_p3, %s7400_s22), 1 }
   0xe   : > { %s9518_s27 = smul.u32 172, %s11146_s22 }
   0xf   : > { %s9519_s10 = smul.u32 288, %s11146_s22 }
  0x10   : > { %s9662_s30 = scalar_lea.vmem %s11138_s0, %s9518_s27 }
  0x11   : > { %v253_v3 = vld [vmem:[%s9662_s30] sm:$0xf]  ;;  %v9666_v4 = vld [vmem:[%s9662_s30 + $0x4] sm:$0xf]  ;;  %v9672_v6 = vld [vmem:[%s9662_s30 + $0x8] sm:$0xff]   ;;  %s10982_s12 = scalar_lea.vmem %s11144_s6, %s9519_s10 }
  0x12   : > { %v9669_v5 = vcombine.low %v253_v3, %v9666_v4  ;;  %v9675_v7 = vld [vmem:[%s9662_s30 + $0x10] sm:$0xff]   ;;  %v395_v10 = vshll.u32 %v9672_v6, 16  ;;  %v399_v11 = vshrl.u32 %v9672_v6, 16  ;;  %v9683_v13 = vld [vmem:[%s9662_s30 + $0x18] sm:$0xff]   ;;  %v9687_v15 = vld [vmem:[%s9662_s30 + $0x20] sm:$0xff]  }
  0x13   : > { %v403_v12 = vshll.u32 %v9675_v7, 16  ;;  %v407_v14 = vshrl.u32 %v9675_v7, 16  ;;  %v411_v19 = vshll.u32 %v9683_v13, 16  ;;  %v419_v22 = vshll.u32 %v9687_v15, 16  ;;  %v9692_v23 = vld [vmem:[%s9662_s30 + $0x28] sm:$0xff]   ;;  %v9709_v35 = vld [vmem:[%s9662_s30 + $0x30] sm:$0xff]  }
  0x14   : > { %v388_v8 = vshrl.u32 %v9669_v5, 16  ;;  %v390_v9 = vshll.u32 %v9669_v5, 16  ;;  %v397_v17 = vrot.slane %v395_v10, 1  ;;  %v415_v27 = vshrl.u32 %v9683_v13, 16  ;;  %v9713_v39 = vld [vmem:[%s9662_s30 + $0x38] sm:$0xff]   ;;  %v9725_v47 = vld [vmem:[%s9662_s30 + $0x40] sm:$0xff]  }
  0x15   : > { %v405_v18 = vrot.slane %v403_v12, 1  ;;  %v413_v26 = vrot.slane %v411_v19, 1  ;;  %v423_v30 = vshrl.u32 %v9687_v15, 16  ;;  %v427_v31 = vshll.u32 %v9692_v23, 16  ;;  %v9728_v48 = vld [vmem:[%s9662_s30 + $0x48] sm:$0xff]   ;;  %v9732_v50 = vld [vmem:[%s9662_s30 + $0x50] sm:$0xff]  }
  0x16   : > { %v392_v16 = vrot.slane %v390_v9, 1  ;;  %v401_v21 = vor.u32 %v399_v11, %v397_v17  ;;  %v421_v34 = vrot.slane %v419_v22, 1  ;;  %v435_v40 = vshll.u32 %v9709_v35, 16  ;;  %v9735_v53 = vld [vmem:[%s9662_s30 + $0x58] sm:$0xff]   ;;  %v9746_v62 = vld [vmem:[%s9662_s30 + $0x60] sm:$0xff]  }
  0x17   : > { %v409_v25 = vor.u32 %v407_v14, %v405_v18  ;;  %v417_v36 = vor.u32 %v415_v27, %v413_v26  ;;  %v429_v38 = vrot.slane %v427_v31, 1  ;;  %v431_v42 = vshrl.u32 %v9692_v23, 16  ;;  %v9755_v14 = vld [vmem:[%s9662_s30 + $0x68] sm:$0xff]  }
  0x18   : > { %v393_v20 = vor.u32 %v392_v16, %v388_v8  ;;  %v406_v29 = vsel %vm386_vm1, %v401_v21, %v405_v18  ;;  %v425_v37 = vor.u32 %v423_v30, %v421_v34  ;;  %v439_v44 = vshrl.u32 %v9709_v35, 16 }
  0x19   : > { %v414_v32 = vsel %vm386_vm1, %v409_v25, %v413_v26  ;;  %v422_v41 = vsel %vm386_vm1, %v417_v36, %v421_v34  ;;  %v443_v45 = vshll.u32 %v9713_v39, 16  ;;  %v437_v46 = vrot.slane %v435_v40, 1  ;;  %v9765_v25 = vld [vmem:[%s9662_s30 + $0x70] sm:$0xff]   ;;  %v9768_v26 = vld [vmem:[%s9662_s30 + $0x78] sm:$0xff]  }
  0x1a   : > { %v398_v28 = vsel %vm386_vm1, %v393_v20, %v397_v17  ;;  %v430_v43 = vsel %vm386_vm1, %v425_v37, %v429_v38  ;;  %v433_v49 = vor.u32 %v431_v42, %v429_v38  ;;  %v447_v54 = vshrl.u32 %v9713_v39, 16 }
  0x1b   : > { %8242 = vmatprep.mubr.msk.bf16.mxu0 %vm535_vm2, %v398_v28  ;;  %v441_v51 = vor.u32 %v439_v44, %v437_v46  ;;  %v445_v52 = vrot.slane %v443_v45, 1  ;;  %v451_v55 = vshll.u32 %v9725_v47, 16  ;;  %v459_v57 = vshll.u32 %v9728_v48, 16  ;;  %v9785_v45 = vld [vmem:[%s9662_s30 + $0x88] sm:$0xff]  }
  0x1c   : > { %8243 = vmatmul.mubr.msk.bf16.vlgmr.msra.gmra.mrb[0].mxu0 %vm535_vm2, %v406_v29  ;;  %v438_v56 = vsel %vm386_vm1, %v433_v49, %v437_v46  ;;  %v467_v58 = vshll.u32 %v9732_v50, 16  ;;  %v455_v60 = vshrl.u32 %v9725_v47, 16  ;;  %v475_v61 = vshll.u32 %v9735_v53, 16 }
  0x1d   : > { %8279 = vmatpush3.bf16.msra.mxu0 %v808_v24  ;;  %8246 = vmatprep.mubr.msk.bf16.mxu0 %vm535_vm2, %v414_v32  ;;  %v446_v59 = vsel %vm386_vm1, %v441_v51, %v445_v52  ;;  %v449_v63 = vor.u32 %v447_v54, %v445_v52  ;;  %v453_v0 = vrot.slane %v451_v55, 1  ;;  %v463_v1 = vshrl.u32 %v9728_v48, 16 }
  0x1e   : > { %9502 = vmatprep.subr.msk.bf16.mxu0 %vm590_vm0, %v9705_v33  ;;  %v461_v2 = vrot.slane %v459_v57, 1  ;;  %v469_v3 = vrot.slane %v467_v58, 1  ;;  %v471_v8 = vshrl.u32 %v9732_v50, 16  ;;  %v479_v9 = vshrl.u32 %v9735_v53, 16 }
  0x1f   : > { %v457_v10 = vor.u32 %v455_v60, %v453_v0  ;;  %v477_v11 = vrot.slane %v475_v61, 1  ;;  %v483_v12 = vshll.u32 %v9746_v62, 16  ;;  %v454_v16 = vsel %vm386_vm1, %v449_v63, %v453_v0  ;;  %v9796_v58 = vld [vmem:[%s9662_s30 + $0x90] ss:$0 sps:$4 sm:$0x11]  }
  0x20   : > { %v487_v18 = vshrl.u32 %v9746_v62, 16  ;;  %v491_v19 = vshll.u32 %v9755_v14, 16  ;;  %v465_v20 = vor.u32 %v463_v1, %v461_v2  ;;  %v495_v22 = vshrl.u32 %v9755_v14, 16 }
  0x21   : > { %v462_v17 = vsel %vm386_vm1, %v457_v10, %v461_v2  ;;  %v485_v21 = vrot.slane %v483_v12, 1  ;;  %v473_v24 = vor.u32 %v471_v8, %v469_v3  ;;  %v499_v30 = vshll.u32 %v9765_v25, 16  ;;  %v7483_v10 = vld [vmem:[%s11140_s2 + $0x6] sm:$0x3] }
  0x22   : > { %v470_v27 = vsel %vm386_vm1, %v465_v20, %v469_v3  ;;  %v493_v29 = vrot.slane %v491_v19, 1  ;;  %v481_v31 = vor.u32 %v479_v9, %v477_v11  ;;  %v503_v32 = vshrl.u32 %v9765_v25, 16 }
  0x23   : > { %v478_v28 = vsel %vm386_vm1, %v473_v24, %v477_v11  ;;  %v507_v34 = vshll.u32 %v9768_v26, 16  ;;  %v489_v36 = vor.u32 %v487_v18, %v485_v21  ;;  %v501_v40 = vrot.slane %v499_v30, 1 }
  0x24   : > { %8247 = vmatmul.mubr.msk.bf16.gmra.mrb[4].mxu0 %vm535_vm2, %v422_v41  ;;  %v486_v37 = vsel %vm386_vm1, %v481_v31, %v485_v21  ;;  %v9781_v41 = vld [vmem:[%s9662_s30 + $0x80] sm:$0xff]   ;;  %v497_v42 = vor.u32 %v495_v22, %v493_v29  ;;  %v511_v51 = vshrl.u32 %v9768_v26, 16  ;;  %v523_v55 = vshll.u32 %v9785_v45, 16 }
  0x25   : > { %8250 = vmatprep.mubr.msk.bf16.mxu0 %vm535_vm2, %v430_v43  ;;  %v494_v38 = vsel %vm386_vm1, %v489_v36, %v493_v29  ;;  %v505_v43 = vor.u32 %v503_v32, %v501_v40  ;;  %v509_v44 = vrot.slane %v507_v34, 1  ;;  %v515_v46 = vshll.u32 %v9781_v41, 16 }
  0x26   : > { %v502_v49 = vsel %vm386_vm1, %v497_v42, %v501_v40  ;;  %v519_v54 = vshrl.u32 %v9781_v41, 16  ;;  %v525_v60 = vrot.slane %v523_v55, 1  ;;  %v527_v63 = vshrl.u32 %v9785_v45, 16  ;;  %v1301_v42 = vld [vmem:[%s9662_s30 + $0x8] sm:$0xe]  ;;  %v9928_v55 = vld [vmem:[%s9662_s30 + $0x20] sm:$0xff]  }
  0x27   : > { %v510_v52 = vsel %vm386_vm1, %v505_v43, %v509_v44  ;;  %v513_v57 = vor.u32 %v511_v51, %v509_v44  ;;  %v531_v0 = vshll.u32 %v9796_v58, 16  ;;  %v1086_v9 = vsel %vm590_vm0, %v9705_v33, 0  ;;  %v9907_v43 = vld [vmem:[%s9662_s30 + $0xc] sm:$0xf] }
  0x28   : > { %v529_v2 = vor.u32 %v527_v63, %v525_v60  ;;  %v995_v12 = vrot.slane %v9672_v6, 1  ;;  %v1525_v19 = vsel %vm590_vm0, %v7483_v10, 0  ;;  %v1005_v24 = vrot.slane %v9709_v35, 1  ;;  %v9942_v63 = vld [vmem:[%s9662_s30 + $0x30] sm:$0xff]  }
  0x29   : > { %v533_v3 = vrot.slane %v531_v0, 1  ;;  %v1011_v29 = vrot.slane %v9728_v48, 1  ;;  %v9912_v44 = vcombine.low %v1301_v42, %v9907_v43  ;;  %v9947_v0 = vld [vmem:[%s11140_s2 + $0xa] sm:$0x3] }
  0x2b   : > { %v534_v8 = vsel %vm386_vm1, %v529_v2, %v533_v3  ;;  %v1442_v2 = vrot.slane %v9942_v63, 1 }
  0x2c   : > { %8251 = vmatmul.mubr.msk.bf16.gmra.mrb[8].mxu0 %vm535_vm2, %v438_v56  ;;  %v517_v56 = vrot.slane %v515_v46, 1  ;;  %v9915_v46 = vld [vmem:[%s9662_s30 + $0x10] sm:$0xff]  }
  0x2d   : > { %8254 = vmatprep.mubr.msk.bf16.mxu0 %vm535_vm2, %v446_v59 }
  0x2e   : > { %v521_v59 = vor.u32 %v519_v54, %v517_v56  ;;  %v518_v61 = vsel %vm386_vm1, %v513_v57, %v517_v56  ;;  %v1438_v57 = vrot.slane %v9928_v55, 1 }
  0x30   : > { %v526_v1 = vsel %vm386_vm1, %v521_v59, %v525_v60  ;;  %v9936_v59 = vld [vmem:[%s9662_s30 + $0x28] sm:$0xff]  }
  0x34   : > { %8255 = vmatmul.mubr.msk.bf16.gmra.mrb[12].mxu0 %vm535_vm2, %v454_v16 }
  0x35   : > { %8258 = vmatprep.mubr.msk.bf16.mxu0 %vm535_vm2, %v462_v17  ;;  %v997_v17 = vrot.slane %v9675_v7, 1 }
  0x37   : > { %v998_v18 = vsel %vm993_vm3, %v995_v12, %v997_v17 }
  0x3c   : > { %8259 = vmatmul.mubr.msk.bf16.gmra.mrb[16].mxu0 %vm535_vm2, %v470_v27  ;;  %v1007_v27 = vrot.slane %v9713_v39, 1 }
  0x3d   : > { %8262 = vmatprep.mubr.msk.bf16.mxu0 %vm535_vm2, %v478_v28 }
  0x44   : > { %8263 = vmatmul.mubr.msk.bf16.gmra.mrb[20].mxu0 %vm535_vm2, %v486_v37  ;;  %v1023_v37 = vrot.slane %v9768_v26, 1 }
  0x45   : > { %8266 = vmatprep.mubr.msk.bf16.mxu0 %vm535_vm2, %v494_v38 }
  0x4c   : > { %8267 = vmatmul.mubr.msk.bf16.gmra.mrb[24].mxu0 %vm535_vm2, %v502_v49  ;;  %v1434_v49 = vrot.slane %v9915_v46, 1 }
  0x4d   : > { %8270 = vmatprep.mubr.msk.bf16.mxu0 %vm535_vm2, %v510_v52  ;;  %v9924_v52 = vld [vmem:[%s9662_s30 + $0x18] sm:$0xff]  }
  0x4e   : > { %v1436_v56 = vrot.slane %v9924_v52, 1 }
  0x54   : > { %8271 = vmatmul.mubr.msk.bf16.gmra.mrb[28].mxu0 %vm535_vm2, %v518_v61  ;;  %v1439_v61 = vsel %vm993_vm3, %v1436_v56, %v1438_v57 }
  0x55   : > { %8274 = vmatprep.mubr.msk.bf16.mxu0 %vm535_vm2, %v526_v1  ;;  %v1440_v1 = vrot.slane %v9936_v59, 1 }
  0x57   : > { %v1441_v3 = vsel %vm993_vm3, %v1438_v57, %v1440_v1 }
  0x5c   : > { %8275 = vmatmul.mubr.msk.bf16.gmra.mrb[32].mxu0 %vm535_vm2, %v534_v8  ;;  %v9957_v8 = vld [vmem:[%s9662_s30 + $0x38] sm:$0xff]  }
  0x5d   : > { %8280 = vmatprep.mubr.msk.bf16.mxu0 %vm535_vm2, %v9669_v5  ;;  %v987_v5 = vld [vmem:[%s9662_s30] sm:$0xe] }
  0x5e   : > { %v7464_v33 = vcombine.low %v987_v5, %v9666_v4  ;;  %v999_v4 = vrot.slane %v9683_v13, 1  ;;  %v1444_v5 = vrot.slane %v9957_v8, 1 }
  0x60   : > { %v994_v11 = vrot.slane %v7464_v33, 1  ;;  %v1000_v20 = vsel %vm993_vm3, %v997_v17, %v999_v4  ;;  %v9973_v17 = vld [vmem:[%s9662_s30 + $0x50] sm:$0xff]  }
  0x62   : > { %v996_v16 = vsel %vm993_vm3, %v994_v11, %v995_v12  ;;  %v1445_v11 = vsel %vm993_vm3, %v1442_v2, %v1444_v5  ;;  %v9969_v12 = vld [vmem:[%s9662_s30 + $0x48] sm:$0xff]  }
  0x64   : > { %8281 = vmatmul.mubr.msk.bf16.vlgmr.msra.gmra.mrb[0].mxu0 %vm535_vm2, %v9672_v6  ;;  %v9861_v6 = vld [vmem:[%s11140_s2 + $0x8] sm:$0x3] }
  0x65   : > { %8317 = vmatpush3.bf16.msra.mxu0 %v1086_v9  ;;  %8284 = vmatprep.mubr.msk.bf16.mxu0 %vm535_vm2, %v9675_v7  ;;  %v1001_v7 = vrot.slane %v9687_v15, 1  ;;  %v1972_v60 = vsel %vm590_vm0, %v9861_v6, 0  ;;  %v1443_v9 = vsel %vm993_vm3, %v1440_v1, %v1442_v2 }
  0x66   : > { %9503 = vmatprep.subr.msk.bf16.mxu0 %vm590_vm0, %v7483_v10  ;;  %v9961_v10 = vld [vmem:[%s9662_s30 + $0x40] sm:$0xff]  }
  0x67   : > { %v1002_v21 = vsel %vm993_vm3, %v999_v4, %v1001_v7  ;;  %v1446_v33 = vrot.slane %v9961_v10, 1  ;;  %v1448_v4 = vrot.slane %v9969_v12, 1 }
  0x6c   : > { %8285 = vmatmul.mubr.msk.bf16.gmra.mrb[4].mxu0 %vm535_vm2, %v9683_v13  ;;  %v1003_v13 = vrot.slane %v9692_v23, 1 }
  0x6d   : > { %8288 = vmatprep.mubr.msk.bf16.mxu0 %vm535_vm2, %v9687_v15  ;;  %v1008_v15 = vsel %vm993_vm3, %v1005_v24, %v1007_v27 }
  0x6e   : > { %v1004_v22 = vsel %vm993_vm3, %v1001_v7, %v1003_v13  ;;  %v1006_v28 = vsel %vm993_vm3, %v1003_v13, %v1005_v24  ;;  %v9985_v7 = vld [vmem:[%s9662_s30 + $0x60] sm:$0xff]   ;;  %v9993_v24 = vld [vmem:[%s9662_s30 + $0x68] sm:$0xff]  }
  0x74   : > { %8289 = vmatmul.mubr.msk.bf16.gmra.mrb[8].mxu0 %vm535_vm2, %v9692_v23  ;;  %v1009_v23 = vrot.slane %v9725_v47, 1 }
  0x75   : > { %8292 = vmatprep.mubr.msk.bf16.mxu0 %vm535_vm2, %v9709_v35  ;;  %v1013_v35 = vrot.slane %v9732_v50, 1 }
  0x76   : > { %v1010_v30 = vsel %vm993_vm3, %v1007_v27, %v1009_v23  ;;  %v1012_v31 = vsel %vm993_vm3, %v1009_v23, %v1011_v29 }
  0x77   : > { %v1014_v32 = vsel %vm993_vm3, %v1011_v29, %v1013_v35 }
  0x7c   : > { %8293 = vmatmul.mubr.msk.bf16.gmra.mrb[12].mxu0 %vm535_vm2, %v9713_v39  ;;  %v1015_v39 = vrot.slane %v9735_v53, 1 }
  0x7d   : > { %8296 = vmatprep.mubr.msk.bf16.mxu0 %vm535_vm2, %v9725_v47  ;;  %v1017_v47 = vrot.slane %v9746_v62, 1 }
  0x7e   : > { %v1016_v34 = vsel %vm993_vm3, %v1013_v35, %v1015_v39  ;;  %v10009_v35 = vld [vmem:[%s9662_s30 + $0x80] sm:$0xff]  }
  0x7f   : > { %v1018_v36 = vsel %vm993_vm3, %v1015_v39, %v1017_v47 }
  0x84   : > { %8297 = vmatmul.mubr.msk.bf16.gmra.mrb[16].mxu0 %vm535_vm2, %v9728_v48  ;;  %v1019_v48 = vrot.slane %v9755_v14, 1 }
  0x85   : > { %8300 = vmatprep.mubr.msk.bf16.mxu0 %vm535_vm2, %v9732_v50 }
  0x86   : > { %v1020_v50 = vsel %vm993_vm3, %v1017_v47, %v1019_v48  ;;  %v10017_v47 = vld [vmem:[%s9662_s30 + $0x88] sm:$0xff]  }
  0x8c   : > { %8301 = vmatmul.mubr.msk.bf16.gmra.mrb[20].mxu0 %vm535_vm2, %v9735_v53  ;;  %v1021_v53 = vrot.slane %v9765_v25, 1 }
  0x8d   : > { %8304 = vmatprep.mubr.msk.bf16.mxu0 %vm535_vm2, %v9746_v62  ;;  %v1025_v62 = vrot.slane %v9781_v41, 1 }
  0x8e   : > { %v1022_v38 = vsel %vm993_vm3, %v1019_v48, %v1021_v53  ;;  %v1024_v40 = vsel %vm993_vm3, %v1021_v53, %v1023_v37  ;;  %v10020_v48 = vld [vmem:[%s9662_s30 + $0x90] sm:$0xff]  }
  0x8f   : > { %v1466_v53 = vrot.slane %v10020_v48, 1 }
  0x94   : > { %8305 = vmatmul.mubr.msk.bf16.gmra.mrb[24].mxu0 %vm535_vm2, %v9755_v14  ;;  %v1027_v14 = vrot.slane %v9785_v45, 1 }
  0x95   : > { %8308 = vmatprep.mubr.msk.bf16.mxu0 %vm535_vm2, %v9765_v25  ;;  %v1026_v25 = vsel %vm993_vm3, %v1023_v37, %v1025_v62  ;;  %v1748_v37 = vshrl.u32 %v9912_v44, 16 }
  0x9c   : > { %8309 = vmatmul.mubr.msk.bf16.gmra.mrb[28].mxu0 %vm535_vm2, %v9768_v26  ;;  %v1028_v26 = vsel %vm993_vm3, %v1025_v62, %v1027_v14  ;;  %v1759_v62 = vshll.u32 %v9915_v46, 16 }
  0x9d   : > { %8312 = vmatprep.mubr.msk.bf16.mxu0 %vm535_vm2, %v9781_v41  ;;  %v1029_v41 = vrot.slane %v9796_v58, 1  ;;  %v1437_v58 = vsel %vm993_vm3, %v1434_v49, %v1436_v56 }
  0x9f   : > { %v1030_v51 = vsel %vm993_vm3, %v1027_v14, %v1029_v41 }
  0xa4   : > { %8313 = vmatmul.mubr.msk.bf16.gmra.mrb[32].mxu0 %vm535_vm2, %v9785_v45  ;;  %v1433_v45 = vrot.slane %v9912_v44, 1 }
  0xa5   : > { %8318 = vmatprep.mubr.msk.bf16.mxu0 %vm535_vm2, %v996_v16  ;;  %v1447_v16 = vsel %vm993_vm3, %v1444_v5, %v1446_v33 }
  0xa6   : > { %v1435_v54 = vsel %vm993_vm3, %v1433_v45, %v1434_v49  ;;  %v1761_v49 = vrot.slane %v1759_v62, 2 }
  0xac   : > { %8319 = vmatmul.mubr.msk.bf16.vlgmr.msra.gmra.mrb[0].mxu0 %vm535_vm2, %v998_v18  ;;  %v1450_v18 = vrot.slane %v9973_v17, 1 }
  0xad   : > { %8355 = vmatpush3.bf16.msra.mxu0 %v1525_v19  ;;  %8322 = vmatprep.mubr.msk.bf16.mxu0 %vm535_vm2, %v1000_v20  ;;  %v1449_v19 = vsel %vm993_vm3, %v1446_v33, %v1448_v4  ;;  %v9981_v20 = vld [vmem:[%s9662_s30 + $0x58] sm:$0xff]  }
  0xae   : > { %9504 = vmatprep.subr.msk.bf16.mxu0 %vm590_vm0, %v9861_v6  ;;  %v1451_v6 = vsel %vm993_vm3, %v1448_v4, %v1450_v18  ;;  %v1452_v13 = vrot.slane %v9981_v20, 1 }
  0xb4   : > { %8323 = vmatmul.mubr.msk.bf16.gmra.mrb[4].mxu0 %vm535_vm2, %v1002_v21  ;;  %v1454_v21 = vrot.slane %v9985_v7, 1 }
  0xb5   : > { %8326 = vmatprep.mubr.msk.bf16.mxu0 %vm535_vm2, %v1004_v22  ;;  %v1453_v22 = vsel %vm993_vm3, %v1450_v18, %v1452_v13  ;;  %v1792_v18 = vshrl.u32 %v9942_v63, 16 }
  0xb6   : > { %v1455_v27 = vsel %vm993_vm3, %v1452_v13, %v1454_v21 }
  0xbc   : > { %8327 = vmatmul.mubr.msk.bf16.gmra.mrb[8].mxu0 %vm535_vm2, %v1006_v28  ;;  %v9997_v28 = vld [vmem:[%s9662_s30 + $0x70] sm:$0xff]  }
  0xbd   : > { %8330 = vmatprep.mubr.msk.bf16.mxu0 %vm535_vm2, %v1008_v15  ;;  %v1456_v15 = vrot.slane %v9993_v24, 1  ;;  %v1458_v23 = vrot.slane %v9997_v28, 1 }
  0xbf   : > { %v1457_v29 = vsel %vm993_vm3, %v1454_v21, %v1456_v15 }
  0xc4   : > { %8331 = vmatmul.mubr.msk.bf16.gmra.mrb[12].mxu0 %vm535_vm2, %v1010_v30  ;;  %v10005_v30 = vld [vmem:[%s9662_s30 + $0x78] sm:$0xff]  }
  0xc5   : > { %8334 = vmatprep.mubr.msk.bf16.mxu0 %vm535_vm2, %v1012_v31  ;;  %v1459_v31 = vsel %vm993_vm3, %v1456_v15, %v1458_v23  ;;  %v1460_v39 = vrot.slane %v10005_v30, 1  ;;  %v1794_v15 = vrot.slane %v1792_v18, 1 }
  0xcc   : > { %8335 = vmatmul.mubr.msk.bf16.gmra.mrb[16].mxu0 %vm535_vm2, %v1014_v32  ;;  %v1462_v32 = vrot.slane %v10009_v35, 1 }
  0xcd   : > { %8338 = vmatprep.mubr.msk.bf16.mxu0 %vm535_vm2, %v1016_v34  ;;  %v1461_v34 = vsel %vm993_vm3, %v1458_v23, %v1460_v39 }
  0xd4   : > { %8339 = vmatmul.mubr.msk.bf16.gmra.mrb[20].mxu0 %vm535_vm2, %v1018_v36  ;;  %v1463_v36 = vsel %vm993_vm3, %v1460_v39, %v1462_v32  ;;  %v1801_v39 = vshrl.u32 %v9957_v8, 16 }
  0xd5   : > { %8342 = vmatprep.mubr.msk.bf16.mxu0 %vm535_vm2, %v1020_v50  ;;  %v1464_v50 = vrot.slane %v10017_v47, 1 }
  0xd7   : > { %v1465_v14 = vsel %vm993_vm3, %v1462_v32, %v1464_v50  ;;  %v1467_v42 = vsel %vm993_vm3, %v1464_v50, %v1466_v53  ;;  %v1804_v32 = vshll.u32 %v9957_v8, 16 }
  0xdc   : > { %8343 = vmatmul.mubr.msk.bf16.gmra.mrb[24].mxu0 %vm535_vm2, %v1022_v38  ;;  %v1751_v38 = vshll.u32 %v9912_v44, 16  ;;  %v1765_v44 = vshrl.u32 %v9924_v52, 16 }
  0xdd   : > { %8346 = vmatprep.mubr.msk.bf16.mxu0 %vm535_vm2, %v1024_v40  ;;  %v1756_v40 = vshrl.u32 %v9915_v46, 16 }
  0xde   : > { %v1753_v41 = vrot.slane %v1751_v38, 2  ;;  %v1767_v1 = vrot.slane %v1765_v44, 1 }
  0xdf   : > { %v1758_v45 = vrot.slane %v1756_v40, 1 }
  0xe1   : > { %v1762_v57 = vor.u32 %v1761_v49, %v1758_v45  ;;  %v1831_v45 = vshll.u32 %v9973_v17, 16 }
  0xe4   : > { %8347 = vmatmul.mubr.msk.bf16.gmra.mrb[28].mxu0 %vm535_vm2, %v1026_v25  ;;  %v9570_v25 = vld [vmem:[%s9662_s30 + $0x98] ss:$0 sps:$4 sm:$0x11]  }
  0xe5   : > { %8350 = vmatprep.mubr.msk.bf16.mxu0 %vm535_vm2, %v1028_v26  ;;  %v1750_v26 = vrot.slane %v1748_v37, 1  ;;  %v1806_v37 = vrot.slane %v1804_v32, 2 }
  0xe7   : > { %v1754_v56 = vor.u32 %v1753_v41, %v1750_v26  ;;  %v1828_v41 = vshrl.u32 %v9973_v17, 16 }
  0xec   : > { %8351 = vmatmul.mubr.msk.bf16.gmra.mrb[32].mxu0 %vm535_vm2, %v1030_v51  ;;  %v1468_v51 = vrot.slane %v9570_v25, 1  ;;  %v1822_v25 = vshll.u32 %v9969_v12, 16 }
  0xed   : > { %8356 = vmatprep.mubr.msk.bf16.mxu0 %vm535_vm2, %v1435_v54  ;;  %v1768_v54 = vshll.u32 %v9924_v52, 16 }
  0xee   : > { %v1824_v44 = vrot.slane %v1822_v25, 2 }
  0xef   : > { %v1770_v2 = vrot.slane %v1768_v54, 2 }
  0xf1   : > { %v1771_v33 = vor.u32 %v1770_v2, %v1767_v1  ;;  %v1846_v2 = vshrl.u32 %v9985_v7, 16 }
  0xf4   : > { %8357 = vmatmul.mubr.msk.bf16.vlgmr.msra.gmra.mrb[0].mxu0 %vm535_vm2, %v1437_v58  ;;  %v1774_v58 = vshrl.u32 %v9928_v55, 16 }
  0xf5   : > { %8393 = vmatpush3.bf16.msra.mxu0 %v1972_v60  ;;  %8360 = vmatprep.mubr.msk.bf16.mxu0 %vm535_vm2, %v1439_v61  ;;  %v1777_v60 = vshll.u32 %v9928_v55, 16  ;;  %v1469_v61 = vsel %vm993_vm3, %v1466_v53, %v1468_v51  ;;  %v1803_v53 = vrot.slane %v1801_v39, 1 }
  0xf6   : > { %9505 = vmatprep.subr.msk.bf16.mxu0 %vm590_vm0, %v9947_v0 }
  0xf7   : > { %v1779_v5 = vrot.slane %v1777_v60, 2  ;;  %v1837_v60 = vshrl.u32 %v9981_v20, 16 }
  0xfc   : > { %8361 = vmatmul.mubr.msk.bf16.gmra.mrb[4].mxu0 %vm535_vm2, %v1441_v3  ;;  %v1763_v3 = vsel %vm1746_vm4, %v1754_v56, %v1762_v57  ;;  %v1830_v56 = vrot.slane %v1828_v41, 1  ;;  %v1891_v41 = vshrl.u32 %v10017_v47, 16 }
  0xfd   : > { %8364 = vmatprep.mubr.msk.bf16.mxu0 %vm535_vm2, %v1443_v9  ;;  %v1776_v9 = vrot.slane %v1774_v58, 1 }
  0xff   : > { %v1780_v4 = vor.u32 %v1779_v5, %v1776_v9  ;;  %v1839_v5 = vrot.slane %v1837_v60, 1 }
 0x104   : > { %8365 = vmatmul.mubr.msk.bf16.gmra.mrb[8].mxu0 %vm535_vm2, %v1445_v11  ;;  %v1783_v11 = vshrl.u32 %v9936_v59, 16 }
 0x105   : > { %8368 = vmatprep.mubr.msk.bf16.mxu0 %vm535_vm2, %v1447_v16  ;;  %v1786_v16 = vshll.u32 %v9936_v59, 16 }
 0x106   : > { %v1785_v13 = vrot.slane %v1783_v11, 1 }
 0x107   : > { %v1788_v21 = vrot.slane %v1786_v16, 2  ;;  %v1848_v16 = vrot.slane %v1846_v2, 1 }
 0x10c   : > { %8369 = vmatmul.mubr.msk.bf16.gmra.mrb[12].mxu0 %vm535_vm2, %v1449_v19  ;;  %v1795_v19 = vshll.u32 %v9942_v63, 16 }
 0x10d   : > { %8372 = vmatprep.mubr.msk.bf16.mxu0 %vm535_vm2, %v1451_v6  ;;  %v1772_v6 = vsel %vm1746_vm4, %v1762_v57, %v1771_v33  ;;  %v1833_v57 = vrot.slane %v1831_v45, 2  ;;  %v1894_v45 = vshll.u32 %v10017_v47, 16 }
 0x10e   : > { %v1797_v23 = vrot.slane %v1795_v19, 2  ;;  %v1855_v19 = vshrl.u32 %v9993_v24, 16 }
 0x10f   : > { %v1834_v1 = vor.u32 %v1833_v57, %v1830_v56  ;;  %v1893_v56 = vrot.slane %v1891_v41, 1  ;;  %v1896_v57 = vrot.slane %v1894_v45, 2  ;;  %v10180_v41 = vld [vmem:[%s9662_s30 + $0x14] sm:$0xf] }
 0x111   : > { %v1897_v2 = vor.u32 %v1896_v57, %v1893_v56  ;;  %v10201_v57 = vld [vmem:[%s9662_s30 + $0x28] sm:$0xff]  }
 0x114   : > { %8373 = vmatmul.mubr.msk.bf16.gmra.mrb[16].mxu0 %vm535_vm2, %v1453_v22  ;;  %v2286_v22 = vsel %vm590_vm0, %v9947_v0, 0  ;;  %v1798_v0 = vor.u32 %v1797_v23, %v1794_v15  ;;  %v1857_v15 = vrot.slane %v1855_v19, 1 }
 0x115   : > { %8376 = vmatprep.mubr.msk.bf16.mxu0 %vm535_vm2, %v1455_v27  ;;  %v1781_v27 = vsel %vm1746_vm4, %v1771_v33, %v1780_v4 }
 0x11c   : > { %8377 = vmatmul.mubr.msk.bf16.gmra.mrb[20].mxu0 %vm535_vm2, %v1457_v29  ;;  %v10055_v29 = vld [vmem:[%s11140_s2 + $0xc] sm:$0x3] }
 0x11d   : > { %8380 = vmatprep.mubr.msk.bf16.mxu0 %vm535_vm2, %v1459_v31  ;;  %v1789_v31 = vor.u32 %v1788_v21, %v1785_v13  ;;  %v1864_v21 = vshrl.u32 %v9997_v28, 16 }
 0x11f   : > { %v1790_v50 = vsel %vm1746_vm4, %v1780_v4, %v1789_v31  ;;  %v1799_v38 = vsel %vm1746_vm4, %v1789_v31, %v1798_v0  ;;  %v1866_v39 = vrot.slane %v1864_v21, 1  ;;  %v2195_v21 = vrot.slane %v9915_v46, 2 }
 0x124   : > { %8381 = vmatmul.mubr.msk.bf16.gmra.mrb[24].mxu0 %vm535_vm2, %v1461_v34  ;;  %v1810_v34 = vshrl.u32 %v9961_v10, 16 }
 0x125   : > { %8384 = vmatprep.mubr.msk.bf16.mxu0 %vm535_vm2, %v1463_v36  ;;  %v1813_v36 = vshll.u32 %v9961_v10, 16 }
 0x126   : > { %v1812_v40 = vrot.slane %v1810_v34, 1  ;;  %v1873_v34 = vshrl.u32 %v10005_v30, 16 }
 0x127   : > { %v1815_v62 = vrot.slane %v1813_v36, 2  ;;  %v1876_v36 = vshll.u32 %v10005_v30, 16 }
 0x129   : > { %v1816_v26 = vor.u32 %v1815_v62, %v1812_v40  ;;  %v1875_v40 = vrot.slane %v1873_v34, 1  ;;  %v1878_v62 = vrot.slane %v1876_v36, 2  ;;  %v2207_v34 = vrot.slane %v9961_v10, 2 }
 0x12a   : > { %v2215_v10 = vrot.slane %v9985_v7, 2 }
 0x12c   : > { %8385 = vmatmul.mubr.msk.bf16.gmra.mrb[28].mxu0 %vm535_vm2, %v1465_v14  ;;  %v1807_v14 = vor.u32 %v1806_v37, %v1803_v53  ;;  %v1882_v53 = vshrl.u32 %v10009_v35, 16  ;;  %v1885_v37 = vshll.u32 %v10009_v35, 16 }
 0x12d   : > { %8388 = vmatprep.mubr.msk.bf16.mxu0 %vm535_vm2, %v1467_v42  ;;  %v1819_v42 = vshrl.u32 %v9969_v12, 16 }
 0x12e   : > { %v1808_v49 = vsel %vm1746_vm4, %v1798_v0, %v1807_v14  ;;  %v1817_v54 = vsel %vm1746_vm4, %v1807_v14, %v1816_v26  ;;  %v1887_v25 = vrot.slane %v1885_v37, 2 }
 0x12f   : > { %v1821_v51 = vrot.slane %v1819_v42, 1  ;;  %v1884_v42 = vrot.slane %v1882_v53, 1 }
 0x131   : > { %v1825_v58 = vor.u32 %v1824_v44, %v1821_v51  ;;  %v1900_v51 = vshrl.u32 %v10020_v48, 16  ;;  %v1903_v44 = vshll.u32 %v10020_v48, 16 }
 0x133   : > { %v1826_v9 = vsel %vm1746_vm4, %v1816_v26, %v1825_v58  ;;  %v1835_v11 = vsel %vm1746_vm4, %v1825_v58, %v1834_v1  ;;  %v1879_v26 = vor.u32 %v1878_v62, %v1875_v40  ;;  %v10107_v58 = vld [vmem:[%s9662_s30 + $0x98] ss:$0 sps:$4 sm:$0x33]  }
 0x134   : > { %8389 = vmatmul.mubr.msk.bf16.gmra.mrb[32].mxu0 %vm535_vm2, %v1469_v61  ;;  %v1840_v61 = vshll.u32 %v9981_v20, 16 }
 0x135   : > { %8394 = vmatprep.mubr.msk.bf16.mxu0 %vm535_vm2, %v1763_v3  ;;  %v1849_v3 = vshll.u32 %v9985_v7, 16  ;;  %v2221_v7 = vrot.slane %v10005_v30, 2 }
 0x136   : > { %v1842_v33 = vrot.slane %v1840_v61, 2  ;;  %v1902_v61 = vrot.slane %v1900_v51, 1 }
 0x137   : > { %v1851_v4 = vrot.slane %v1849_v3, 2  ;;  %v1909_v3 = vshrl.u32 %v10107_v58, 16 }
 0x138   : > { %v1843_v18 = vor.u32 %v1842_v33, %v1839_v5  ;;  %v2187_v33 = vld [vmem:[%s9662_s30 + $0x8] sm:$0xc] }
 0x139   : > { %v1852_v13 = vor.u32 %v1851_v4, %v1848_v16  ;;  %v1911_v16 = vrot.slane %v1909_v3, 1  ;;  %v7542_v19 = vcombine.low %v2187_v33, %v9907_v43  ;;  %v2199_v43 = vrot.slane %v9928_v55, 2 }
 0x13a   : > { %v2203_v55 = vrot.slane %v9942_v63, 2  ;;  %v2209_v63 = vrot.slane %v9969_v12, 2  ;;  %v2217_v12 = vrot.slane %v9993_v24, 2 }
 0x13b   : > { %v1853_v31 = vsel %vm1746_vm4, %v1843_v18, %v1852_v13 }
 0x13c   : > { %8395 = vmatmul.mubr.msk.bf16.vlgmr.msra.gmra.mrb[0].mxu0 %vm535_vm2, %v1772_v6  ;;  %v1858_v6 = vshll.u32 %v9993_v24, 16  ;;  %v2210_v53 = vsel %vm2193_vm5, %v2207_v34, %v2209_v63  ;;  %v2218_v62 = vsel %vm2193_vm5, %v2215_v10, %v2217_v12  ;;  %v2225_v24 = vrot.slane %v10017_v47, 2 }
 0x13d   : > { %8431 = vmatpush3.bf16.msra.mxu0 %v2286_v22  ;;  %8398 = vmatprep.mubr.msk.bf16.mxu0 %vm535_vm2, %v1781_v27  ;;  %v1867_v22 = vshll.u32 %v9997_v28, 16  ;;  %v1844_v27 = vsel %vm1746_vm4, %v1834_v1, %v1843_v18  ;;  %v1905_v1 = vrot.slane %v1903_v44, 2  ;;  %v2229_v47 = vrot.slane %v10107_v58, 2 }
 0x13e   : > { %9506 = vmatprep.subr.msk.bf16.mxu0 %vm590_vm0, %v10055_v29  ;;  %v1860_v23 = vrot.slane %v1858_v6, 2 }
 0x13f   : > { %v1869_v32 = vrot.slane %v1867_v22, 2  ;;  %v1906_v5 = vor.u32 %v1905_v1, %v1902_v61  ;;  %v10209_v1 = vld [vmem:[%s9662_s30 + $0x30] sm:$0xff]  }
 0x140   : > { %v1861_v0 = vor.u32 %v1860_v23, %v1857_v15  ;;  %v2197_v15 = vrot.slane %v9924_v52, 2  ;;  %v2201_v52 = vrot.slane %v9936_v59, 2  ;;  %v2640_v33 = vrot.slane %v10209_v1, 2 }
 0x141   : > { %v1907_v18 = vsel %vm1746_vm4, %v1897_v2, %v1906_v5 }
 0x142   : > { %v2198_v23 = vsel %vm2193_vm5, %v2195_v21, %v2197_v15  ;;  %v2200_v46 = vsel %vm2193_vm5, %v2197_v15, %v2199_v43  ;;  %v10246_v15 = vld [vmem:[%s9662_s30 + $0x58] sm:$0xff]  }
 0x144   : > { %8399 = vmatmul.mubr.msk.bf16.gmra.mrb[4].mxu0 %vm535_vm2, %v1790_v50  ;;  %v1870_v50 = vor.u32 %v1869_v32, %v1866_v39  ;;  %v10134_v39 = vld [vmem:[%s11140_s2 + $0xe] sm:$0x3]  ;;  %v2204_v32 = vsel %vm2193_vm5, %v2201_v52, %v2203_v55 }
 0x145   : > { %8402 = vmatprep.mubr.msk.bf16.mxu0 %vm535_vm2, %v1799_v38  ;;  %v1862_v38 = vsel %vm1746_vm4, %v1852_v13, %v1861_v0  ;;  %v2194_v13 = vrot.slane %v7542_v19, 2  ;;  %v10234_v19 = vld [vmem:[%s9662_s30 + $0x48] sm:$0xff]  }
 0x146   : > { %v1871_v14 = vsel %vm1746_vm4, %v1861_v0, %v1870_v50  ;;  %v2205_v0 = vrot.slane %v9957_v8, 2  ;;  %v2213_v8 = vrot.slane %v9981_v20, 2 }
 0x148   : > { %v2206_v36 = vsel %vm2193_vm5, %v2203_v55, %v2205_v0  ;;  %v2208_v59 = vsel %vm2193_vm5, %v2205_v0, %v2207_v34  ;;  %v2216_v40 = vsel %vm2193_vm5, %v2213_v8, %v2215_v10  ;;  %v10266_v0 = vld [vmem:[%s9662_s30 + $0x70] sm:$0xff]  }
 0x14c   : > { %8403 = vmatmul.mubr.msk.bf16.gmra.mrb[8].mxu0 %vm535_vm2, %v1808_v49  ;;  %v1888_v49 = vor.u32 %v1887_v25, %v1884_v42 }
 0x14d   : > { %8406 = vmatprep.mubr.msk.bf16.mxu0 %vm535_vm2, %v1817_v54  ;;  %v1880_v54 = vsel %vm1746_vm4, %v1870_v50, %v1879_v26  ;;  %v2211_v50 = vrot.slane %v9973_v17, 2  ;;  %v2219_v17 = vrot.slane %v9997_v28, 2  ;;  %v2227_v28 = vrot.slane %v10020_v48, 2 }
 0x14e   : > { %v1889_v60 = vsel %vm1746_vm4, %v1879_v26, %v1888_v49  ;;  %v2501_v26 = vld [vmem:[%s9662_s30 + $0x10] sm:$0xc] }
 0x14f   : > { %v2212_v37 = vsel %vm2193_vm5, %v2209_v63, %v2211_v50  ;;  %v2220_v20 = vsel %vm2193_vm5, %v2217_v12, %v2219_v17  ;;  %v2222_v42 = vsel %vm2193_vm5, %v2219_v17, %v2221_v7  ;;  %v10185_v45 = vcombine.low %v2501_v26, %v10180_v41  ;;  %v3782_v63 = vld [vmem:[%s11139_s1 + $0x10] sm:$0xff]  ;;  %v10291_v12 = vld [vmem:[%s9662_s30 + $0x88] sm:$0xff]   ;;  %v3783_v17 = vld [vmem:[%s11139_s1 + $0x18] sm:$0xff] }
 0x150   : > { %v2230_v44 = vsel %vm2193_vm5, %v2227_v28, %v2229_v47 }
 0x151   : > { %v2633_v48 = vrot.slane %v10185_v45, 2 }
 0x154   : > { %8407 = vmatmul.mubr.msk.bf16.gmra.mrb[12].mxu0 %vm535_vm2, %v1826_v9  ;;  %v1912_v9 = vshll.u32 %v10107_v58, 16  ;;  %v2638_v58 = vrot.slane %v10201_v57, 2 }
 0x155   : > { %8410 = vmatprep.mubr.msk.bf16.mxu0 %vm535_vm2, %v1835_v11  ;;  %v1898_v11 = vsel %vm1746_vm4, %v1888_v49, %v1897_v2  ;;  %v10188_v49 = vld [vmem:[%s9662_s30 + $0x18] sm:$0xff]   ;;  %v3172_v2 = vsel %vm590_vm0, %v10134_v39, 0 }
 0x156   : > { %v1914_v4 = vrot.slane %v1912_v9, 2  ;;  %v2634_v51 = vrot.slane %v10188_v49, 2  ;;  %v10215_v9 = vld [vmem:[%s9662_s30 + $0x38] sm:$0xff]  }
 0x158   : > { %v1915_v6 = vor.u32 %v1914_v4, %v1911_v16  ;;  %v2635_v56 = vsel %vm2193_vm5, %v2633_v48, %v2634_v51  ;;  %v2641_v16 = vsel %vm2193_vm5, %v2638_v58, %v2640_v33  ;;  %v10230_v4 = vld [vmem:[%s9662_s30 + $0x40] sm:$0xff]  }
 0x15a   : > { %v1916_v22 = vsel %vm1746_vm4, %v1906_v5, %v1915_v6  ;;  %v10220_v5 = vld [vmem:[%s11140_s2 + $0x10] sm:$0x3]  ;;  %v2644_v6 = vrot.slane %v10230_v4, 2 }
 0x15c   : > { %8411 = vmatmul.mubr.msk.bf16.gmra.mrb[16].mxu0 %vm535_vm2, %v1844_v27  ;;  %v2196_v27 = vsel %vm2193_vm5, %v2194_v13, %v2195_v21  ;;  %v2646_v13 = vrot.slane %v10234_v19, 2 }
 0x15d   : > { %8414 = vmatprep.mubr.msk.bf16.mxu0 %vm535_vm2, %v1853_v31  ;;  %v2725_v31 = vsel %vm590_vm0, %v10055_v29, 0  ;;  %v2202_v29 = vsel %vm2193_vm5, %v2199_v43, %v2201_v52  ;;  %v10258_v52 = vld [vmem:[%s9662_s30 + $0x68] sm:$0xff]  }
 0x164   : > { %8415 = vmatmul.mubr.msk.bf16.gmra.mrb[20].mxu0 %vm535_vm2, %v1862_v38  ;;  %v2214_v38 = vsel %vm2193_vm5, %v2211_v50, %v2213_v8  ;;  %v2656_v50 = vrot.slane %v10266_v0, 2  ;;  %v3781_v8 = vld [vmem:[%s11139_s1 + $0x8] sm:$0xff] }
 0x165   : > { %8418 = vmatprep.mubr.msk.bf16.mxu0 %vm535_vm2, %v1871_v14  ;;  %v2223_v14 = vrot.slane %v10009_v35, 2  ;;  %v2228_v35 = vsel %vm2193_vm5, %v2225_v24, %v2227_v28  ;;  %v10314_v28 = vld [vmem:[%s9662_s30 + $0x98] sm:$0xff]  }
 0x166   : > { %v2666_v48 = vrot.slane %v10314_v28, 2 }
 0x167   : > { %v2224_v25 = vsel %vm2193_vm5, %v2221_v7, %v2223_v14  ;;  %v2226_v30 = vsel %vm2193_vm5, %v2223_v14, %v2225_v24  ;;  %v2662_v7 = vrot.slane %v10291_v12, 2  ;;  %v3785_v14 = vld [vmem:[%s11139_s1 + $0x28] sm:$0xff]  ;;  %v10311_v24 = vld [vmem:[%s9662_s30 + $0x90] sm:$0xff]  }
 0x168   : > { %v2664_v47 = vrot.slane %v10311_v24, 2 }
 0x16c   : > { %8419 = vmatmul.mubr.msk.bf16.gmra.mrb[24].mxu0 %vm535_vm2, %v1880_v54  ;;  %v10197_v54 = vld [vmem:[%s9662_s30 + $0x20] sm:$0xff]  }
 0x16d   : > { %8422 = vmatprep.mubr.msk.bf16.mxu0 %vm535_vm2, %v1889_v60  ;;  %v2636_v60 = vrot.slane %v10197_v54, 2 }
 0x16f   : > { %v2637_v61 = vsel %vm2193_vm5, %v2634_v51, %v2636_v60  ;;  %v2639_v3 = vsel %vm2193_vm5, %v2636_v60, %v2638_v58  ;;  %v2948_v51 = vshrl.u32 %v10185_v45, 16  ;;  %v2959_v60 = vshll.u32 %v10188_v49, 16  ;;  %v3789_v58 = vld [vmem:[%s11139_s1 + $0x48] sm:$0xff] }
 0x174   : > { %8423 = vmatmul.mubr.msk.bf16.gmra.mrb[28].mxu0 %vm535_vm2, %v1898_v11  ;;  %v2642_v11 = vrot.slane %v10215_v9, 2 }
 0x175   : > { %8426 = vmatprep.mubr.msk.bf16.mxu0 %vm535_vm2, %v1907_v18 }
 0x176   : > { %v2643_v18 = vsel %vm2193_vm5, %v2640_v33, %v2642_v11  ;;  %v2645_v21 = vsel %vm2193_vm5, %v2642_v11, %v2644_v6  ;;  %v9591_v33 = vld [vmem:[%s9662_s30 + $0xa0] ss:$0 sps:$4 sm:$0x33]  }
 0x17c   : > { %8427 = vmatmul.mubr.msk.bf16.gmra.mrb[32].mxu0 %vm535_vm2, %v1916_v22  ;;  %v10242_v22 = vld [vmem:[%s9662_s30 + $0x50] sm:$0xff]  }
 0x17d   : > { %8432 = vmatprep.mubr.msk.bf16.mxu0 %vm535_vm2, %v2196_v27  ;;  %v2647_v27 = vsel %vm2193_vm5, %v2644_v6, %v2646_v13  ;;  %v2648_v43 = vrot.slane %v10242_v22, 2  ;;  %v3791_v6 = vld [vmem:[%s11139_s1 + $0x58] sm:$0xff] }
 0x184   : > { %8433 = vmatmul.mubr.msk.bf16.vlgmr.msra.gmra.mrb[0].mxu0 %vm535_vm2, %v2198_v23  ;;  %v2650_v23 = vrot.slane %v10246_v15, 2 }
 0x185   : > { %8469 = vmatpush3.bf16.msra.mxu0 %v2725_v31  ;;  %8436 = vmatprep.mubr.msk.bf16.mxu0 %vm535_vm2, %v2200_v46  ;;  %v2649_v31 = vsel %vm2193_vm5, %v2646_v13, %v2648_v43  ;;  %v10254_v46 = vld [vmem:[%s9662_s30 + $0x60] sm:$0xff]  }
 0x186   : > { %9507 = vmatprep.subr.msk.bf16.mxu0 %vm590_vm0, %v10134_v39  ;;  %v2651_v39 = vsel %vm2193_vm5, %v2648_v43, %v2650_v23  ;;  %v2652_v55 = vrot.slane %v10254_v46, 2  ;;  %v3792_v13 = vld [vmem:[%s11139_s1 + $0x60] sm:$0xff]  ;;  %v2968_v43 = vshll.u32 %v10197_v54, 16 }
 0x18c   : > { %8437 = vmatmul.mubr.msk.bf16.gmra.mrb[4].mxu0 %vm535_vm2, %v2202_v29  ;;  %v2654_v29 = vrot.slane %v10258_v52, 2 }
 0x18d   : > { %8440 = vmatprep.mubr.msk.bf16.mxu0 %vm535_vm2, %v2204_v32  ;;  %v2653_v32 = vsel %vm2193_vm5, %v2650_v23, %v2652_v55 }
 0x18e   : > { %v2655_v34 = vsel %vm2193_vm5, %v2652_v55, %v2654_v29  ;;  %v2657_v10 = vsel %vm2193_vm5, %v2654_v29, %v2656_v50  ;;  %v2977_v55 = vshll.u32 %v10201_v57, 16  ;;  %v3793_v29 = vld [vmem:[%s11139_s1 + $0x68] sm:$0xff] }
 0x194   : > { %8441 = vmatmul.mubr.msk.bf16.gmra.mrb[8].mxu0 %vm535_vm2, %v2206_v36  ;;  %v10270_v36 = vld [vmem:[%s9662_s30 + $0x78] sm:$0xff]  }
 0x195   : > { %8444 = vmatprep.mubr.msk.bf16.mxu0 %vm535_vm2, %v2208_v59  ;;  %v3780_v59 = vld [vmem:[%s11139_s1] sm:$0xff] }
 0x19c   : > { %8445 = vmatmul.mubr.msk.bf16.gmra.mrb[12].mxu0 %vm535_vm2, %v2210_v53  ;;  %v9602_v53 = vmov 0  }
 0x19d   : > { %8448 = vmatprep.mubr.msk.bf16.mxu0 %vm535_vm2, %v2212_v37  ;;  %9530 = vset.pattern.permute.xlu0 %v9602_v53  ;;  %v2658_v37 = vrot.slane %v10270_v36, 2 }
 0x19e   : > { %3818 = vperm.xlu0 %9530, %v3780_v59   ;;  %9531 = vset.pattern.permute.xlu1 %v9602_v53 }
 0x19f   : > { %3828 = vperm.xlu1 %9531, %v3782_v63   ;;  %v2970_v63 = vrot.slane %v2968_v43, 3  ;;  %v3803_v43 = vld [vmem:[%s11139_s1 + $0xb8] sm:$0xff] }
 0x1a2   : > { %3823 = vperm.xlu0 %9530, %v3781_v8   ;;  %v3795_v8 = vld [vmem:[%s11139_s1 + $0x78] sm:$0xff] }
 0x1a3   : > { %3833 = vperm.xlu1 %9531, %v3783_v17   ;;  %v2983_v17 = vshrl.u32 %v10209_v1, 16 }
 0x1a4   : > { %8449 = vmatmul.mubr.msk.bf16.gmra.mrb[16].mxu0 %vm535_vm2, %v2214_v38  ;;  %v10287_v38 = vld [vmem:[%s9662_s30 + $0x80] sm:$0xff]  }
 0x1a5   : > { %8452 = vmatprep.mubr.msk.bf16.mxu0 %vm535_vm2, %v2216_v40  ;;  %v2659_v40 = vsel %vm2193_vm5, %v2656_v50, %v2658_v37 }
 0x1a7   : > { %3843 = vperm.xlu1 %9531, %v3785_v14   ;;  %v2995_v14 = vshll.u32 %v10215_v9, 16 }
 0x1ac   : > { %8453 = vmatmul.mubr.msk.bf16.gmra.mrb[20].mxu0 %vm535_vm2, %v2218_v62  ;;  %v3784_v62 = vld [vmem:[%s11139_s1 + $0x20] sm:$0xff] }
 0x1ad   : > { %8456 = vmatprep.mubr.msk.bf16.mxu0 %vm535_vm2, %v2220_v20  ;;  %v2660_v20 = vrot.slane %v10287_v38, 2  ;;  %3838 = vperm.xlu0 %9530, %v3784_v62   ;;  %v2986_v62 = vshll.u32 %v10209_v1, 16 }
 0x1af   : > { %v2663_v26 = vsel %vm2193_vm5, %v2660_v20, %v2662_v7 }
 0x1b4   : > { %8457 = vmatmul.mubr.msk.bf16.gmra.mrb[24].mxu0 %vm535_vm2, %v2222_v42  ;;  %v3786_v42 = vld [vmem:[%s11139_s1 + $0x30] sm:$0xff] }
 0x1b5   : > { %8460 = vmatprep.mubr.msk.bf16.mxu0 %vm535_vm2, %v2224_v25  ;;  %v2661_v25 = vsel %vm2193_vm5, %v2658_v37, %v2660_v20  ;;  %3848 = vperm.xlu0 %9530, %v3786_v42   ;;  %v2979_v37 = vrot.slane %v2977_v55, 3  ;;  %v3797_v42 = vld [vmem:[%s11139_s1 + $0x88] sm:$0xff]  ;;  %v3022_v55 = vshll.u32 %v10242_v22, 16 }
 0x1bc   : > { %8461 = vmatmul.mubr.msk.bf16.gmra.mrb[28].mxu0 %vm535_vm2, %v2226_v30  ;;  %v3787_v30 = vld [vmem:[%s11139_s1 + $0x38] sm:$0xff] }
 0x1bd   : > { %8464 = vmatprep.mubr.msk.bf16.mxu0 %vm535_vm2, %v2228_v35  ;;  %v3788_v35 = vld [vmem:[%s11139_s1 + $0x40] sm:$0xff]  ;;  %3853 = vperm.xlu1 %9531, %v3787_v30   ;;  %v2985_v30 = vrot.slane %v2983_v17, 2  ;;  %v3807_v17 = vld [vmem:[%s11139_s1 + $0xd8] sm:$0xff] }
 0x1be   : > { %3858 = vperm.xlu0 %9530, %v3788_v35   ;;  %v2988_v35 = vrot.slane %v2986_v62, 3  ;;  %v3808_v62 = vld [vmem:[%s11139_s1 + $0xe0] sm:$0xff] }
 0x1c1   : > { %3863 = vperm.xlu1 %9531, %v3789_v58   ;;  %v2989_v58 = vor.u32 %v2988_v35, %v2985_v30  ;;  %v3809_v30 = vld [vmem:[%s11139_s1 + $0xe8] sm:$0xff]  ;;  %v3810_v35 = vld [vmem:[%s11139_s1 + $0xf0] sm:$0xff] }
 0x1c4   : > { %8465 = vmatmul.mubr.msk.bf16.gmra.mrb[32].mxu0 %vm535_vm2, %v2230_v44  ;;  %v2951_v44 = vshll.u32 %v10185_v45, 16  ;;  %v2950_v45 = vrot.slane %v2948_v51, 2 }
 0x1c5   : > { %8470 = vmatprep.mubr.msk.bf16.mxu0 %vm535_vm2, %v2635_v56  ;;  %v2956_v56 = vshrl.u32 %v10188_v49, 16  ;;  %3873 = vperm.xlu1 %9531, %v3791_v6  }
 0x1c6   : > { %v2953_v11 = vrot.slane %v2951_v44, 3  ;;  %v2997_v44 = vrot.slane %v2995_v14, 3  ;;  %v3040_v14 = vshll.u32 %v10254_v46, 16 }
 0x1c8   : > { %v2954_v23 = vor.u32 %v2953_v11, %v2950_v45  ;;  %v3801_v45 = vld [vmem:[%s11139_s1 + $0xa8] sm:$0xff]  ;;  %v3802_v11 = vld [vmem:[%s11139_s1 + $0xb0] sm:$0xff] }
 0x1c9   : > { %3883 = vperm.xlu1 %9531, %v3793_v29  }
 0x1cc   : > { %8471 = vmatmul.mubr.msk.bf16.vlgmr.msra.gmra.mrb[0].mxu0 %vm535_vm2, %v2637_v61  ;;  %v3790_v61 = vld [vmem:[%s11139_s1 + $0x50] sm:$0xff] }
 0x1cd   : > { %8507 = vmatpush3.bf16.msra.mxu0 %v3172_v2  ;;  %8474 = vmatprep.mubr.msk.bf16.mxu0 %vm535_vm2, %v2639_v3  ;;  %v2665_v2 = vsel %vm2193_vm5, %v2662_v7, %v2664_v47  ;;  %v2667_v3 = vsel %vm2193_vm5, %v2664_v47, %v2666_v48  ;;  %v2992_v7 = vshrl.u32 %v10215_v9, 16  ;;  %v3486_v47 = vsel %vm590_vm0, %v10220_v5, 0 }
 0x1ce   : > { %9508 = vmatprep.subr.msk.bf16.mxu0 %vm590_vm0, %v10220_v5  ;;  %3868 = vperm.xlu0 %9530, %v3790_v61   ;;  %v3001_v5 = vshrl.u32 %v10230_v4, 16  ;;  %v3004_v61 = vshll.u32 %v10230_v4, 16 }
 0x1cf   : > { %3893 = vperm.xlu1 %9531, %v3795_v8   ;;  %v2994_v51 = vrot.slane %v2992_v7, 2  ;;  %v3037_v7 = vshrl.u32 %v10254_v46, 16 }
 0x1d0   : > { %v3006_v6 = vrot.slane %v3004_v61, 3 }
 0x1d2   : > { %3878 = vperm.xlu0 %9530, %v3792_v13  }
 0x1d3   : > { %3903 = vperm.xlu1 %9531, %v3797_v42  }
 0x1d4   : > { %8475 = vmatmul.mubr.msk.bf16.gmra.mrb[4].mxu0 %vm535_vm2, %v2641_v16  ;;  %v2958_v16 = vrot.slane %v2956_v56, 2  ;;  %v3799_v56 = vld [vmem:[%s11139_s1 + $0x98] sm:$0xff] }
 0x1d5   : > { %8478 = vmatprep.mubr.msk.bf16.mxu0 %vm535_vm2, %v2643_v18  ;;  %v2961_v18 = vrot.slane %v2959_v60, 3  ;;  %v3800_v60 = vld [vmem:[%s11139_s1 + $0xa0] sm:$0xff] }
 0x1d7   : > { %3913 = vperm.xlu1 %9531, %v3799_v56  }
 0x1db   : > { %3923 = vperm.xlu1 %9531, %v3801_v45   ;;  %v3064_v45 = vshrl.u32 %v10270_v36, 16 }
 0x1dc   : > { %8479 = vmatmul.mubr.msk.bf16.gmra.mrb[8].mxu0 %vm535_vm2, %v2645_v21  ;;  %v2668_v21 = vrot.slane %v9591_v33, 2  ;;  %v3013_v33 = vshll.u32 %v10234_v19, 16 }
 0x1dd   : > { %8482 = vmatprep.mubr.msk.bf16.mxu0 %vm535_vm2, %v2647_v27  ;;  %v2965_v27 = vshrl.u32 %v10197_v54, 16 }
 0x1df   : > { %v2967_v59 = vrot.slane %v2965_v27, 2  ;;  %v3015_v27 = vrot.slane %v3013_v33, 3  ;;  %3933 = vperm.xlu1 %9531, %v3803_v43   ;;  %v3066_v43 = vrot.slane %v3064_v45, 2 }
 0x1e4   : > { %8483 = vmatmul.mubr.msk.bf16.gmra.mrb[12].mxu0 %vm535_vm2, %v2649_v31  ;;  %v2962_v31 = vor.u32 %v2961_v18, %v2958_v16  ;;  %v3003_v18 = vrot.slane %v3001_v5, 2  ;;  %v3812_v5 = vld [vmem:[%s11139_s1 + $0x100] sm:$0xff] }
 0x1e5   : > { %8486 = vmatprep.mubr.msk.bf16.mxu0 %vm535_vm2, %v2651_v39  ;;  %v2974_v39 = vshrl.u32 %v10201_v57, 16 }
 0x1e6   : > { %v2963_v50 = vsel %vm2946_vm6, %v2954_v23, %v2962_v31  ;;  %v3804_v23 = vld [vmem:[%s11139_s1 + $0xc0] sm:$0xff] }
 0x1e7   : > { %v2976_v53 = vrot.slane %v2974_v39, 2  ;;  %v3019_v39 = vshrl.u32 %v10242_v22, 16 }
 0x1e9   : > { %v2980_v20 = vor.u32 %v2979_v37, %v2976_v53  ;;  %v3021_v53 = vrot.slane %v3019_v39, 2  ;;  %v3024_v37 = vrot.slane %v3022_v55, 3  ;;  %v3073_v55 = vshrl.u32 %v10287_v38, 16 }
 0x1eb   : > { %v2990_v16 = vsel %vm2946_vm6, %v2980_v20, %v2989_v58 }
 0x1ec   : > { %8487 = vmatmul.mubr.msk.bf16.gmra.mrb[16].mxu0 %vm535_vm2, %v2653_v32  ;;  %v3794_v32 = vld [vmem:[%s11139_s1 + $0x70] sm:$0xff] }
 0x1ed   : > { %8490 = vmatprep.mubr.msk.bf16.mxu0 %vm535_vm2, %v2655_v34  ;;  %v2669_v34 = vsel %vm2193_vm5, %v2666_v48, %v2668_v21  ;;  %3888 = vperm.xlu0 %9530, %v3794_v32   ;;  %v3028_v32 = vshrl.u32 %v10246_v15, 16 }
 0x1f4   : > { %8491 = vmatmul.mubr.msk.bf16.gmra.mrb[20].mxu0 %vm535_vm2, %v2657_v10  ;;  %v3796_v10 = vld [vmem:[%s11139_s1 + $0x80] sm:$0xff] }
 0x1f5   : > { %8494 = vmatprep.mubr.msk.bf16.mxu0 %vm535_vm2, %v2659_v40  ;;  %v2971_v40 = vor.u32 %v2970_v63, %v2967_v59  ;;  %3898 = vperm.xlu0 %9530, %v3796_v10   ;;  %v3805_v59 = vld [vmem:[%s11139_s1 + $0xc8] sm:$0xff]  ;;  %v3806_v63 = vld [vmem:[%s11139_s1 + $0xd0] sm:$0xff]  ;;  %v3030_v10 = vrot.slane %v3028_v32, 2 }
 0x1f6   : > { %3943 = vperm.xlu1 %9531, %v3805_v59   ;;  %v3085_v59 = vshll.u32 %v10291_v12, 16 }
 0x1f7   : > { %v2981_v48 = vsel %vm2946_vm6, %v2971_v40, %v2980_v20  ;;  %v3025_v20 = vor.u32 %v3024_v37, %v3021_v53 }
 0x1fa   : > { %3953 = vperm.xlu1 %9531, %v3807_v17   ;;  %v3091_v17 = vshrl.u32 %v10311_v24, 16 }
 0x1fc   : > { %8495 = vmatmul.mubr.msk.bf16.gmra.mrb[24].mxu0 %vm535_vm2, %v2661_v25  ;;  %v3798_v25 = vld [vmem:[%s11139_s1 + $0x90] sm:$0xff] }
 0x1fd   : > { %8498 = vmatprep.mubr.msk.bf16.mxu0 %vm535_vm2, %v2663_v26  ;;  %v2972_v26 = vsel %vm2946_vm6, %v2962_v31, %v2971_v40  ;;  %3908 = vperm.xlu0 %9530, %v3798_v25   ;;  %v3007_v31 = vor.u32 %v3006_v6, %v3003_v18  ;;  %v3046_v25 = vshrl.u32 %v10258_v52, 16  ;;  %v3814_v18 = vld [vmem:[%s11139_s1 + $0x110] sm:$0xff] }
 0x1fe   : > { %3963 = vperm.xlu1 %9531, %v3809_v30   ;;  %v10481_v30 = vld [vmem:[%s9662_s30 + $0xa0] ss:$0 sps:$4 sm:$0x77]  }
 0x1ff   : > { %v3048_v56 = vrot.slane %v3046_v25, 2  ;;  %v3093_v25 = vrot.slane %v3091_v17, 2 }
 0x201   : > { %3918 = vperm.xlu0 %9530, %v3800_v60  }
 0x204   : > { %8499 = vmatmul.mubr.msk.bf16.gmra.mrb[28].mxu0 %vm535_vm2, %v2665_v2  ;;  %v2998_v2 = vor.u32 %v2997_v44, %v2994_v51  ;;  %v3042_v51 = vrot.slane %v3040_v14, 3  ;;  %v3103_v14 = vshll.u32 %v10314_v28, 16 }
 0x205   : > { %8502 = vmatprep.mubr.msk.bf16.mxu0 %vm535_vm2, %v2667_v3  ;;  %v3010_v3 = vshrl.u32 %v10234_v19, 16  ;;  %3928 = vperm.xlu0 %9530, %v3802_v11   ;;  %v3067_v11 = vshll.u32 %v10270_v36, 16 }
 0x206   : > { %v2999_v13 = vsel %vm2946_vm6, %v2989_v58, %v2998_v2  ;;  %v3811_v58 = vld [vmem:[%s11139_s1 + $0xf8] sm:$0xff] }
 0x207   : > { %v3012_v21 = vrot.slane %v3010_v3, 2  ;;  %v3058_v3 = vshll.u32 %v10266_v0, 16  ;;  %3973 = vperm.xlu1 %9531, %v3811_v58   ;;  %v3387_v58 = vld [vmem:[%s9662_s30 + $0x10] sm:$0x8] }
 0x209   : > { %v3016_v29 = vor.u32 %v3015_v27, %v3012_v21  ;;  %3938 = vperm.xlu0 %9530, %v3804_v23   ;;  %v3060_v21 = vrot.slane %v3058_v3, 3  ;;  %v3069_v23 = vrot.slane %v3067_v11, 3 }
 0x20b   : > { %v3017_v8 = vsel %vm2946_vm6, %v3007_v31, %v3016_v29  ;;  %v3070_v32 = vor.u32 %v3069_v23, %v3066_v43  ;;  %v3403_v43 = vrot.slane %v10215_v9, 3  ;;  %v3411_v9 = vrot.slane %v10246_v15, 3 }
 0x20c   : > { %8503 = vmatmul.mubr.msk.bf16.gmra.mrb[32].mxu0 %vm535_vm2, %v2669_v34  ;;  %v3031_v34 = vshll.u32 %v10246_v15, 16  ;;  %v3419_v15 = vrot.slane %v10270_v36, 3  ;;  %v3427_v36 = vrot.slane %v10314_v28, 3 }
 0x20d   : > { %8508 = vmatprep.mubr.msk.bf16.mxu0 %vm535_vm2, %v2963_v50  ;;  %v3008_v50 = vsel %vm2946_vm6, %v2998_v2, %v3007_v31  ;;  %3948 = vperm.xlu0 %9530, %v3806_v63   ;;  %v3055_v2 = vshrl.u32 %v10266_v0, 16  ;;  %v3815_v31 = vld [vmem:[%s11139_s1 + $0x118] sm:$0xff] }
 0x20e   : > { %v3033_v40 = vrot.slane %v3031_v34, 3  ;;  %v3082_v34 = vshrl.u32 %v10291_v12, 16 }
 0x210   : > { %v3034_v42 = vor.u32 %v3033_v40, %v3030_v10  ;;  %v3087_v10 = vrot.slane %v3085_v59, 3 }
 0x211   : > { %3958 = vperm.xlu0 %9530, %v3808_v62   ;;  %v3094_v62 = vshll.u32 %v10311_v24, 16 }
 0x212   : > { %v3035_v44 = vsel %vm2946_vm6, %v3025_v20, %v3034_v42 }
 0x214   : > { %8509 = vmatmul.mubr.msk.bf16.vlgmr.msra.gmra.mrb[0].mxu0 %vm535_vm2, %v2972_v26  ;;  %v3049_v26 = vshll.u32 %v10258_v52, 16 }
 0x215   : > { %8545 = vmatpush3.bf16.msra.mxu0 %v3486_v47  ;;  %8512 = vmatprep.mubr.msk.bf16.mxu0 %vm535_vm2, %v2981_v48  ;;  %v3026_v47 = vsel %vm2946_vm6, %v3016_v29, %v3025_v20  ;;  %v3039_v48 = vrot.slane %v3037_v7, 2  ;;  %v3076_v29 = vshll.u32 %v10287_v38, 16  ;;  %v3100_v7 = vshrl.u32 %v10314_v28, 16 }
 0x216   : > { %v3051_v60 = vrot.slane %v3049_v26, 3  ;;  %3968 = vperm.xlu0 %9530, %v3810_v35   ;;  %v3096_v26 = vrot.slane %v3094_v62, 3 }
 0x217   : > { %v3043_v61 = vor.u32 %v3042_v51, %v3039_v48  ;;  %v3078_v53 = vrot.slane %v3076_v29, 3  ;;  %v3105_v48 = vrot.slane %v3103_v14, 3 }
 0x218   : > { %v3052_v33 = vor.u32 %v3051_v60, %v3048_v56  ;;  %v3097_v51 = vor.u32 %v3096_v26, %v3093_v25  ;;  %v3112_v56 = vshll.u32 %v10481_v30, 16 }
 0x219   : > { %v3044_v6 = vsel %vm2946_vm6, %v3034_v42, %v3043_v61 }
 0x21a   : > { %3978 = vperm.xlu0 %9530, %v3812_v5   ;;  %v3053_v27 = vsel %vm2946_vm6, %v3043_v61, %v3052_v33 }
 0x21c   : > { %8513 = vmatmul.mubr.msk.bf16.gmra.mrb[4].mxu0 %vm535_vm2, %v2990_v16  ;;  %v3813_v16 = vld [vmem:[%s11139_s1 + $0x108] sm:$0xff] }
 0x21d   : > { %8516 = vmatprep.mubr.msk.bf16.mxu0 %vm535_vm2, %v2999_v13  ;;  %v3057_v13 = vrot.slane %v3055_v2, 2  ;;  %3983 = vperm.xlu1 %9531, %v3813_v16   ;;  %v3114_v2 = vrot.slane %v3112_v56, 3  ;;  %v3395_v16 = vrot.slane %v10188_v49, 3  ;;  %v3401_v49 = vrot.slane %v10209_v1, 3  ;;  %v3819_v14 = vpop.permute.xlu0 %3818 }
 0x21e   : > { %3988 = vperm.xlu0 %9530, %v3814_v18   ;;  %v3409_v1 = vrot.slane %v10242_v22, 3  ;;  %v3417_v22 = vrot.slane %v10266_v0, 3  ;;  %v3425_v0 = vrot.slane %v10311_v24, 3  ;;  %v7640_v24 = vld [vmem:[%s11142_s4 + $0x2] sm:$0x3] }
 0x21f   : > { %v3061_v39 = vor.u32 %v3060_v21, %v3057_v13  ;;  %v3397_v13 = vrot.slane %v10197_v54, 3  ;;  %v3405_v54 = vrot.slane %v10230_v4, 3  ;;  %v3413_v4 = vrot.slane %v10254_v46, 3  ;;  %9509 = vmatprep.subr.msk.bf16.mxu1 %vm590_vm0, %v7640_v24 }
 0x220   : > { %v3421_v46 = vrot.slane %v10287_v38, 3  ;;  %v3429_v38 = vrot.slane %v10481_v30, 3  ;;  %v4278_v28 = vsel %vm590_vm0, %v7640_v24, 0 }
 0x221   : > { %3993 = vperm.xlu1 %9531, %v3815_v31   ;;  %v3062_v63 = vsel %vm2946_vm6, %v3052_v33, %v3061_v39  ;;  %v3071_v37 = vsel %vm2946_vm6, %v3061_v39, %v3070_v32  ;;  %v7620_v33 = vcombine.low %v3387_v58, %v10180_v41  ;;  %v3399_v41 = vrot.slane %v10201_v57, 3  ;;  %8583 = vmatpush3.bf16.msra.mxu1 %v4278_v28  ;;  %v3824_v25 = vpop.permute.xlu0 %3823  ;;  %v10615_v58 = vld [vmem:[%s11141_s3] ss:$0 sm:$0xff] }
 0x222   : > { %v3398_v21 = vsel %vm3393_vm7, %v3395_v16, %v3397_v13  ;;  %v3404_v31 = vsel %vm3393_vm7, %v3401_v49, %v3403_v43  ;;  %v3407_v57 = vrot.slane %v10234_v19, 3  ;;  %v3406_v39 = vsel %vm3393_vm7, %v3403_v43, %v3405_v54 }
 0x223   : > { %v3394_v11 = vrot.slane %v7620_v33, 3  ;;  %v3402_v23 = vsel %vm3393_vm7, %v3399_v41, %v3401_v49  ;;  %v3415_v19 = vrot.slane %v10258_v52, 3  ;;  %v3423_v52 = vrot.slane %v10291_v12, 3 }
 0x224   : > { %8517 = vmatmul.mubr.msk.bf16.gmra.mrb[8].mxu0 %vm535_vm2, %v3008_v50  ;;  %v3075_v50 = vrot.slane %v3073_v55, 2  ;;  %v3408_v55 = vsel %vm3393_vm7, %v3405_v54, %v3407_v57  ;;  %v3410_v29 = vsel %vm3393_vm7, %v3407_v57, %v3409_v1  ;;  %v3430_v12 = vsel %vm3393_vm7, %v3427_v36, %v3429_v38 }
 0x225   : > { %8520 = vmatprep.mubr.msk.bf16.mxu0 %vm535_vm2, %v3017_v8  ;;  %v3084_v8 = vrot.slane %v3082_v34, 2  ;;  %v3414_v34 = vsel %vm3393_vm7, %v3411_v9, %v3413_v4  ;;  %v3416_v59 = vsel %vm3393_vm7, %v3413_v4, %v3415_v19 }
 0x226   : > { %v3079_v40 = vor.u32 %v3078_v53, %v3075_v50  ;;  %v3420_v50 = vsel %vm3393_vm7, %v3417_v22, %v3419_v15  ;;  %v3422_v53 = vsel %vm3393_vm7, %v3419_v15, %v3421_v46 }
 0x227   : > { %v3088_v20 = vor.u32 %v3087_v10, %v3084_v8  ;;  %v3426_v8 = vsel %vm3393_vm7, %v3423_v52, %v3425_v0  ;;  %v3428_v10 = vsel %vm3393_vm7, %v3425_v0, %v3427_v36 }
 0x228   : > { %v3080_v42 = vsel %vm2946_vm6, %v3070_v32, %v3079_v40  ;;  %v3412_v32 = vsel %vm3393_vm7, %v3409_v1, %v3411_v9 }
 0x229   : > { %v3089_v35 = vsel %vm2946_vm6, %v3079_v40, %v3088_v20  ;;  %v3098_v5 = vsel %vm2946_vm6, %v3088_v20, %v3097_v51  ;;  %v9603_v40 = vmov 0.0  }
 0x22a   : > { %4036 = vst.msk [vmem:[#allocation2 + $0x20] sm:$0xff] %vm535_vm2, %v9603_v40  ;;  %4037 = vst.msk [vmem:[#allocation2 + $0x28] sm:$0xff] %vm535_vm2, %v9603_v40 }
 0x22b   : > { %4032 = vst.msk [vmem:[#allocation2] sm:$0xff] %vm535_vm2, %v9603_v40  ;;  %4033 = vst.msk [vmem:[#allocation2 + $0x8] sm:$0xff] %vm535_vm2, %v9603_v40 }
 0x22c   : > { %8521 = vmatmul.mubr.msk.bf16.gmra.mrb[12].mxu0 %vm535_vm2, %v3026_v47  ;;  %v3102_v47 = vrot.slane %v3100_v7, 2  ;;  %4034 = vst.msk [vmem:[#allocation2 + $0x10] sm:$0xff] %vm535_vm2, %v9603_v40  ;;  %4035 = vst.msk [vmem:[#allocation2 + $0x18] sm:$0xff] %vm535_vm2, %v9603_v40  ;;  %v10600_v7 = vld [vmem:[%s11142_s4] sm:$0x3] }
 0x22d   : > { %8524 = vmatprep.mubr.msk.bf16.mxu0 %vm535_vm2, %v3035_v44  ;;  %v3109_v44 = vshrl.u32 %v10481_v30, 16  ;;  %4038 = vst.msk [vmem:[#allocation2 + $0x30] sm:$0xff] %vm535_vm2, %v9603_v40  ;;  %4039 = vst.msk [vmem:[#allocation2 + $0x38] sm:$0xff] %vm535_vm2, %v9603_v40  ;;  %9510 = vmatprep.subr.msk.bf16.mxu1 %vm590_vm0, %v10600_v7  ;;  %v3839_v30 = vpop.permute.xlu0 %3838 }
 0x22e   : > { %v3106_v60 = vor.u32 %v3105_v48, %v3102_v47  ;;  %4040 = vst.msk [vmem:[#allocation2 + $0x40] sm:$0xff] %vm535_vm2, %v9603_v40  ;;  %4041 = vst.msk [vmem:[#allocation2 + $0x48] sm:$0xff] %vm535_vm2, %v9603_v40 }
 0x22f   : > { %v3111_v61 = vrot.slane %v3109_v44, 2  ;;  %4042 = vst.msk [vmem:[#allocation2 + $0x50] sm:$0xff] %vm535_vm2, %v9603_v40  ;;  %4043 = vst.msk [vmem:[#allocation2 + $0x58] sm:$0xff] %vm535_vm2, %v9603_v40 }
 0x230   : > { %v3107_v3 = vsel %vm2946_vm6, %v3097_v51, %v3106_v60  ;;  %4044 = vst.msk [vmem:[#allocation2 + $0x60] sm:$0xff] %vm535_vm2, %v9603_v40  ;;  %4045 = vst.msk [vmem:[#allocation2 + $0x68] sm:$0xff] %vm535_vm2, %v9603_v40 }
 0x231   : > { %v3115_v45 = vor.u32 %v3114_v2, %v3111_v61  ;;  %4046 = vst.msk [vmem:[#allocation2 + $0x70] sm:$0xff] %vm535_vm2, %v9603_v40  ;;  %4047 = vst.msk [vmem:[#allocation2 + $0x78] sm:$0xff] %vm535_vm2, %v9603_v40 }
 0x232   : > { %4048 = vst.msk [vmem:[#allocation2 + $0x80] sm:$0xff] %vm535_vm2, %v9603_v40  ;;  %4049 = vst.msk [vmem:[#allocation2 + $0x88] sm:$0xff] %vm535_vm2, %v9603_v40  ;;  %v4167_v17 = vld [vmem:[#allocation2 + $0x1] sm:$0xff] }
 0x233   : > { %v3116_v18 = vsel %vm2946_vm6, %v3106_v60, %v3115_v45  ;;  %4050 = vst.msk [vmem:[#allocation2 + $0x90] sm:$0xff] %vm535_vm2, %v9603_v40  ;;  %4051 = vst.msk [vmem:[#allocation2 + $0x98] sm:$0xff] %vm535_vm2, %v9603_v40  ;;  %v4168_v62 = vld [vmem:[#allocation2 + $0x9] sm:$0xff] }
 0x234   : > { %8525 = vmatmul.mubr.msk.bf16.gmra.mrb[16].mxu0 %vm535_vm2, %v3044_v6  ;;  %v3396_v6 = vsel %vm3393_vm7, %v3394_v11, %v3395_v16  ;;  %4052 = vst.msk [vmem:[#allocation2 + $0xa0] sm:$0xff] %vm535_vm2, %v9603_v40  ;;  %4053 = vst.msk [vmem:[#allocation2 + $0xa8] sm:$0xff] %vm535_vm2, %v9603_v40  ;;  %v4203_v20 = vpack.c.bf16 %v4168_v62, %v4167_v17  ;;  %v3849_v47 = vpop.permute.xlu0 %3848  ;;  %v4512_v62 = vsel %vm590_vm0, %v10600_v7, 0 }
 0x235   : > { %8528 = vmatprep.mubr.msk.bf16.mxu0 %vm535_vm2, %v3053_v27  ;;  %v3400_v27 = vsel %vm3393_vm7, %v3397_v13, %v3399_v41  ;;  %4054 = vst.msk [vmem:[#allocation2 + $0xb0] sm:$0xff] %vm535_vm2, %v9603_v40  ;;  %4055 = vst.msk [vmem:[#allocation2 + $0xb8] sm:$0xff] %vm535_vm2, %v9603_v40 }
 0x236   : > { %4056 = vst.msk [vmem:[#allocation2 + $0xc0] sm:$0xff] %vm535_vm2, %v9603_v40  ;;  %4057 = vst.msk [vmem:[#allocation2 + $0xc8] sm:$0xff] %vm535_vm2, %v9603_v40  ;;  %8584 = vmatprep.mubr.msk.bf16.mxu1 %vm535_vm2, %v4203_v20 }
 0x237   : > { %4058 = vst.msk [vmem:[#allocation2 + $0xd0] sm:$0xff] %vm535_vm2, %v9603_v40  ;;  %4059 = vst.msk [vmem:[#allocation2 + $0xd8] sm:$0xff] %vm535_vm2, %v9603_v40 }
 0x238   : > { %4060 = vst.msk [vmem:[#allocation2 + $0xe0] sm:$0xff] %vm535_vm2, %v9603_v40  ;;  %4061 = vst.msk [vmem:[#allocation2 + $0xe8] sm:$0xff] %vm535_vm2, %v9603_v40 }
 0x239   : > { %4062 = vst.msk [vmem:[#allocation2 + $0xf0] sm:$0xff] %vm535_vm2, %v9603_v40  ;;  %4063 = vst.msk [vmem:[#allocation2 + $0xf8] sm:$0xff] %vm535_vm2, %v9603_v40 }
 0x23a   : > { %4064 = vst.msk [vmem:[#allocation2 + $0x100] sm:$0xff] %vm535_vm2, %v9603_v40  ;;  %4065 = vst.msk [vmem:[#allocation2 + $0x108] sm:$0xff] %vm535_vm2, %v9603_v40 }
 0x23b   : > { %4066 = vst.msk [vmem:[#allocation2 + $0x110] sm:$0xff] %vm535_vm2, %v9603_v40  ;;  %4067 = vst.msk [vmem:[#allocation2 + $0x118] sm:$0xff] %vm535_vm2, %v9603_v40 }
 0x23c   : > { %8529 = vmatmul.mubr.msk.bf16.gmra.mrb[20].mxu0 %vm535_vm2, %v3062_v63  ;;  %v3418_v63 = vsel %vm3393_vm7, %v3415_v19, %v3417_v22  ;;  %4068 = vst.msk [vmem:[#allocation2 + $0x120] sm:$0xff] %vm535_vm2, %v9603_v40  ;;  %4069 = vst.msk [vmem:[#allocation2 + $0x128] sm:$0xff] %vm535_vm2, %v9603_v40 }
 0x23d   : > { %8532 = vmatprep.mubr.msk.bf16.mxu0 %vm535_vm2, %v3071_v37  ;;  %v3424_v37 = vsel %vm3393_vm7, %v3421_v46, %v3423_v52  ;;  %4070 = vst.msk [vmem:[#allocation2 + $0x130] sm:$0xff] %vm535_vm2, %v9603_v40  ;;  %4071 = vst.msk [vmem:[#allocation2 + $0x138] sm:$0xff] %vm535_vm2, %v9603_v40  ;;  %v10604_v51 = vpop.permute.xlu0 %3858 }
 0x23e   : > { %4072 = vst.msk [vmem:[#allocation2 + $0x140] sm:$0xff] %vm535_vm2, %v9603_v40 }
 0x244   : > { %8533 = vmatmul.mubr.msk.bf16.gmra.mrb[24].mxu0 %vm535_vm2, %v3080_v42  ;;  %v3829_v42 = vpop.permute.xlu1 %3828 }
 0x245   : > { %8536 = vmatprep.mubr.msk.bf16.mxu0 %vm535_vm2, %v3089_v35 }
 0x248   : > { %v3834_v26 = vpop.permute.xlu1 %3833 }
 0x24c   : > { %8537 = vmatmul.mubr.msk.bf16.gmra.mrb[28].mxu0 %vm535_vm2, %v3098_v5  ;;  %v3844_v35 = vpop.permute.xlu1 %3843 }
 0x24d   : > { %8540 = vmatprep.mubr.msk.bf16.mxu0 %vm535_vm2, %v3107_v3  ;;  %v10608_v56 = vpop.permute.xlu0 %3868 }
 0x250   : > { %v3854_v48 = vpop.permute.xlu1 %3853 }
 0x251   : > { %v10618_v3 = vpop.permute.xlu0 %3878 }
 0x254   : > { %8541 = vmatmul.mubr.msk.bf16.gmra.mrb[32].mxu0 %vm535_vm2, %v3116_v18  ;;  %v10606_v44 = vpop.permute.xlu1 %3863 }
 0x255   : > { %8546 = vmatprep.mubr.msk.bf16.mxu0 %vm535_vm2, %v3396_v6 }
 0x258   : > { %v10610_v60 = vpop.permute.xlu1 %3873 }
 0x25c   : > { %8547 = vmatmul.mubr.msk.bf16.vlgmr.msra.gmra.mrb[0].mxu0 %vm535_vm2, %v3398_v21  ;;  %v10622_v6 = vpop.permute.xlu1 %3883 }
 0x25d   : > { %8550 = vmatprep.mubr.msk.bf16.mxu0 %vm535_vm2, %v3400_v27 }
 0x260   : > { %v10631_v1 = vpop.permute.xlu1 %3893 }
 0x264   : > { %8551 = vmatmul.mubr.msk.bf16.gmra.mrb[4].mxu0 %vm535_vm2, %v3402_v23 }
 0x265   : > { %8554 = vmatprep.mubr.msk.bf16.mxu0 %vm535_vm2, %v3404_v31 }
 0x26c   : > { %8555 = vmatmul.mubr.msk.bf16.gmra.mrb[8].mxu0 %vm535_vm2, %v3406_v39  ;;  %v10626_v31 = vpop.permute.xlu0 %3888 }
 0x26d   : > { %8558 = vmatprep.mubr.msk.bf16.mxu0 %vm535_vm2, %v3408_v55 }
 0x274   : > { %8559 = vmatmul.mubr.msk.bf16.gmra.mrb[12].mxu0 %vm535_vm2, %v3410_v29 }
 0x275   : > { %8562 = vmatprep.mubr.msk.bf16.mxu0 %vm535_vm2, %v3412_v32 }
 0x27c   : > { %8563 = vmatmul.mubr.msk.bf16.gmra.mrb[16].mxu0 %vm535_vm2, %v3414_v34 }
 0x27d   : > { %8566 = vmatprep.mubr.msk.bf16.mxu0 %vm535_vm2, %v3416_v59 }
 0x284   : > { %8567 = vmatmul.mubr.msk.bf16.gmra.mrb[20].mxu0 %vm535_vm2, %v3418_v63  ;;  %v10637_v63 = vpop.permute.xlu0 %3898 }
 0x285   : > { %8570 = vmatprep.mubr.msk.bf16.mxu0 %vm535_vm2, %v3420_v50 }
 0x28c   : > { %8571 = vmatmul.mubr.msk.bf16.gmra.mrb[24].mxu0 %vm535_vm2, %v3422_v53  ;;  %v10640_v53 = vpop.permute.xlu1 %3903 }
 0x28d   : > { %8574 = vmatprep.mubr.msk.bf16.mxu0 %vm535_vm2, %v3424_v37 }
 0x294   : > { %8575 = vmatmul.mubr.msk.bf16.gmra.mrb[28].mxu0 %vm535_vm2, %v3426_v8 }
 0x295   : > { %8578 = vmatprep.mubr.msk.bf16.mxu0 %vm535_vm2, %v3428_v10 }
 0x29c   : > { %8579 = vmatmul.mubr.msk.bf16.gmra.mrb[32].mxu0 %vm535_vm2, %v3430_v12 }
 0x32f   : > { %v8548_v5 = vpop.f32.mrb[0].mxu0 }
 0x330   : > { %v3710_v61 = vadd.f32 %v8548_v5, %v10615_v58  ;;  %v3522_v2 = vpop.f32.mrb[1].mxu0  ;;  %v10661_v5 = vpop.permute.xlu1 %3913 }
 0x331   : > { %v3708_v33 = vadd.f32 %v10615_v58, %v3522_v2  ;;  %v8549_v45 = vpop.f32.mrb[2].mxu0 }
 0x332   : > { %v3746_v11 = vmax.f32 %v3710_v61, 0.0  ;;  %v3711_v16 = vadd.f32 %v8549_v45, %v10615_v58  ;;  %v3525_v18 = vpop.f32.mrb[3].mxu0 }
 0x333   : > { %v3744_v13 = vmax.f32 %v3708_v33, 0.0  ;;  %v3709_v41 = vadd.f32 %v10615_v58, %v3525_v18 }
 0x334   : > { %v3998_v21 = vmul.f32 %v3829_v42, %v3746_v11  ;;  %v3747_v27 = vmax.f32 %v3711_v16, 0.0 }
 0x335   : > { %v3996_v49 = vmul.f32 %v3819_v14, %v3744_v13  ;;  %v3745_v43 = vmax.f32 %v3709_v41, 0.0 }
 0x336   : > { %4078 = vst.msk [vmem:[#allocation2 + $0x23] sm:$0xff] %vm535_vm2, %v3998_v21  ;;  %v3999_v23 = vmul.f32 %v3834_v26, %v3747_v27  ;;  %v10653_v26 = vld [vmem:[%s11142_s4 + $0x4] sm:$0x3] }
 0x337   : > { %4076 = vst.msk [vmem:[#allocation2 + $0x13] sm:$0xff] %vm535_vm2, %v3996_v49  ;;  %v3997_v54 = vmul.f32 %v3824_v25, %v3745_v43  ;;  %v8552_v57 = vpop.f32.mrb[4].mxu0 }
 0x338   : > { %4079 = vst.msk [vmem:[#allocation2 + $0x2b] sm:$0xff] %vm535_vm2, %v3999_v23  ;;  %v3714_v39 = vadd.f32 %v8552_v57, %v10615_v58  ;;  %v3538_v55 = vpop.f32.mrb[5].mxu0  ;;  %v10677_v57 = vpop.permute.xlu1 %3923 }
 0x339   : > { %4077 = vst.msk [vmem:[#allocation2 + $0x1b] sm:$0xff] %vm535_vm2, %v3997_v54  ;;  %v3712_v9 = vadd.f32 %v10615_v58, %v3538_v55  ;;  %v8553_v29 = vpop.f32.mrb[6].mxu0 }
 0x33a   : > { %v3750_v32 = vmax.f32 %v3714_v39, 0.0  ;;  %v3715_v4 = vadd.f32 %v8553_v29, %v10615_v58  ;;  %v3541_v19 = vpop.f32.mrb[7].mxu0 }
 0x33b   : > { %v3748_v34 = vmax.f32 %v3712_v9, 0.0  ;;  %v3713_v59 = vadd.f32 %v10615_v58, %v3541_v19 }
 0x33c   : > { %v4002_v22 = vmul.f32 %v3849_v47, %v3750_v32  ;;  %v3751_v15 = vmax.f32 %v3715_v4, 0.0 }
 0x33d   : > { %v4000_v50 = vmul.f32 %v3839_v30, %v3748_v34  ;;  %v3749_v46 = vmax.f32 %v3713_v59, 0.0  ;;  %v10655_v30 = vpop.permute.xlu0 %3908 }
 0x33e   : > { %4082 = vst.msk [vmem:[#allocation2 + $0x43] sm:$0xff] %vm535_vm2, %v4002_v22  ;;  %v4003_v52 = vmul.f32 %v3854_v48, %v3751_v15  ;;  %v4169_v38 = vld [vmem:[#allocation2 + $0x11] sm:$0xff] }
 0x33f   : > { %4080 = vst.msk [vmem:[#allocation2 + $0x33] sm:$0xff] %vm535_vm2, %v4000_v50  ;;  %v4001_v37 = vmul.f32 %v3844_v35, %v3749_v46  ;;  %v8556_v0 = vpop.f32.mrb[8].mxu0  ;;  %v4172_v36 = vld [vmem:[#allocation2 + $0x29] sm:$0xff] }
 0x340   : > { %4083 = vst.msk [vmem:[#allocation2 + $0x4b] sm:$0xff] %vm535_vm2, %v4003_v52  ;;  %v3718_v8 = vadd.f32 %v8556_v0, %v10615_v58  ;;  %v3554_v10 = vpop.f32.mrb[9].mxu0  ;;  %v4170_v12 = vld [vmem:[#allocation2 + $0x19] sm:$0xff]  ;;  %v4171_v40 = vld [vmem:[#allocation2 + $0x21] sm:$0xff] }
 0x341   : > { %4081 = vst.msk [vmem:[#allocation2 + $0x3b] sm:$0xff] %vm535_vm2, %v4001_v37  ;;  %v3716_v24 = vadd.f32 %v10615_v58, %v3554_v10  ;;  %v8557_v28 = vpop.f32.mrb[10].mxu0  ;;  %v4204_v17 = vpack.c.bf16 %v4170_v12, %v4169_v38  ;;  %v4205_v20 = vpack.c.bf16 %v4172_v36, %v4171_v40  ;;  %v10672_v21 = vpop.permute.xlu0 %3918 }
 0x342   : > { %v3754_v14 = vmax.f32 %v3718_v8, 0.0  ;;  %v3719_v42 = vadd.f32 %v8557_v28, %v10615_v58  ;;  %v3557_v25 = vpop.f32.mrb[11].mxu0  ;;  %v3934_v37 = vpop.permute.xlu1 %3933 }
 0x343   : > { %v3752_v35 = vmax.f32 %v3716_v24, 0.0  ;;  %v3717_v47 = vadd.f32 %v10615_v58, %v3557_v25  ;;  %8585 = vmatmul.mubr.msk.bf16.vlgmr.msra.gmra.mrb[0].mxu1 %vm535_vm2, %v4204_v17 }
 0x344   : > { %v4006_v48 = vmul.f32 %v10608_v56, %v3754_v14  ;;  %v3755_v7 = vmax.f32 %v3719_v42, 0.0  ;;  %8621 = vmatpush3.bf16.msra.mxu1 %v4512_v62  ;;  %8588 = vmatprep.mubr.msk.bf16.mxu1 %vm535_vm2, %v4205_v20 }
 0x345   : > { %v4004_v61 = vmul.f32 %v10604_v51, %v3752_v35  ;;  %v3753_v2 = vmax.f32 %v3717_v47, 0.0  ;;  %9511 = vmatprep.subr.msk.bf16.mxu1 %vm590_vm0, %v10653_v26  ;;  %v3929_v34 = vpop.permute.xlu0 %3928 }
 0x346   : > { %4086 = vst.msk [vmem:[#allocation2 + $0x63] sm:$0xff] %vm535_vm2, %v4006_v48  ;;  %v4007_v33 = vmul.f32 %v10610_v60, %v3755_v7  ;;  %v4173_v51 = vld [vmem:[#allocation2 + $0x31] sm:$0xff]  ;;  %v10700_v42 = vpop.permute.xlu1 %3943 }
 0x347   : > { %4084 = vst.msk [vmem:[#allocation2 + $0x53] sm:$0xff] %vm535_vm2, %v4004_v61  ;;  %v4005_v56 = vmul.f32 %v10606_v44, %v3753_v2  ;;  %v8560_v45 = vpop.f32.mrb[12].mxu0  ;;  %v4176_v11 = vld [vmem:[#allocation2 + $0x49] sm:$0xff] }
 0x348   : > { %4087 = vst.msk [vmem:[#allocation2 + $0x6b] sm:$0xff] %vm535_vm2, %v4007_v33  ;;  %v3722_v16 = vadd.f32 %v8560_v45, %v10615_v58  ;;  %v3570_v18 = vpop.f32.mrb[13].mxu0  ;;  %v4174_v13 = vld [vmem:[#allocation2 + $0x39] sm:$0xff]  ;;  %v4175_v41 = vld [vmem:[#allocation2 + $0x41] sm:$0xff] }
 0x349   : > { %4085 = vst.msk [vmem:[#allocation2 + $0x5b] sm:$0xff] %vm535_vm2, %v4005_v56  ;;  %v3720_v60 = vadd.f32 %v10615_v58, %v3570_v18  ;;  %v8561_v27 = vpop.f32.mrb[14].mxu0  ;;  %v4206_v49 = vpack.c.bf16 %v4174_v13, %v4173_v51  ;;  %v4207_v43 = vpack.c.bf16 %v4176_v11, %v4175_v41  ;;  %v3939_v17 = vpop.permute.xlu0 %3938 }
 0x34a   : > { %v3758_v44 = vmax.f32 %v3722_v16, 0.0  ;;  %v3723_v23 = vadd.f32 %v8561_v27, %v10615_v58  ;;  %v3573_v54 = vpop.f32.mrb[15].mxu0 }
 0x34b   : > { %v3756_v39 = vmax.f32 %v3720_v60, 0.0  ;;  %v3721_v55 = vadd.f32 %v10615_v58, %v3573_v54  ;;  %8589 = vmatmul.mubr.msk.bf16.gmra.mrb[4].mxu1 %vm535_vm2, %v4206_v49  ;;  %v3954_v60 = vpop.permute.xlu1 %3953 }
 0x34c   : > { %v4010_v9 = vmul.f32 %v10626_v31, %v3758_v44  ;;  %v3759_v29 = vmax.f32 %v3723_v23, 0.0  ;;  %8592 = vmatprep.mubr.msk.bf16.mxu1 %vm535_vm2, %v4207_v43 }
 0x34d   : > { %v4008_v32 = vmul.f32 %v10618_v3, %v3756_v39  ;;  %v3757_v4 = vmax.f32 %v3721_v55, 0.0  ;;  %v3949_v16 = vpop.permute.xlu0 %3948 }
 0x34e   : > { %4090 = vst.msk [vmem:[#allocation2 + $0x83] sm:$0xff] %vm535_vm2, %v4010_v9  ;;  %v4011_v19 = vmul.f32 %v10631_v1, %v3759_v29  ;;  %v4177_v46 = vld [vmem:[#allocation2 + $0x51] sm:$0xff] }
 0x34f   : > { %4088 = vst.msk [vmem:[#allocation2 + $0x73] sm:$0xff] %vm535_vm2, %v4008_v32  ;;  %v4009_v59 = vmul.f32 %v10622_v6, %v3757_v4  ;;  %v8564_v22 = vpop.f32.mrb[16].mxu0  ;;  %v4180_v15 = vld [vmem:[#allocation2 + $0x69] sm:$0xff] }
 0x350   : > { %4091 = vst.msk [vmem:[#allocation2 + $0x8b] sm:$0xff] %vm535_vm2, %v4011_v19  ;;  %v3726_v31 = vadd.f32 %v8564_v22, %v10615_v58  ;;  %v3586_v50 = vpop.f32.mrb[17].mxu0  ;;  %v4178_v52 = vld [vmem:[#allocation2 + $0x59] sm:$0xff]  ;;  %v4179_v3 = vld [vmem:[#allocation2 + $0x61] sm:$0xff] }
 0x351   : > { %4089 = vst.msk [vmem:[#allocation2 + $0x7b] sm:$0xff] %vm535_vm2, %v4009_v59  ;;  %v3724_v1 = vadd.f32 %v10615_v58, %v3586_v50  ;;  %v8565_v0 = vpop.f32.mrb[18].mxu0  ;;  %v4208_v36 = vpack.c.bf16 %v4178_v52, %v4177_v46  ;;  %v4209_v8 = vpack.c.bf16 %v4180_v15, %v4179_v3  ;;  %v3959_v4 = vpop.permute.xlu0 %3958 }
 0x352   : > { %v3762_v10 = vmax.f32 %v3726_v31, 0.0  ;;  %v3727_v6 = vadd.f32 %v8565_v0, %v10615_v58  ;;  %v3589_v38 = vpop.f32.mrb[19].mxu0  ;;  %v3964_v31 = vpop.permute.xlu1 %3963 }
 0x353   : > { %v3760_v12 = vmax.f32 %v3724_v1, 0.0  ;;  %v3725_v40 = vadd.f32 %v10615_v58, %v3589_v38  ;;  %8593 = vmatmul.mubr.msk.bf16.gmra.mrb[8].mxu1 %vm535_vm2, %v4208_v36 }
 0x354   : > { %v4014_v24 = vmul.f32 %v10655_v30, %v3762_v10  ;;  %v3763_v28 = vmax.f32 %v3727_v6, 0.0  ;;  %8596 = vmatprep.mubr.msk.bf16.mxu1 %vm535_vm2, %v4209_v8 }
 0x355   : > { %v4012_v62 = vmul.f32 %v10637_v63, %v3760_v12  ;;  %v3761_v20 = vmax.f32 %v3725_v40, 0.0  ;;  %v3969_v36 = vpop.permute.xlu0 %3968 }
 0x356   : > { %4094 = vst.msk [vmem:[#allocation2 + $0xa3] sm:$0xff] %vm535_vm2, %v4014_v24  ;;  %v4015_v14 = vmul.f32 %v10661_v5, %v3763_v28  ;;  %v4181_v7 = vld [vmem:[#allocation2 + $0x71] sm:$0xff] }
 0x357   : > { %4092 = vst.msk [vmem:[#allocation2 + $0x93] sm:$0xff] %vm535_vm2, %v4012_v62  ;;  %v4013_v25 = vmul.f32 %v10640_v53, %v3761_v20  ;;  %v8568_v35 = vpop.f32.mrb[20].mxu0  ;;  %v4184_v47 = vld [vmem:[#allocation2 + $0x89] sm:$0xff] }
 0x358   : > { %4095 = vst.msk [vmem:[#allocation2 + $0xab] sm:$0xff] %vm535_vm2, %v4015_v14  ;;  %v3730_v30 = vadd.f32 %v8568_v35, %v10615_v58  ;;  %v3602_v48 = vpop.f32.mrb[21].mxu0  ;;  %v4182_v63 = vld [vmem:[#allocation2 + $0x79] sm:$0xff]  ;;  %v4183_v61 = vld [vmem:[#allocation2 + $0x81] sm:$0xff] }
 0x359   : > { %4093 = vst.msk [vmem:[#allocation2 + $0x9b] sm:$0xff] %vm535_vm2, %v4013_v25  ;;  %v3728_v5 = vadd.f32 %v10615_v58, %v3602_v48  ;;  %v8569_v2 = vpop.f32.mrb[22].mxu0  ;;  %v4210_v33 = vpack.c.bf16 %v4182_v63, %v4181_v7  ;;  %v4211_v56 = vpack.c.bf16 %v4184_v47, %v4183_v61  ;;  %v3979_v61 = vpop.permute.xlu0 %3978 }
 0x35a   : > { %v3766_v45 = vmax.f32 %v3730_v30, 0.0  ;;  %v3731_v53 = vadd.f32 %v8569_v2, %v10615_v58  ;;  %v3605_v11 = vpop.f32.mrb[23].mxu0 }
 0x35b   : > { %v3764_v18 = vmax.f32 %v3728_v5, 0.0  ;;  %v3729_v51 = vadd.f32 %v10615_v58, %v3605_v11  ;;  %8597 = vmatmul.mubr.msk.bf16.gmra.mrb[12].mxu1 %vm535_vm2, %v4210_v33 }
 0x35c   : > { %v4018_v13 = vmul.f32 %v3929_v34, %v3766_v45  ;;  %v3767_v41 = vmax.f32 %v3731_v53, 0.0  ;;  %8600 = vmatprep.mubr.msk.bf16.mxu1 %vm535_vm2, %v4211_v56 }
 0x35d   : > { %v4016_v27 = vmul.f32 %v10672_v21, %v3764_v18  ;;  %v3765_v49 = vmax.f32 %v3729_v51, 0.0 }
 0x35e   : > { %4098 = vst.msk [vmem:[#allocation2 + $0xc3] sm:$0xff] %vm535_vm2, %v4018_v13  ;;  %v4019_v43 = vmul.f32 %v3934_v37, %v3767_v41  ;;  %v4185_v9 = vld [vmem:[#allocation2 + $0x91] sm:$0xff] }
 0x35f   : > { %4096 = vst.msk [vmem:[#allocation2 + $0xb3] sm:$0xff] %vm535_vm2, %v4016_v27  ;;  %v4017_v44 = vmul.f32 %v10677_v57, %v3765_v49  ;;  %v8572_v23 = vpop.f32.mrb[24].mxu0  ;;  %v4188_v54 = vld [vmem:[#allocation2 + $0xa9] sm:$0xff] }
 0x360   : > { %4099 = vst.msk [vmem:[#allocation2 + $0xcb] sm:$0xff] %vm535_vm2, %v4019_v43  ;;  %v3734_v39 = vadd.f32 %v8572_v23, %v10615_v58  ;;  %v3618_v55 = vpop.f32.mrb[25].mxu0  ;;  %v4186_v29 = vld [vmem:[#allocation2 + $0x99] sm:$0xff]  ;;  %v4187_v32 = vld [vmem:[#allocation2 + $0xa1] sm:$0xff] }
 0x361   : > { %4097 = vst.msk [vmem:[#allocation2 + $0xbb] sm:$0xff] %vm535_vm2, %v4017_v44  ;;  %v3732_v21 = vadd.f32 %v10615_v58, %v3618_v55  ;;  %v8573_v19 = vpop.f32.mrb[26].mxu0  ;;  %v4212_v34 = vpack.c.bf16 %v4186_v29, %v4185_v9  ;;  %v4213_v59 = vpack.c.bf16 %v4188_v54, %v4187_v32 }
 0x362   : > { %v3770_v22 = vmax.f32 %v3734_v39, 0.0  ;;  %v3735_v57 = vadd.f32 %v8573_v19, %v10615_v58  ;;  %v3621_v15 = vpop.f32.mrb[27].mxu0  ;;  %v3989_v39 = vpop.permute.xlu0 %3988 }
 0x363   : > { %v3768_v50 = vmax.f32 %v3732_v21, 0.0  ;;  %v3733_v46 = vadd.f32 %v10615_v58, %v3621_v15  ;;  %8601 = vmatmul.mubr.msk.bf16.gmra.mrb[16].mxu1 %vm535_vm2, %v4212_v34 }
 0x364   : > { %v4022_v52 = vmul.f32 %v3949_v16, %v3770_v22  ;;  %v3771_v3 = vmax.f32 %v3735_v57, 0.0  ;;  %8604 = vmatprep.mubr.msk.bf16.mxu1 %vm535_vm2, %v4213_v59 }
 0x365   : > { %v4020_v37 = vmul.f32 %v3939_v17, %v3768_v50  ;;  %v3769_v1 = vmax.f32 %v3733_v46, 0.0  ;;  %v3974_v17 = vpop.permute.xlu1 %3973  ;;  %v4112_v46 = vld [vmem:[#allocation2] sm:$0xff] }
 0x366   : > { %4102 = vst.msk [vmem:[#allocation2 + $0xe3] sm:$0xff] %vm535_vm2, %v4022_v52  ;;  %v4023_v0 = vmul.f32 %v3954_v60, %v3771_v3  ;;  %v4189_v40 = vld [vmem:[#allocation2 + $0xb1] sm:$0xff]  ;;  %v4113_v52 = vld [vmem:[#allocation2 + $0x8] sm:$0xff] }
 0x367   : > { %4100 = vst.msk [vmem:[#allocation2 + $0xd3] sm:$0xff] %vm535_vm2, %v4020_v37  ;;  %v4021_v8 = vmul.f32 %v10700_v42, %v3769_v1  ;;  %v8576_v10 = vpop.f32.mrb[28].mxu0  ;;  %v4192_v6 = vld [vmem:[#allocation2 + $0xc9] sm:$0xff]  ;;  %v4148_v1 = vpack.c.bf16 %v4113_v52, %v4112_v46  ;;  %v4693_v52 = vld [vmem:[#allocation2 + $0x12] sm:$0xff] }
 0x368   : > { %4103 = vst.msk [vmem:[#allocation2 + $0xeb] sm:$0xff] %vm535_vm2, %v4023_v0  ;;  %v3738_v38 = vadd.f32 %v8576_v10, %v10615_v58  ;;  %v3634_v12 = vpop.f32.mrb[29].mxu0  ;;  %v4190_v24 = vld [vmem:[#allocation2 + $0xb9] sm:$0xff]  ;;  %v4191_v28 = vld [vmem:[#allocation2 + $0xc1] sm:$0xff]  ;;  %v4696_v46 = vld [vmem:[#allocation2 + $0x2a] sm:$0xff] }
 0x369   : > { %4101 = vst.msk [vmem:[#allocation2 + $0xdb] sm:$0xff] %vm535_vm2, %v4021_v8  ;;  %v3736_v62 = vadd.f32 %v10615_v58, %v3634_v12  ;;  %v8577_v20 = vpop.f32.mrb[30].mxu0  ;;  %v4214_v14 = vpack.c.bf16 %v4190_v24, %v4189_v40  ;;  %v4215_v25 = vpack.c.bf16 %v4192_v6, %v4191_v28  ;;  %v3984_v56 = vpop.permute.xlu1 %3983  ;;  %v4116_v8 = vld [vmem:[#allocation2 + $0x20] sm:$0xff]  ;;  %v4117_v10 = vld [vmem:[#allocation2 + $0x28] sm:$0xff]  ;;  %v4114_v6 = vld [vmem:[#allocation2 + $0x10] sm:$0xff]  ;;  %v4802_v12 = vsel %vm590_vm0, %v10653_v26, 0 }
 0x36a   : > { %v3774_v35 = vmax.f32 %v3738_v38, 0.0  ;;  %v3739_v42 = vadd.f32 %v8577_v20, %v10615_v58  ;;  %v3637_v47 = vpop.f32.mrb[31].mxu0  ;;  %v4150_v40 = vpack.c.bf16 %v4117_v10, %v4116_v8  ;;  %v10758_v24 = vld [vmem:[%s11142_s4 + $0x6] sm:$0x3]  ;;  %v4119_v28 = vld [vmem:[#allocation2 + $0x38] sm:$0xff]  ;;  %v4118_v20 = vld [vmem:[#allocation2 + $0x30] sm:$0xff] }
 0x36b   : > { %v3772_v30 = vmax.f32 %v3736_v62, 0.0  ;;  %v3737_v48 = vadd.f32 %v10615_v58, %v3637_v47  ;;  %8605 = vmatmul.mubr.msk.bf16.gmra.mrb[20].mxu1 %vm535_vm2, %v4214_v14  ;;  %v4121_v62 = vld [vmem:[#allocation2 + $0x48] sm:$0xff]  ;;  %v4151_v14 = vpack.c.bf16 %v4119_v28, %v4118_v20  ;;  %v4122_v47 = vld [vmem:[#allocation2 + $0x50] sm:$0xff] }
 0x36c   : > { %v4026_v7 = vmul.f32 %v3969_v36, %v3774_v35  ;;  %v3775_v63 = vmax.f32 %v3739_v42, 0.0  ;;  %8608 = vmatprep.mubr.msk.bf16.mxu1 %vm535_vm2, %v4215_v25  ;;  %v4115_v36 = vld [vmem:[#allocation2 + $0x18] sm:$0xff]  ;;  %v4124_v35 = vld [vmem:[#allocation2 + $0x60] sm:$0xff]  ;;  %v4125_v42 = vld [vmem:[#allocation2 + $0x68] sm:$0xff] }
 0x36d   : > { %v4024_v5 = vmul.f32 %v3959_v4, %v3772_v30  ;;  %v3773_v2 = vmax.f32 %v3737_v48, 0.0  ;;  %v3994_v4 = vpop.permute.xlu1 %3993  ;;  %v4149_v38 = vpack.c.bf16 %v4115_v36, %v4114_v6  ;;  %v4123_v25 = vld [vmem:[#allocation2 + $0x58] sm:$0xff]  ;;  %v4154_v48 = vpack.c.bf16 %v4125_v42, %v4124_v35  ;;  %v4699_v8 = vld [vmem:[#allocation2 + $0x42] sm:$0xff]  ;;  %v4700_v10 = vld [vmem:[#allocation2 + $0x4a] sm:$0xff] }
 0x36e   : > { %4106 = vst.msk [vmem:[#allocation2 + $0x103] sm:$0xff] %vm535_vm2, %v4026_v7  ;;  %v4027_v33 = vmul.f32 %v3974_v17, %v3775_v63  ;;  %v4193_v51 = vld [vmem:[#allocation2 + $0xd1] sm:$0xff]  ;;  %v4120_v17 = vld [vmem:[#allocation2 + $0x40] sm:$0xff]  ;;  %v4153_v30 = vpack.c.bf16 %v4123_v25, %v4122_v47 }
 0x36f   : > { %4104 = vst.msk [vmem:[#allocation2 + $0xf3] sm:$0xff] %vm535_vm2, %v4024_v5  ;;  %v4025_v45 = vmul.f32 %v3964_v31, %v3773_v2  ;;  %v8580_v53 = vpop.f32.mrb[32].mxu0  ;;  %v4196_v11 = vld [vmem:[#allocation2 + $0xe9] sm:$0xff]  ;;  %v4152_v26 = vpack.c.bf16 %v4121_v62, %v4120_v17  ;;  %v4127_v7 = vld [vmem:[#allocation2 + $0x78] sm:$0xff]  ;;  %v4128_v63 = vld [vmem:[#allocation2 + $0x80] sm:$0xff] }
 0x370   : > { %4107 = vst.msk [vmem:[#allocation2 + $0x10b] sm:$0xff] %vm535_vm2, %v4027_v33  ;;  %v3742_v16 = vadd.f32 %v8580_v53, %v10615_v58  ;;  %v3650_v18 = vpop.f32.mrb[33].mxu0  ;;  %v4194_v13 = vld [vmem:[#allocation2 + $0xd9] sm:$0xff]  ;;  %v4195_v41 = vld [vmem:[#allocation2 + $0xe1] sm:$0xff]  ;;  %v4126_v5 = vld [vmem:[#allocation2 + $0x70] sm:$0xff] }
 0x371   : > { %4105 = vst.msk [vmem:[#allocation2 + $0xfb] sm:$0xff] %vm535_vm2, %v4025_v45  ;;  %v3740_v60 = vadd.f32 %v10615_v58, %v3650_v18  ;;  %v8581_v27 = vpop.f32.mrb[34].mxu0  ;;  %v4216_v49 = vpack.c.bf16 %v4194_v13, %v4193_v51  ;;  %v4217_v43 = vpack.c.bf16 %v4196_v11, %v4195_v41  ;;  %v4155_v2 = vpack.c.bf16 %v4127_v7, %v4126_v5  ;;  %v4132_v45 = vld [vmem:[#allocation2 + $0xa0] sm:$0xff]  ;;  %v4133_v53 = vld [vmem:[#allocation2 + $0xa8] sm:$0xff]  ;;  %v4130_v11 = vld [vmem:[#allocation2 + $0x90] sm:$0xff] }
 0x372   : > { %v3778_v44 = vmax.f32 %v3742_v16, 0.0  ;;  %v3743_v23 = vadd.f32 %v8581_v27, %v10615_v58  ;;  %v3653_v54 = vpop.f32.mrb[35].mxu0  ;;  %v4158_v18 = vpack.c.bf16 %v4133_v53, %v4132_v45  ;;  %v4135_v51 = vld [vmem:[#allocation2 + $0xb8] sm:$0xff]  ;;  %v4136_v13 = vld [vmem:[#allocation2 + $0xc0] sm:$0xff]  ;;  %v4137_v41 = vld [vmem:[#allocation2 + $0xc8] sm:$0xff] }
 0x373   : > { %v3776_v55 = vmax.f32 %v3740_v60, 0.0  ;;  %v3741_v9 = vadd.f32 %v10615_v58, %v3653_v54  ;;  %8609 = vmatmul.mubr.msk.bf16.gmra.mrb[24].mxu1 %vm535_vm2, %v4216_v49  ;;  %v4134_v60 = vld [vmem:[#allocation2 + $0xb0] sm:$0xff]  ;;  %v4160_v49 = vpack.c.bf16 %v4137_v41, %v4136_v13  ;;  %v4698_v36 = vld [vmem:[#allocation2 + $0x3a] sm:$0xff] }
 0x374   : > { %v4030_v29 = vmul.f32 %v3989_v39, %v3778_v44  ;;  %v3779_v32 = vmax.f32 %v3743_v23, 0.0  ;;  %8612 = vmatprep.mubr.msk.bf16.mxu1 %vm535_vm2, %v4217_v43  ;;  %v4159_v27 = vpack.c.bf16 %v4135_v51, %v4134_v60  ;;  %v4139_v43 = vld [vmem:[#allocation2 + $0xd8] sm:$0xff]  ;;  %v4140_v44 = vld [vmem:[#allocation2 + $0xe0] sm:$0xff]  ;;  %v4141_v23 = vld [vmem:[#allocation2 + $0xe8] sm:$0xff] }
 0x375   : > { %v4028_v21 = vmul.f32 %v3979_v61, %v3776_v55  ;;  %v3777_v19 = vmax.f32 %v3741_v9, 0.0  ;;  %v4129_v61 = vld [vmem:[#allocation2 + $0x88] sm:$0xff]  ;;  %v4138_v54 = vld [vmem:[#allocation2 + $0xd0] sm:$0xff]  ;;  %v4162_v55 = vpack.c.bf16 %v4141_v23, %v4140_v44 }
 0x376   : > { %4110 = vst.msk [vmem:[#allocation2 + $0x123] sm:$0xff] %vm535_vm2, %v4030_v29  ;;  %v4031_v34 = vmul.f32 %v3994_v4, %v3779_v32  ;;  %v4197_v57 = vld [vmem:[#allocation2 + $0xf1] sm:$0xff]  ;;  %v4156_v33 = vpack.c.bf16 %v4129_v61, %v4128_v63  ;;  %v4161_v39 = vpack.c.bf16 %v4139_v43, %v4138_v54 }
 0x377   : > { %4108 = vst.msk [vmem:[#allocation2 + $0x113] sm:$0xff] %vm535_vm2, %v4028_v21  ;;  %v4029_v59 = vmul.f32 %v3984_v56, %v3777_v19  ;;  %v4200_v22 = vld [vmem:[#allocation2 + $0x109] sm:$0xff]  ;;  %v4131_v56 = vld [vmem:[#allocation2 + $0x98] sm:$0xff] }
 0x378   : > { %4111 = vst.msk [vmem:[#allocation2 + $0x12b] sm:$0xff] %vm535_vm2, %v4031_v34  ;;  %v4198_v58 = vld [vmem:[#allocation2 + $0xf9] sm:$0xff]  ;;  %v4199_v15 = vld [vmem:[#allocation2 + $0x101] sm:$0xff]  ;;  %v4157_v16 = vpack.c.bf16 %v4131_v56, %v4130_v11  ;;  %v4142_v4 = vld [vmem:[#allocation2 + $0xf0] sm:$0xff] }
 0x379   : > { %4109 = vst.msk [vmem:[#allocation2 + $0x11b] sm:$0xff] %vm535_vm2, %v4029_v59  ;;  %v4218_v31 = vpack.c.bf16 %v4198_v58, %v4197_v57  ;;  %v4219_v50 = vpack.c.bf16 %v4200_v22, %v4199_v15  ;;  %v4143_v9 = vld [vmem:[#allocation2 + $0xf8] sm:$0xff]  ;;  %v4144_v29 = vld [vmem:[#allocation2 + $0x100] sm:$0xff]  ;;  %v4145_v32 = vld [vmem:[#allocation2 + $0x108] sm:$0xff] }
 0x37a   : > { %v4163_v21 = vpack.c.bf16 %v4143_v9, %v4142_v4  ;;  %v4164_v19 = vpack.c.bf16 %v4145_v32, %v4144_v29  ;;  %v4691_v34 = vld [vmem:[#allocation2 + $0x2] sm:$0xff]  ;;  %v4692_v59 = vld [vmem:[#allocation2 + $0xa] sm:$0xff]  ;;  %v4697_v6 = vld [vmem:[#allocation2 + $0x32] sm:$0xff] }
 0x37b   : > { %8613 = vmatmul.mubr.msk.bf16.gmra.mrb[28].mxu1 %vm535_vm2, %v4218_v31  ;;  %v4727_v58 = vpack.c.bf16 %v4692_v59, %v4691_v34  ;;  %v4694_v31 = vld [vmem:[#allocation2 + $0x1a] sm:$0xff]  ;;  %v4704_v28 = vld [vmem:[#allocation2 + $0x6a] sm:$0xff]  ;;  %v4701_v17 = vld [vmem:[#allocation2 + $0x52] sm:$0xff] }
 0x37c   : > { %8616 = vmatprep.mubr.msk.bf16.mxu1 %vm535_vm2, %v4219_v50  ;;  %v4695_v50 = vld [vmem:[#allocation2 + $0x22] sm:$0xff]  ;;  %v4708_v25 = vld [vmem:[#allocation2 + $0x8a] sm:$0xff]  ;;  %v4705_v35 = vld [vmem:[#allocation2 + $0x72] sm:$0xff] }
 0x37d   : > { %v4712_v7 = vld [vmem:[#allocation2 + $0xaa] sm:$0xff]  ;;  %v4709_v63 = vld [vmem:[#allocation2 + $0x92] sm:$0xff] }
 0x37e   : > { %v4201_v3 = vld [vmem:[#allocation2 + $0x111] sm:$0xff]  ;;  %v7734_v32 = vld [vmem:[%s11142_s4 + $0xa] sm:$0x3] }
 0x37f   : > { %v4146_v57 = vld [vmem:[#allocation2 + $0x110] sm:$0xff] }
 0x380   : > { %v4202_v37 = vld [vmem:[#allocation2 + $0x119] sm:$0xff]  ;;  %v4716_v56 = vld [vmem:[#allocation2 + $0xca] sm:$0xff]  ;;  %v5051_v4 = vld [vmem:[#allocation2 + $0x122] sm:$0xff] }
 0x381   : > { %v4220_v0 = vpack.c.bf16 %v4202_v37, %v4201_v3  ;;  %v4147_v22 = vld [vmem:[#allocation2 + $0x118] sm:$0xff]  ;;  %v10780_v3 = vpack.c.bf16 %v4694_v31, %v4693_v52  ;;  %v5128_v37 = vsel %vm590_vm0, %v10758_v24, 0  ;;  %v4720_v51 = vld [vmem:[#allocation2 + $0xea] sm:$0xff] }
 0x382   : > { %v4165_v15 = vpack.c.bf16 %v4147_v22, %v4146_v57  ;;  %v4713_v45 = vld [vmem:[#allocation2 + $0xb2] sm:$0xff]  ;;  %v4724_v43 = vld [vmem:[#allocation2 + $0x10a] sm:$0xff] }
 0x383   : > { %8617 = vmatmul.mubr.msk.bf16.gmra.mrb[32].mxu1 %vm535_vm2, %v4220_v0  ;;  %v10789_v0 = vld [vmem:[%s11142_s4 + $0x8] sm:$0x3]  ;;  %v4717_v13 = vld [vmem:[#allocation2 + $0xd2] sm:$0xff] }
 0x384   : > { %8622 = vmatprep.mubr.msk.bf16.mxu1 %vm535_vm2, %v4148_v1  ;;  %v10784_v1 = vpack.c.bf16 %v4696_v46, %v4695_v50  ;;  %v4721_v44 = vld [vmem:[#allocation2 + $0xf2] sm:$0xff]  ;;  %v5454_v29 = vsel %vm590_vm0, %v10789_v0, 0  ;;  %v5780_v50 = vsel %vm590_vm0, %v7734_v32, 0 }
 0x385   : > { %v5343_v59 = vld [vmem:[#allocation2 + $0x13] sm:$0xff]  ;;  %v5346_v57 = vld [vmem:[#allocation2 + $0x2b] sm:$0xff] }
 0x386   : > { %v5347_v46 = vld [vmem:[#allocation2 + $0x33] sm:$0xff] }
 0x38b   : > { %8623 = vmatmul.mubr.msk.bf16.vlgmr.msra.gmra.mrb[0].mxu1 %vm535_vm2, %v4149_v38  ;;  %v4730_v38 = vpack.c.bf16 %v4698_v36, %v4697_v6  ;;  %v5354_v6 = vld [vmem:[#allocation2 + $0x6b] sm:$0xff] }
 0x38c   : > { %8659 = vmatpush3.bf16.msra.mxu1 %v4802_v12  ;;  %8626 = vmatprep.mubr.msk.bf16.mxu1 %vm535_vm2, %v4150_v40  ;;  %v4731_v12 = vpack.c.bf16 %v4700_v10, %v4699_v8  ;;  %v4702_v40 = vld [vmem:[#allocation2 + $0x5a] sm:$0xff] }
 0x38d   : > { %9512 = vmatprep.subr.msk.bf16.mxu1 %vm590_vm0, %v10758_v24  ;;  %v4703_v24 = vld [vmem:[#allocation2 + $0x62] sm:$0xff]  ;;  %v4732_v62 = vpack.c.bf16 %v4702_v40, %v4701_v17  ;;  %v5351_v8 = vld [vmem:[#allocation2 + $0x53] sm:$0xff]  ;;  %v5358_v17 = vld [vmem:[#allocation2 + $0x8b] sm:$0xff] }
 0x38e   : > { %v4733_v20 = vpack.c.bf16 %v4704_v28, %v4703_v24  ;;  %v5355_v24 = vld [vmem:[#allocation2 + $0x73] sm:$0xff] }
 0x393   : > { %8627 = vmatmul.mubr.msk.bf16.gmra.mrb[4].mxu1 %vm535_vm2, %v4151_v14  ;;  %v4706_v14 = vld [vmem:[#allocation2 + $0x7a] sm:$0xff] }
 0x394   : > { %8630 = vmatprep.mubr.msk.bf16.mxu1 %vm535_vm2, %v4152_v26  ;;  %v4707_v26 = vld [vmem:[#allocation2 + $0x82] sm:$0xff]  ;;  %v4734_v42 = vpack.c.bf16 %v4706_v14, %v4705_v35  ;;  %v5362_v35 = vld [vmem:[#allocation2 + $0xab] sm:$0xff] }
 0x395   : > { %v4735_v47 = vpack.c.bf16 %v4708_v25, %v4707_v26  ;;  %v5359_v26 = vld [vmem:[#allocation2 + $0x93] sm:$0xff] }
 0x39b   : > { %8631 = vmatmul.mubr.msk.bf16.gmra.mrb[8].mxu1 %vm535_vm2, %v4153_v30  ;;  %v4710_v30 = vld [vmem:[#allocation2 + $0x9a] sm:$0xff] }
 0x39c   : > { %8634 = vmatprep.mubr.msk.bf16.mxu1 %vm535_vm2, %v4154_v48  ;;  %v4711_v48 = vld [vmem:[#allocation2 + $0xa2] sm:$0xff]  ;;  %v4736_v61 = vpack.c.bf16 %v4710_v30, %v4709_v63  ;;  %v5366_v63 = vld [vmem:[#allocation2 + $0xcb] sm:$0xff] }
 0x39d   : > { %v4737_v5 = vpack.c.bf16 %v4712_v7, %v4711_v48  ;;  %v5363_v48 = vld [vmem:[#allocation2 + $0xb3] sm:$0xff] }
 0x3a3   : > { %8635 = vmatmul.mubr.msk.bf16.gmra.mrb[12].mxu1 %vm535_vm2, %v4155_v2  ;;  %v4714_v2 = vld [vmem:[#allocation2 + $0xba] sm:$0xff] }
 0x3a4   : > { %8638 = vmatprep.mubr.msk.bf16.mxu1 %vm535_vm2, %v4156_v33  ;;  %v4715_v33 = vld [vmem:[#allocation2 + $0xc2] sm:$0xff]  ;;  %v4738_v53 = vpack.c.bf16 %v4714_v2, %v4713_v45  ;;  %v5370_v45 = vld [vmem:[#allocation2 + $0xeb] sm:$0xff] }
 0x3a5   : > { %v4739_v11 = vpack.c.bf16 %v4716_v56, %v4715_v33  ;;  %v5367_v33 = vld [vmem:[#allocation2 + $0xd3] sm:$0xff] }
 0x3ab   : > { %8639 = vmatmul.mubr.msk.bf16.gmra.mrb[16].mxu1 %vm535_vm2, %v4157_v16  ;;  %v4718_v16 = vld [vmem:[#allocation2 + $0xda] sm:$0xff] }
 0x3ac   : > { %8642 = vmatprep.mubr.msk.bf16.mxu1 %vm535_vm2, %v4158_v18  ;;  %v4719_v18 = vld [vmem:[#allocation2 + $0xe2] sm:$0xff]  ;;  %v4740_v41 = vpack.c.bf16 %v4718_v16, %v4717_v13  ;;  %v5374_v13 = vld [vmem:[#allocation2 + $0x10b] sm:$0xff] }
 0x3ad   : > { %v4741_v60 = vpack.c.bf16 %v4720_v51, %v4719_v18  ;;  %v5371_v18 = vld [vmem:[#allocation2 + $0xf3] sm:$0xff] }
 0x3b3   : > { %8643 = vmatmul.mubr.msk.bf16.gmra.mrb[20].mxu1 %vm535_vm2, %v4159_v27  ;;  %v4722_v27 = vld [vmem:[#allocation2 + $0xfa] sm:$0xff] }
 0x3b4   : > { %8646 = vmatprep.mubr.msk.bf16.mxu1 %vm535_vm2, %v4160_v49  ;;  %v4723_v49 = vld [vmem:[#allocation2 + $0x102] sm:$0xff]  ;;  %v4742_v23 = vpack.c.bf16 %v4722_v27, %v4721_v44  ;;  %v5378_v44 = vld [vmem:[#allocation2 + $0x12b] sm:$0xff] }
 0x3b5   : > { %v4743_v54 = vpack.c.bf16 %v4724_v43, %v4723_v49  ;;  %v5375_v49 = vld [vmem:[#allocation2 + $0x113] sm:$0xff] }
 0x3bb   : > { %8647 = vmatmul.mubr.msk.bf16.gmra.mrb[24].mxu1 %vm535_vm2, %v4161_v39  ;;  %v4726_v39 = vld [vmem:[#allocation2 + $0x11a] sm:$0xff] }
 0x3bc   : > { %8650 = vmatprep.mubr.msk.bf16.mxu1 %vm535_vm2, %v4162_v55  ;;  %v4725_v55 = vld [vmem:[#allocation2 + $0x112] sm:$0xff] }
 0x3bd   : > { %v4744_v9 = vpack.c.bf16 %v4726_v39, %v4725_v55  ;;  %v5377_v39 = vld [vmem:[#allocation2 + $0x123] sm:$0xff] }
 0x3be   : > { %v5396_v55 = vpack.c.bf16 %v5378_v44, %v5377_v39  ;;  %v6322_v44 = vld [vmem:[#allocation2 + $0x2d] sm:$0xff]  ;;  %v6323_v39 = vld [vmem:[#allocation2 + $0x35] sm:$0xff] }
 0x3c3   : > { %8651 = vmatmul.mubr.msk.bf16.gmra.mrb[28].mxu1 %vm535_vm2, %v4163_v21  ;;  %v5052_v21 = vld [vmem:[#allocation2 + $0x12a] sm:$0xff] }
 0x3c4   : > { %8654 = vmatprep.mubr.msk.bf16.mxu1 %vm535_vm2, %v4164_v19  ;;  %v5344_v19 = vld [vmem:[#allocation2 + $0x1b] sm:$0xff]  ;;  %v5070_v34 = vpack.c.bf16 %v5052_v21, %v5051_v4  ;;  %v5671_v21 = vld [vmem:[#allocation2 + $0x24] sm:$0xff] }
 0x3c5   : > { %v5379_v22 = vpack.c.bf16 %v5344_v19, %v5343_v59  ;;  %v5674_v4 = vld [vmem:[#allocation2 + $0x3c] sm:$0xff] }
 0x3cb   : > { %8655 = vmatmul.mubr.msk.bf16.gmra.mrb[32].mxu1 %vm535_vm2, %v4165_v15  ;;  %v5345_v15 = vld [vmem:[#allocation2 + $0x23] sm:$0xff] }
 0x3cc   : > { %8660 = vmatprep.mubr.msk.bf16.mxu1 %vm535_vm2, %v4727_v58  ;;  %v5348_v58 = vld [vmem:[#allocation2 + $0x3b] sm:$0xff]  ;;  %v5380_v31 = vpack.c.bf16 %v5346_v57, %v5345_v15  ;;  %v5676_v57 = vld [vmem:[#allocation2 + $0x4c] sm:$0xff] }
 0x3cd   : > { %v5381_v52 = vpack.c.bf16 %v5348_v58, %v5347_v46  ;;  %v5677_v58 = vld [vmem:[#allocation2 + $0x54] sm:$0xff]  ;;  %v5678_v15 = vld [vmem:[#allocation2 + $0x5c] sm:$0xff] }
 0x3ce   : > { %v5709_v46 = vpack.c.bf16 %v5678_v15, %v5677_v58  ;;  %v6331_v15 = vld [vmem:[#allocation2 + $0x75] sm:$0xff] }
 0x3d3   : > { %8661 = vmatmul.mubr.msk.bf16.vlgmr.msra.gmra.mrb[0].mxu1 %vm535_vm2, %v10780_v3 }
 0x3d4   : > { %8697 = vmatpush3.bf16.msra.mxu1 %v5128_v37  ;;  %8664 = vmatprep.mubr.msk.bf16.mxu1 %vm535_vm2, %v10784_v1  ;;  %v5350_v37 = vld [vmem:[#allocation2 + $0x4b] sm:$0xff] }
 0x3d5   : > { %9513 = vmatprep.subr.msk.bf16.mxu1 %vm590_vm0, %v10789_v0  ;;  %v5349_v0 = vld [vmem:[#allocation2 + $0x43] sm:$0xff] }
 0x3d6   : > { %v5382_v36 = vpack.c.bf16 %v5350_v37, %v5349_v0  ;;  %v5682_v37 = vld [vmem:[#allocation2 + $0x7c] sm:$0xff] }
 0x3db   : > { %8665 = vmatmul.mubr.msk.bf16.gmra.mrb[4].mxu1 %vm535_vm2, %v4730_v38 }
 0x3dc   : > { %8668 = vmatprep.mubr.msk.bf16.mxu1 %vm535_vm2, %v4731_v12 }
 0x3e3   : > { %8669 = vmatmul.mubr.msk.bf16.gmra.mrb[8].mxu1 %vm535_vm2, %v4732_v62 }
 0x3e4   : > { %8672 = vmatprep.mubr.msk.bf16.mxu1 %vm535_vm2, %v4733_v20 }
 0x3eb   : > { %8673 = vmatmul.mubr.msk.bf16.gmra.mrb[12].mxu1 %vm535_vm2, %v4734_v42 }
 0x3ec   : > { %8676 = vmatprep.mubr.msk.bf16.mxu1 %vm535_vm2, %v4735_v47 }
 0x3f3   : > { %8677 = vmatmul.mubr.msk.bf16.gmra.mrb[16].mxu1 %vm535_vm2, %v4736_v61 }
 0x3f4   : > { %8680 = vmatprep.mubr.msk.bf16.mxu1 %vm535_vm2, %v4737_v5 }
 0x3fb   : > { %8681 = vmatmul.mubr.msk.bf16.gmra.mrb[20].mxu1 %vm535_vm2, %v4738_v53 }
 0x3fc   : > { %8684 = vmatprep.mubr.msk.bf16.mxu1 %vm535_vm2, %v4739_v11 }
 0x403   : > { %8685 = vmatmul.mubr.msk.bf16.gmra.mrb[24].mxu1 %vm535_vm2, %v4740_v41 }
 0x404   : > { %8688 = vmatprep.mubr.msk.bf16.mxu1 %vm535_vm2, %v4741_v60 }
 0x40b   : > { %8689 = vmatmul.mubr.msk.bf16.gmra.mrb[28].mxu1 %vm535_vm2, %v4742_v23 }
 0x40c   : > { %8692 = vmatprep.mubr.msk.bf16.mxu1 %vm535_vm2, %v4743_v54 }
 0x413   : > { %8693 = vmatmul.mubr.msk.bf16.gmra.mrb[32].mxu1 %vm535_vm2, %v4744_v9 }
 0x414   : > { %8698 = vmatprep.mubr.msk.bf16.mxu1 %vm535_vm2, %v10780_v3  ;;  %v10843_v3 = vld [vmem:[%s11142_s4 + $0xc] sm:$0x3] }
 0x41b   : > { %8699 = vmatmul.mubr.msk.bf16.vlgmr.msra.gmra.mrb[0].mxu1 %vm535_vm2, %v10784_v1  ;;  %v5352_v1 = vld [vmem:[#allocation2 + $0x5b] sm:$0xff] }
 0x41c   : > { %8735 = vmatpush3.bf16.msra.mxu1 %v5454_v29  ;;  %8702 = vmatprep.mubr.msk.bf16.mxu1 %vm535_vm2, %v4730_v38  ;;  %v5383_v10 = vpack.c.bf16 %v5352_v1, %v5351_v8  ;;  %v5356_v38 = vld [vmem:[#allocation2 + $0x7b] sm:$0xff]  ;;  %v5672_v29 = vld [vmem:[#allocation2 + $0x2c] sm:$0xff]  ;;  %v5679_v1 = vld [vmem:[#allocation2 + $0x64] sm:$0xff] }
 0x41d   : > { %9514 = vmatprep.subr.msk.bf16.mxu1 %vm590_vm0, %v7734_v32  ;;  %v5385_v28 = vpack.c.bf16 %v5356_v38, %v5355_v24  ;;  %v5673_v32 = vld [vmem:[#allocation2 + $0x34] sm:$0xff]  ;;  %v10865_v19 = vpack.c.bf16 %v5672_v29, %v5671_v21  ;;  %v5684_v8 = vld [vmem:[#allocation2 + $0x8c] sm:$0xff]  ;;  %v5683_v38 = vld [vmem:[#allocation2 + $0x84] sm:$0xff] }
 0x41e   : > { %v10869_v59 = vpack.c.bf16 %v5674_v4, %v5673_v32  ;;  %v5688_v24 = vld [vmem:[#allocation2 + $0xac] sm:$0xff] }
 0x41f   : > { %v6325_v4 = vld [vmem:[#allocation2 + $0x45] sm:$0xff] }
 0x423   : > { %8703 = vmatmul.mubr.msk.bf16.gmra.mrb[4].mxu1 %vm535_vm2, %v4731_v12  ;;  %v5353_v12 = vld [vmem:[#allocation2 + $0x63] sm:$0xff] }
 0x424   : > { %8706 = vmatprep.mubr.msk.bf16.mxu1 %vm535_vm2, %v4732_v62  ;;  %v5384_v40 = vpack.c.bf16 %v5354_v6, %v5353_v12  ;;  %v5360_v62 = vld [vmem:[#allocation2 + $0x9b] sm:$0xff]  ;;  %v5712_v12 = vpack.c.bf16 %v5684_v8, %v5683_v38  ;;  %v6337_v8 = vld [vmem:[#allocation2 + $0xa5] sm:$0xff] }
 0x425   : > { %v5387_v25 = vpack.c.bf16 %v5360_v62, %v5359_v26  ;;  %v5686_v6 = vld [vmem:[#allocation2 + $0x9c] sm:$0xff]  ;;  %v5687_v62 = vld [vmem:[#allocation2 + $0xa4] sm:$0xff]  ;;  %v5692_v26 = vld [vmem:[#allocation2 + $0xcc] sm:$0xff] }
 0x426   : > { %v6340_v38 = vld [vmem:[#allocation2 + $0xbd] sm:$0xff] }
 0x42b   : > { %8707 = vmatmul.mubr.msk.bf16.gmra.mrb[8].mxu1 %vm535_vm2, %v4733_v20  ;;  %v5357_v20 = vld [vmem:[#allocation2 + $0x83] sm:$0xff] }
 0x42c   : > { %8710 = vmatprep.mubr.msk.bf16.mxu1 %vm535_vm2, %v4734_v42  ;;  %v5386_v14 = vpack.c.bf16 %v5358_v17, %v5357_v20  ;;  %v5364_v42 = vld [vmem:[#allocation2 + $0xbb] sm:$0xff]  ;;  %v5714_v20 = vpack.c.bf16 %v5688_v24, %v5687_v62  ;;  %v6341_v24 = vld [vmem:[#allocation2 + $0xc5] sm:$0xff] }
 0x42d   : > { %v5389_v7 = vpack.c.bf16 %v5364_v42, %v5363_v48  ;;  %v5690_v17 = vld [vmem:[#allocation2 + $0xbc] sm:$0xff]  ;;  %v5691_v42 = vld [vmem:[#allocation2 + $0xc4] sm:$0xff]  ;;  %v5696_v48 = vld [vmem:[#allocation2 + $0xec] sm:$0xff] }
 0x42e   : > { %v6344_v62 = vld [vmem:[#allocation2 + $0xdd] sm:$0xff] }
 0x433   : > { %8711 = vmatmul.mubr.msk.bf16.gmra.mrb[12].mxu1 %vm535_vm2, %v4735_v47  ;;  %v5361_v47 = vld [vmem:[#allocation2 + $0xa3] sm:$0xff] }
 0x434   : > { %8714 = vmatprep.mubr.msk.bf16.mxu1 %vm535_vm2, %v4736_v61  ;;  %v5388_v30 = vpack.c.bf16 %v5362_v35, %v5361_v47  ;;  %v5368_v61 = vld [vmem:[#allocation2 + $0xdb] sm:$0xff]  ;;  %v5716_v47 = vpack.c.bf16 %v5692_v26, %v5691_v42  ;;  %v6345_v26 = vld [vmem:[#allocation2 + $0xe5] sm:$0xff] }
 0x435   : > { %v5391_v56 = vpack.c.bf16 %v5368_v61, %v5367_v33  ;;  %v5694_v35 = vld [vmem:[#allocation2 + $0xdc] sm:$0xff]  ;;  %v5695_v61 = vld [vmem:[#allocation2 + $0xe4] sm:$0xff]  ;;  %v5700_v33 = vld [vmem:[#allocation2 + $0x10c] sm:$0xff] }
 0x436   : > { %v6348_v42 = vld [vmem:[#allocation2 + $0xfd] sm:$0xff] }
 0x43b   : > { %8715 = vmatmul.mubr.msk.bf16.gmra.mrb[16].mxu1 %vm535_vm2, %v4737_v5  ;;  %v5365_v5 = vld [vmem:[#allocation2 + $0xc3] sm:$0xff] }
 0x43c   : > { %8718 = vmatprep.mubr.msk.bf16.mxu1 %vm535_vm2, %v4738_v53  ;;  %v5390_v2 = vpack.c.bf16 %v5366_v63, %v5365_v5  ;;  %v5372_v53 = vld [vmem:[#allocation2 + $0xfb] sm:$0xff]  ;;  %v5718_v5 = vpack.c.bf16 %v5696_v48, %v5695_v61  ;;  %v6349_v48 = vld [vmem:[#allocation2 + $0x105] sm:$0xff] }
 0x43d   : > { %v5393_v51 = vpack.c.bf16 %v5372_v53, %v5371_v18  ;;  %v5698_v63 = vld [vmem:[#allocation2 + $0xfc] sm:$0xff]  ;;  %v5699_v53 = vld [vmem:[#allocation2 + $0x104] sm:$0xff] }
 0x43e   : > { %v5703_v18 = vld [vmem:[#allocation2 + $0x124] sm:$0xff] }
 0x43f   : > { %v6352_v61 = vld [vmem:[#allocation2 + $0x11d] sm:$0xff] }
 0x443   : > { %8719 = vmatmul.mubr.msk.bf16.gmra.mrb[20].mxu1 %vm535_vm2, %v4739_v11  ;;  %v5369_v11 = vld [vmem:[#allocation2 + $0xe3] sm:$0xff] }
 0x444   : > { %8722 = vmatprep.mubr.msk.bf16.mxu1 %vm535_vm2, %v4740_v41  ;;  %v5392_v16 = vpack.c.bf16 %v5370_v45, %v5369_v11  ;;  %v5376_v41 = vld [vmem:[#allocation2 + $0x11b] sm:$0xff]  ;;  %v5720_v11 = vpack.c.bf16 %v5700_v33, %v5699_v53 }
 0x445   : > { %v5395_v43 = vpack.c.bf16 %v5376_v41, %v5375_v49  ;;  %v5702_v45 = vld [vmem:[#allocation2 + $0x11c] sm:$0xff] }
 0x446   : > { %v6030_v49 = vld [vmem:[#allocation2 + $0x13c] sm:$0xff] }
 0x447   : > { %v6356_v53 = vld [vmem:[#allocation2 + $0x13d] sm:$0xff] }
 0x44b   : > { %8723 = vmatmul.mubr.msk.bf16.gmra.mrb[24].mxu1 %vm535_vm2, %v4741_v60  ;;  %v5373_v60 = vld [vmem:[#allocation2 + $0x103] sm:$0xff] }
 0x44c   : > { %8726 = vmatprep.mubr.msk.bf16.mxu1 %vm535_vm2, %v4742_v23  ;;  %v5394_v27 = vpack.c.bf16 %v5374_v13, %v5373_v60  ;;  %v5669_v23 = vld [vmem:[#allocation2 + $0x14] sm:$0xff]  ;;  %v7791_v60 = vld [vmem:[%s11142_s4 + $0x10] sm:$0x3] }
 0x44d   : > { %v6758_v32 = vsel %vm590_vm0, %v7791_v60, 0 }
 0x453   : > { %8727 = vmatmul.mubr.msk.bf16.gmra.mrb[28].mxu1 %vm535_vm2, %v4743_v54  ;;  %v5670_v54 = vld [vmem:[#allocation2 + $0x1c] sm:$0xff] }
 0x454   : > { %8730 = vmatprep.mubr.msk.bf16.mxu1 %vm535_vm2, %v4744_v9  ;;  %v5705_v9 = vpack.c.bf16 %v5670_v54, %v5669_v23  ;;  %v6321_v23 = vld [vmem:[#allocation2 + $0x25] sm:$0xff] }
 0x455   : > { %v6357_v54 = vpack.c.bf16 %v6322_v44, %v6321_v23  ;;  %v6653_v44 = vld [vmem:[#allocation2 + $0x56] sm:$0xff]  ;;  %v6654_v23 = vld [vmem:[#allocation2 + $0x5e] sm:$0xff] }
 0x45b   : > { %8731 = vmatmul.mubr.msk.bf16.gmra.mrb[32].mxu1 %vm535_vm2, %v5070_v34  ;;  %v6106_v34 = vsel %vm590_vm0, %v10843_v3, 0 }
 0x45c   : > { %8736 = vmatprep.mubr.msk.bf16.mxu1 %vm535_vm2, %v5379_v22  ;;  %v10874_v22 = vld [vmem:[%s11142_s4 + $0xe] sm:$0x3] }
 0x45d   : > { %v6432_v41 = vsel %vm590_vm0, %v10874_v22, 0 }
 0x463   : > { %8737 = vmatmul.mubr.msk.bf16.vlgmr.msra.gmra.mrb[0].mxu1 %vm535_vm2, %v5380_v31  ;;  %v5675_v31 = vld [vmem:[#allocation2 + $0x44] sm:$0xff] }
 0x464   : > { %8773 = vmatpush3.bf16.msra.mxu1 %v5780_v50  ;;  %8740 = vmatprep.mubr.msk.bf16.mxu1 %vm535_vm2, %v5381_v52  ;;  %v5708_v50 = vpack.c.bf16 %v5676_v57, %v5675_v31  ;;  %v5680_v52 = vld [vmem:[#allocation2 + $0x6c] sm:$0xff]  ;;  %v6332_v31 = vld [vmem:[#allocation2 + $0x7d] sm:$0xff] }
 0x465   : > { %9515 = vmatprep.subr.msk.bf16.mxu1 %vm590_vm0, %v10843_v3  ;;  %v5681_v3 = vld [vmem:[#allocation2 + $0x74] sm:$0xff]  ;;  %v5710_v0 = vpack.c.bf16 %v5680_v52, %v5679_v1  ;;  %v6329_v57 = vld [vmem:[#allocation2 + $0x65] sm:$0xff]  ;;  %v6336_v1 = vld [vmem:[#allocation2 + $0x9d] sm:$0xff] }
 0x466   : > { %v6333_v52 = vld [vmem:[#allocation2 + $0x85] sm:$0xff] }
 0x46b   : > { %8741 = vmatmul.mubr.msk.bf16.gmra.mrb[4].mxu1 %vm535_vm2, %v5382_v36  ;;  %v5711_v36 = vpack.c.bf16 %v5682_v37, %v5681_v3  ;;  %v6335_v37 = vld [vmem:[#allocation2 + $0x95] sm:$0xff] }
 0x46c   : > { %8744 = vmatprep.mubr.msk.bf16.mxu1 %vm535_vm2, %v5383_v10  ;;  %v5685_v10 = vld [vmem:[#allocation2 + $0x94] sm:$0xff] }
 0x473   : > { %8745 = vmatmul.mubr.msk.bf16.gmra.mrb[8].mxu1 %vm535_vm2, %v5384_v40  ;;  %v5713_v40 = vpack.c.bf16 %v5686_v6, %v5685_v10  ;;  %v6339_v6 = vld [vmem:[#allocation2 + $0xb5] sm:$0xff] }
 0x474   : > { %8748 = vmatprep.mubr.msk.bf16.mxu1 %vm535_vm2, %v5385_v28  ;;  %v5689_v28 = vld [vmem:[#allocation2 + $0xb4] sm:$0xff] }
 0x47b   : > { %8749 = vmatmul.mubr.msk.bf16.gmra.mrb[12].mxu1 %vm535_vm2, %v5386_v14  ;;  %v5715_v14 = vpack.c.bf16 %v5690_v17, %v5689_v28  ;;  %v6343_v17 = vld [vmem:[#allocation2 + $0xd5] sm:$0xff] }
 0x47c   : > { %8752 = vmatprep.mubr.msk.bf16.mxu1 %vm535_vm2, %v5387_v25  ;;  %v5693_v25 = vld [vmem:[#allocation2 + $0xd4] sm:$0xff] }
 0x483   : > { %8753 = vmatmul.mubr.msk.bf16.gmra.mrb[16].mxu1 %vm535_vm2, %v5388_v30  ;;  %v5717_v30 = vpack.c.bf16 %v5694_v35, %v5693_v25  ;;  %v6347_v35 = vld [vmem:[#allocation2 + $0xf5] sm:$0xff] }
 0x484   : > { %8756 = vmatprep.mubr.msk.bf16.mxu1 %vm535_vm2, %v5389_v7  ;;  %v5697_v7 = vld [vmem:[#allocation2 + $0xf4] sm:$0xff] }
 0x48b   : > { %8757 = vmatmul.mubr.msk.bf16.gmra.mrb[20].mxu1 %vm535_vm2, %v5390_v2  ;;  %v5719_v2 = vpack.c.bf16 %v5698_v63, %v5697_v7  ;;  %v6351_v63 = vld [vmem:[#allocation2 + $0x115] sm:$0xff] }
 0x48c   : > { %8760 = vmatprep.mubr.msk.bf16.mxu1 %vm535_vm2, %v5391_v56  ;;  %v5701_v56 = vld [vmem:[#allocation2 + $0x114] sm:$0xff]  ;;  %v6372_v33 = vpack.c.bf16 %v6352_v61, %v6351_v63  ;;  %v7016_v63 = vld [vmem:[%s9662_s30 + $0x8] sm:$0xe]  ;;  %v7017_v61 = vld [vmem:[%s9662_s30 + $0xc] sm:$0xf] }
 0x493   : > { %8761 = vmatmul.mubr.msk.bf16.gmra.mrb[24].mxu1 %vm535_vm2, %v5392_v16  ;;  %v5721_v16 = vpack.c.bf16 %v5702_v45, %v5701_v56  ;;  %v6355_v45 = vld [vmem:[#allocation2 + $0x135] sm:$0xff] }
 0x494   : > { %8764 = vmatprep.mubr.msk.bf16.mxu1 %vm535_vm2, %v5393_v51  ;;  %v5704_v51 = vld [vmem:[#allocation2 + $0x12c] sm:$0xff] }
 0x495   : > { %v5722_v13 = vpack.c.bf16 %v5704_v51, %v5703_v18  ;;  %v6647_v18 = vld [vmem:[#allocation2 + $0x26] sm:$0xff] }
 0x49b   : > { %8765 = vmatmul.mubr.msk.bf16.gmra.mrb[28].mxu1 %vm535_vm2, %v5394_v27  ;;  %v6029_v27 = vld [vmem:[#allocation2 + $0x134] sm:$0xff] }
 0x49c   : > { %8768 = vmatprep.mubr.msk.bf16.mxu1 %vm535_vm2, %v5395_v43  ;;  %v6048_v43 = vpack.c.bf16 %v6030_v49, %v6029_v27  ;;  %v6651_v49 = vld [vmem:[#allocation2 + $0x46] sm:$0xff] }
 0x4a3   : > { %8769 = vmatmul.mubr.msk.bf16.gmra.mrb[32].mxu1 %vm535_vm2, %v5396_v55  ;;  %v6324_v55 = vld [vmem:[#allocation2 + $0x3d] sm:$0xff] }
 0x4a4   : > { %8774 = vmatprep.mubr.msk.bf16.mxu1 %vm535_vm2, %v5705_v9  ;;  %v6326_v9 = vld [vmem:[#allocation2 + $0x4d] sm:$0xff]  ;;  %v6358_v29 = vpack.c.bf16 %v6324_v55, %v6323_v39  ;;  %v6686_v39 = vpack.c.bf16 %v6654_v23, %v6653_v44 }
 0x4a5   : > { %v6359_v21 = vpack.c.bf16 %v6326_v9, %v6325_v4  ;;  %v6655_v55 = vld [vmem:[#allocation2 + $0x66] sm:$0xff]  ;;  %v6660_v4 = vld [vmem:[#allocation2 + $0x8e] sm:$0xff] }
 0x4ab   : > { %8775 = vmatmul.mubr.msk.bf16.vlgmr.msra.gmra.mrb[0].mxu1 %vm535_vm2, %v10865_v19 }
 0x4ac   : > { %8811 = vmatpush3.bf16.msra.mxu1 %v6106_v34  ;;  %8778 = vmatprep.mubr.msk.bf16.mxu1 %vm535_vm2, %v10869_v59  ;;  %v6328_v34 = vld [vmem:[#allocation2 + $0x5d] sm:$0xff] }
 0x4ad   : > { %9516 = vmatprep.subr.msk.bf16.mxu1 %vm590_vm0, %v10874_v22 }
 0x4b3   : > { %8779 = vmatmul.mubr.msk.bf16.gmra.mrb[4].mxu1 %vm535_vm2, %v5708_v50 }
 0x4b4   : > { %8782 = vmatprep.mubr.msk.bf16.mxu1 %vm535_vm2, %v5709_v46 }
 0x4bb   : > { %8783 = vmatmul.mubr.msk.bf16.gmra.mrb[8].mxu1 %vm535_vm2, %v5710_v0 }
 0x4bc   : > { %8786 = vmatprep.mubr.msk.bf16.mxu1 %vm535_vm2, %v5711_v36 }
 0x4c3   : > { %8787 = vmatmul.mubr.msk.bf16.gmra.mrb[12].mxu1 %vm535_vm2, %v5712_v12 }
 0x4c4   : > { %8790 = vmatprep.mubr.msk.bf16.mxu1 %vm535_vm2, %v5713_v40 }
 0x4cb   : > { %8791 = vmatmul.mubr.msk.bf16.gmra.mrb[16].mxu1 %vm535_vm2, %v5714_v20 }
 0x4cc   : > { %8794 = vmatprep.mubr.msk.bf16.mxu1 %vm535_vm2, %v5715_v14 }
 0x4d3   : > { %8795 = vmatmul.mubr.msk.bf16.gmra.mrb[20].mxu1 %vm535_vm2, %v5716_v47 }
 0x4d4   : > { %8798 = vmatprep.mubr.msk.bf16.mxu1 %vm535_vm2, %v5717_v30 }
 0x4db   : > { %8799 = vmatmul.mubr.msk.bf16.gmra.mrb[24].mxu1 %vm535_vm2, %v5718_v5 }
 0x4dc   : > { %8802 = vmatprep.mubr.msk.bf16.mxu1 %vm535_vm2, %v5719_v2 }
 0x4e3   : > { %8803 = vmatmul.mubr.msk.bf16.gmra.mrb[28].mxu1 %vm535_vm2, %v5720_v11 }
 0x4e4   : > { %8806 = vmatprep.mubr.msk.bf16.mxu1 %vm535_vm2, %v5721_v16 }
 0x4eb   : > { %8807 = vmatmul.mubr.msk.bf16.gmra.mrb[32].mxu1 %vm535_vm2, %v5722_v13 }
 0x4ec   : > { %8812 = vmatprep.mubr.msk.bf16.mxu1 %vm535_vm2, %v10865_v19  ;;  %v6327_v19 = vld [vmem:[#allocation2 + $0x55] sm:$0xff] }
 0x4ed   : > { %v6360_v22 = vpack.c.bf16 %v6328_v34, %v6327_v19  ;;  %v6659_v19 = vld [vmem:[#allocation2 + $0x86] sm:$0xff] }
 0x4ee   : > { %v6689_v34 = vpack.c.bf16 %v6660_v4, %v6659_v19 }
 0x4f3   : > { %8813 = vmatmul.mubr.msk.bf16.vlgmr.msra.gmra.mrb[0].mxu1 %vm535_vm2, %v10869_v59  ;;  %v6330_v59 = vld [vmem:[#allocation2 + $0x6d] sm:$0xff] }
 0x4f4   : > { %8849 = vmatpush3.bf16.msra.mxu1 %v6432_v41  ;;  %8816 = vmatprep.mubr.msk.bf16.mxu1 %vm535_vm2, %v5708_v50  ;;  %v6361_v58 = vpack.c.bf16 %v6330_v59, %v6329_v57  ;;  %v6334_v50 = vld [vmem:[#allocation2 + $0x8d] sm:$0xff]  ;;  %v6650_v41 = vld [vmem:[#allocation2 + $0x3e] sm:$0xff]  ;;  %v6661_v59 = vld [vmem:[#allocation2 + $0x96] sm:$0xff] }
 0x4f5   : > { %9517 = vmatprep.subr.msk.bf16.mxu1 %vm590_vm0, %v7791_v60  ;;  %v6363_v3 = vpack.c.bf16 %v6334_v50, %v6333_v52  ;;  %v6652_v60 = vld [vmem:[#allocation2 + $0x4e] sm:$0xff]  ;;  %v6665_v50 = vld [vmem:[#allocation2 + $0xb6] sm:$0xff] }
 0x4f6   : > { %v6664_v57 = vld [vmem:[#allocation2 + $0xae] sm:$0xff] }
 0x4f7   : > { %v6668_v52 = vld [vmem:[#allocation2 + $0xce] sm:$0xff] }
 0x4fb   : > { %8817 = vmatmul.mubr.msk.bf16.gmra.mrb[4].mxu1 %vm535_vm2, %v5709_v46  ;;  %v6362_v46 = vpack.c.bf16 %v6332_v31, %v6331_v15  ;;  %v6663_v15 = vld [vmem:[#allocation2 + $0xa6] sm:$0xff] }
 0x4fc   : > { %8820 = vmatprep.mubr.msk.bf16.mxu1 %vm535_vm2, %v5710_v0  ;;  %v6338_v0 = vld [vmem:[#allocation2 + $0xad] sm:$0xff]  ;;  %v6691_v31 = vpack.c.bf16 %v6664_v57, %v6663_v15 }
 0x4fd   : > { %v6365_v10 = vpack.c.bf16 %v6338_v0, %v6337_v8  ;;  %v6669_v0 = vld [vmem:[#allocation2 + $0xd6] sm:$0xff]  ;;  %v6672_v8 = vld [vmem:[#allocation2 + $0xee] sm:$0xff] }
 0x503   : > { %8821 = vmatmul.mubr.msk.bf16.gmra.mrb[8].mxu1 %vm535_vm2, %v5711_v36  ;;  %v6364_v36 = vpack.c.bf16 %v6336_v1, %v6335_v37  ;;  %v6667_v37 = vld [vmem:[#allocation2 + $0xc6] sm:$0xff] }
 0x504   : > { %8824 = vmatprep.mubr.msk.bf16.mxu1 %vm535_vm2, %v5712_v12  ;;  %v6342_v12 = vld [vmem:[#allocation2 + $0xcd] sm:$0xff]  ;;  %v6693_v1 = vpack.c.bf16 %v6668_v52, %v6667_v37 }
 0x505   : > { %v6367_v28 = vpack.c.bf16 %v6342_v12, %v6341_v24  ;;  %v6673_v12 = vld [vmem:[#allocation2 + $0xf6] sm:$0xff]  ;;  %v6676_v24 = vld [vmem:[#allocation2 + $0x10e] sm:$0xff] }
 0x50b   : > { %8825 = vmatmul.mubr.msk.bf16.gmra.mrb[12].mxu1 %vm535_vm2, %v5713_v40  ;;  %v6366_v40 = vpack.c.bf16 %v6340_v38, %v6339_v6  ;;  %v6671_v6 = vld [vmem:[#allocation2 + $0xe6] sm:$0xff] }
 0x50c   : > { %8828 = vmatprep.mubr.msk.bf16.mxu1 %vm535_vm2, %v5714_v20  ;;  %v6346_v20 = vld [vmem:[#allocation2 + $0xed] sm:$0xff]  ;;  %v6695_v38 = vpack.c.bf16 %v6672_v8, %v6671_v6  ;;  %v7886_v8 = vld [vmem:[%s9662_s30 + $0x38] sm:$0xff]  }
 0x50d   : > { %v6369_v25 = vpack.c.bf16 %v6346_v20, %v6345_v26  ;;  %v6677_v20 = vld [vmem:[#allocation2 + $0x116] sm:$0xff]  ;;  %v6679_v26 = vld [vmem:[#allocation2 + $0x126] sm:$0xff] }
 0x513   : > { %8829 = vmatmul.mubr.msk.bf16.gmra.mrb[16].mxu1 %vm535_vm2, %v5715_v14  ;;  %v6368_v14 = vpack.c.bf16 %v6344_v62, %v6343_v17  ;;  %v6675_v17 = vld [vmem:[#allocation2 + $0x106] sm:$0xff] }
 0x514   : > { %8832 = vmatprep.mubr.msk.bf16.mxu1 %vm535_vm2, %v5716_v47  ;;  %v6350_v47 = vld [vmem:[#allocation2 + $0x10d] sm:$0xff]  ;;  %v6697_v62 = vpack.c.bf16 %v6676_v24, %v6675_v17 }
 0x515   : > { %v6371_v7 = vpack.c.bf16 %v6350_v47, %v6349_v48  ;;  %v6681_v47 = vld [vmem:[#allocation2 + $0x136] sm:$0xff] }
 0x51b   : > { %8833 = vmatmul.mubr.msk.bf16.gmra.mrb[20].mxu1 %vm535_vm2, %v5717_v30  ;;  %v6370_v30 = vpack.c.bf16 %v6348_v42, %v6347_v35 }
 0x51c   : > { %8836 = vmatprep.mubr.msk.bf16.mxu1 %vm535_vm2, %v5718_v5  ;;  %v6353_v5 = vld [vmem:[#allocation2 + $0x125] sm:$0xff] }
 0x523   : > { %8837 = vmatmul.mubr.msk.bf16.gmra.mrb[24].mxu1 %vm535_vm2, %v5719_v2  ;;  %v6354_v2 = vld [vmem:[#allocation2 + $0x12d] sm:$0xff] }
 0x524   : > { %8840 = vmatprep.mubr.msk.bf16.mxu1 %vm535_vm2, %v5720_v11  ;;  %v6373_v56 = vpack.c.bf16 %v6354_v2, %v6353_v5  ;;  %v6374_v11 = vpack.c.bf16 %v6356_v53, %v6355_v45  ;;  %v7882_v5 = vld [vmem:[%s9662_s30 + $0x18] sm:$0xff]   ;;  %v7054_v45 = vunpack.c.l.bf16 %v7017_v61 }
 0x525   : > { %v7819_v53 = vunpack.c.l.bf16 %v7882_v5 }
 0x52b   : > { %8841 = vmatmul.mubr.msk.bf16.gmra.mrb[28].mxu1 %vm535_vm2, %v5721_v16  ;;  %v6648_v16 = vld [vmem:[#allocation2 + $0x2e] sm:$0xff] }
 0x52c   : > { %8844 = vmatprep.mubr.msk.bf16.mxu1 %vm535_vm2, %v5722_v13  ;;  %v6683_v51 = vpack.c.bf16 %v6648_v16, %v6647_v18  ;;  %v6649_v13 = vld [vmem:[#allocation2 + $0x36] sm:$0xff] }
 0x52d   : > { %v6684_v27 = vpack.c.bf16 %v6650_v41, %v6649_v13  ;;  %v7883_v13 = vld [vmem:[%s9662_s30 + $0x20] sm:$0xff]  }
 0x52e   : > { %v10968_v41 = vld [vmem:[%s11143_s5] ss:$0 sm:$0xff]  ;;  %v7823_v44 = vunpack.c.l.bf16 %v7883_v13  ;;  %v7824_v23 = vunpack.c.h.bf16 %v7883_v13 }
 0x530   : > { %v7139_v15 = vrot.slane %v7823_v44, 3 }
 0x533   : > { %8845 = vmatmul.mubr.msk.bf16.gmra.mrb[32].mxu1 %vm535_vm2, %v6048_v43  ;;  %v6685_v43 = vpack.c.bf16 %v6652_v60, %v6651_v49  ;;  %v7135_v60 = vrot.slane %v7819_v53, 3 }
 0x534   : > { %8850 = vmatprep.mubr.msk.bf16.mxu1 %vm535_vm2, %v6357_v54  ;;  %v6656_v54 = vld [vmem:[#allocation2 + $0x6e] sm:$0xff] }
 0x535   : > { %v6687_v9 = vpack.c.bf16 %v6656_v54, %v6655_v55 }
 0x53b   : > { %8851 = vmatmul.mubr.msk.bf16.vlgmr.msra.gmra.mrb[0].mxu1 %vm535_vm2, %v6358_v29  ;;  %v6657_v29 = vld [vmem:[#allocation2 + $0x76] sm:$0xff] }
 0x53c   : > { %8887 = vmatpush3.bf16.msra.mxu1 %v6758_v32  ;;  %8854 = vmatprep.mubr.msk.bf16.mxu1 %vm535_vm2, %v6359_v21  ;;  %v6658_v32 = vld [vmem:[#allocation2 + $0x7e] sm:$0xff] }
 0x53d   : > { %v6688_v21 = vpack.c.bf16 %v6658_v32, %v6657_v29 }
 0x543   : > { %8855 = vmatmul.mubr.msk.bf16.gmra.mrb[4].mxu1 %vm535_vm2, %v6360_v22  ;;  %v6662_v22 = vld [vmem:[#allocation2 + $0x9e] sm:$0xff] }
 0x544   : > { %8858 = vmatprep.mubr.msk.bf16.mxu1 %vm535_vm2, %v6361_v58  ;;  %v6690_v58 = vpack.c.bf16 %v6662_v22, %v6661_v59 }
 0x54b   : > { %8859 = vmatmul.mubr.msk.bf16.gmra.mrb[8].mxu1 %vm535_vm2, %v6362_v46  ;;  %v6666_v46 = vld [vmem:[#allocation2 + $0xbe] sm:$0xff] }
 0x54c   : > { %8862 = vmatprep.mubr.msk.bf16.mxu1 %vm535_vm2, %v6363_v3  ;;  %v6692_v3 = vpack.c.bf16 %v6666_v46, %v6665_v50 }
 0x553   : > { %8863 = vmatmul.mubr.msk.bf16.gmra.mrb[12].mxu1 %vm535_vm2, %v6364_v36  ;;  %v6670_v36 = vld [vmem:[#allocation2 + $0xde] sm:$0xff] }
 0x554   : > { %8866 = vmatprep.mubr.msk.bf16.mxu1 %vm535_vm2, %v6365_v10  ;;  %v6694_v10 = vpack.c.bf16 %v6670_v36, %v6669_v0 }
 0x55b   : > { %8867 = vmatmul.mubr.msk.bf16.gmra.mrb[16].mxu1 %vm535_vm2, %v6366_v40  ;;  %v6674_v40 = vld [vmem:[#allocation2 + $0xfe] sm:$0xff] }
 0x55c   : > { %8870 = vmatprep.mubr.msk.bf16.mxu1 %vm535_vm2, %v6367_v28  ;;  %v6696_v28 = vpack.c.bf16 %v6674_v40, %v6673_v12 }
 0x563   : > { %8871 = vmatmul.mubr.msk.bf16.gmra.mrb[20].mxu1 %vm535_vm2, %v6368_v14  ;;  %v6678_v14 = vld [vmem:[#allocation2 + $0x11e] sm:$0xff] }
 0x564   : > { %8874 = vmatprep.mubr.msk.bf16.mxu1 %vm535_vm2, %v6369_v25  ;;  %v6680_v25 = vld [vmem:[#allocation2 + $0x12e] sm:$0xff]  ;;  %v6698_v35 = vpack.c.bf16 %v6678_v14, %v6677_v20 }
 0x565   : > { %v6699_v42 = vpack.c.bf16 %v6680_v25, %v6679_v26  ;;  %v7835_v25 = vunpack.c.l.bf16 %v7886_v8 }
 0x56b   : > { %8875 = vmatmul.mubr.msk.bf16.gmra.mrb[24].mxu1 %vm535_vm2, %v6370_v30  ;;  %v6682_v30 = vld [vmem:[#allocation2 + $0x13e] sm:$0xff] }
 0x56c   : > { %8878 = vmatprep.mubr.msk.bf16.mxu1 %vm535_vm2, %v6371_v7  ;;  %v6700_v48 = vpack.c.bf16 %v6682_v30, %v6681_v47  ;;  %v7881_v7 = vld [vmem:[%s9662_s30 + $0x10] sm:$0xff]  }
 0x56d   : > { %v7815_v2 = vunpack.c.l.bf16 %v7881_v7 }
 0x573   : > { %8879 = vmatmul.mubr.msk.bf16.gmra.mrb[28].mxu1 %vm535_vm2, %v6372_v33  ;;  %v7816_v33 = vunpack.c.h.bf16 %v7881_v7 }
 0x574   : > { %8882 = vmatprep.mubr.msk.bf16.mxu1 %vm535_vm2, %v6373_v56  ;;  %v7053_v56 = vunpack.c.l.bf16 %v7016_v63 }
 0x575   : > { %v7133_v16 = vrot.slane %v7816_v33, 3 }
 0x576   : > { %v7128_v18 = vrot.slane %v7053_v56, 3  ;;  %v7887_v56 = vld [vmem:[%s9662_s30 + $0x40] sm:$0xff]  }
 0x577   : > { %v7136_v4 = vsel %vm3393_vm7, %v7133_v16, %v7135_v60 }
 0x57b   : > { %8883 = vmatmul.mubr.msk.bf16.gmra.mrb[32].mxu1 %vm535_vm2, %v6374_v11  ;;  %v7131_v11 = vrot.slane %v7815_v2, 3 }
 0x57c   : > { %8888 = vmatprep.mubr.msk.bf16.mxu1 %vm535_vm2, %v6683_v51  ;;  %v7129_v51 = vrot.slane %v7054_v45, 3 }
 0x57e   : > { %v7130_v55 = vsel %vm3393_vm7, %v7128_v18, %v7129_v51  ;;  %v7132_v22 = vsel %vm3393_vm7, %v7129_v51, %v7131_v11  ;;  %v7888_v18 = vld [vmem:[%s9662_s30 + $0x48] sm:$0xff]  }
 0x583   : > { %8889 = vmatmul.mubr.msk.bf16.vlgmr.msra.gmra.mrb[0].mxu1 %vm535_vm2, %v6684_v27  ;;  %v7884_v27 = vld [vmem:[%s9662_s30 + $0x28] sm:$0xff]  }
 0x584   : > { %8892 = vmatprep.mubr.msk.bf16.mxu1 %vm535_vm2, %v6685_v43  ;;  %v7134_v43 = vsel %vm3393_vm7, %v7131_v11, %v7133_v16  ;;  %v7151_v11 = vrot.slane %v7835_v25, 3 }
 0x58b   : > { %8893 = vmatmul.mubr.msk.bf16.gmra.mrb[4].mxu1 %vm535_vm2, %v6686_v39 }
 0x58c   : > { %8896 = vmatprep.mubr.msk.bf16.mxu1 %vm535_vm2, %v6687_v9  ;;  %v7820_v9 = vunpack.c.h.bf16 %v7882_v5 }
 0x58e   : > { %v7137_v52 = vrot.slane %v7820_v9, 3 }
 0x590   : > { %v7138_v17 = vsel %vm3393_vm7, %v7135_v60, %v7137_v52  ;;  %v7140_v30 = vsel %vm3393_vm7, %v7137_v52, %v7139_v15 }
 0x593   : > { %8897 = vmatmul.mubr.msk.bf16.gmra.mrb[8].mxu1 %vm535_vm2, %v6688_v21  ;;  %v7827_v21 = vunpack.c.l.bf16 %v7884_v27 }
 0x594   : > { %8900 = vmatprep.mubr.msk.bf16.mxu1 %vm535_vm2, %v6689_v34 }
 0x595   : > { %v7143_v0 = vrot.slane %v7827_v21, 3 }
 0x59b   : > { %8901 = vmatmul.mubr.msk.bf16.gmra.mrb[12].mxu1 %vm535_vm2, %v6690_v58 }
 0x59c   : > { %8904 = vmatprep.mubr.msk.bf16.mxu1 %vm535_vm2, %v6691_v31  ;;  %v7141_v31 = vrot.slane %v7824_v23, 3 }
 0x59e   : > { %v7144_v26 = vsel %vm3393_vm7, %v7141_v31, %v7143_v0 }
 0x5a3   : > { %8905 = vmatmul.mubr.msk.bf16.gmra.mrb[16].mxu1 %vm535_vm2, %v6692_v3  ;;  %v7885_v3 = vld [vmem:[%s9662_s30 + $0x30] sm:$0xff]  }
 0x5a4   : > { %8908 = vmatprep.mubr.msk.bf16.mxu1 %vm535_vm2, %v6693_v1  ;;  %v7831_v12 = vunpack.c.l.bf16 %v7885_v3  ;;  %v7832_v40 = vunpack.c.h.bf16 %v7885_v3 }
 0x5a6   : > { %v7147_v63 = vrot.slane %v7831_v12, 3  ;;  %v7149_v61 = vrot.slane %v7832_v40, 3 }
 0x5a8   : > { %v7150_v60 = vsel %vm3393_vm7, %v7147_v63, %v7149_v61  ;;  %v7152_v9 = vsel %vm3393_vm7, %v7149_v61, %v7151_v11 }
 0x5ab   : > { %8909 = vmatmul.mubr.msk.bf16.gmra.mrb[20].mxu1 %vm535_vm2, %v6694_v10 }
 0x5ac   : > { %8912 = vmatprep.mubr.msk.bf16.mxu1 %vm535_vm2, %v6695_v38  ;;  %v7142_v38 = vsel %vm3393_vm7, %v7139_v15, %v7141_v31 }
 0x5b3   : > { %8913 = vmatmul.mubr.msk.bf16.gmra.mrb[24].mxu1 %vm535_vm2, %v6696_v28 }
 0x5b4   : > { %8916 = vmatprep.mubr.msk.bf16.mxu1 %vm535_vm2, %v6697_v62  ;;  %v7828_v62 = vunpack.c.h.bf16 %v7884_v27  ;;  %v7839_v27 = vunpack.c.l.bf16 %v7887_v56 }
 0x5b6   : > { %v7145_v33 = vrot.slane %v7828_v62, 3 }
 0x5b8   : > { %v7146_v23 = vsel %vm3393_vm7, %v7143_v0, %v7145_v33 }
 0x5bb   : > { %8917 = vmatmul.mubr.msk.bf16.gmra.mrb[28].mxu1 %vm535_vm2, %v6698_v35 }
 0x5bc   : > { %8920 = vmatprep.mubr.msk.bf16.mxu1 %vm535_vm2, %v6699_v42 }
 0x5c3   : > { %8921 = vmatmul.mubr.msk.bf16.gmra.mrb[32].mxu1 %vm535_vm2, %v6700_v48 }
 0x656   : > { %v8890_v49 = vpop.f32.mrb[0].mxu1 }
 0x657   : > { %v6982_v54 = vadd.f32 %v8890_v49, %v10968_v41  ;;  %v6794_v39 = vpop.f32.mrb[1].mxu1  ;;  %v7840_v49 = vunpack.c.h.bf16 %v7887_v56 }
 0x658   : > { %v6980_v29 = vadd.f32 %v10968_v41, %v6794_v39  ;;  %v8891_v32 = vpop.f32.mrb[2].mxu1 }
 0x659   : > { %v7239_v19 = vadd.f32 %v7134_v43, %v6982_v54  ;;  %v6983_v34 = vadd.f32 %v8891_v32, %v10968_v41  ;;  %v6797_v59 = vpop.f32.mrb[3].mxu1  ;;  %v7836_v54 = vunpack.c.h.bf16 %v7886_v8 }
 0x65a   : > { %v7237_v57 = vadd.f32 %v7130_v55, %v6980_v29  ;;  %v6981_v58 = vadd.f32 %v10968_v41, %v6797_v59  ;;  %v7843_v29 = vunpack.c.l.bf16 %v7888_v18 }
 0x65b   : > { %v7275_v50 = vmax.f32 %v7239_v19, 0.0  ;;  %v7240_v46 = vadd.f32 %v7136_v4, %v6983_v34  ;;  %v7148_v19 = vsel %vm3393_vm7, %v7145_v33, %v7147_v63  ;;  %v7153_v31 = vrot.slane %v7836_v54, 3 }
 0x65c   : > { %v7273_v37 = vmax.f32 %v7237_v57, 0.0  ;;  %v7238_v1 = vadd.f32 %v7132_v22, %v6981_v58  ;;  %v7155_v22 = vrot.slane %v7839_v27, 3  ;;  %v7157_v57 = vrot.slane %v7840_v49, 3 }
 0x65d   : > { %7311 = vst.msk [vmem:[%s10982_s12 + $0x10] sm:$0xff] %vm535_vm2, %v7275_v50  ;;  %v7276_v36 = vmax.f32 %v7240_v46, 0.0  ;;  %v7889_v50 = vld [vmem:[%s9662_s30 + $0x50] sm:$0xff]   ;;  %v7159_v3 = vrot.slane %v7843_v29, 3  ;;  %v7154_v40 = vsel %vm3393_vm7, %v7151_v11, %v7153_v31 }
 0x65e   : > { %7309 = vst.msk [vmem:[%s10982_s12] sm:$0xff] %vm535_vm2, %v7273_v37  ;;  %v7274_v10 = vmax.f32 %v7238_v1, 0.0  ;;  %v8894_v6 = vpop.f32.mrb[4].mxu1  ;;  %v7890_v1 = vld [vmem:[%s9662_s30 + $0x58] sm:$0xff]   ;;  %v7158_v8 = vsel %vm3393_vm7, %v7155_v22, %v7157_v57 }
 0x65f   : > { %7312 = vst.msk [vmem:[%s10982_s12 + $0x18] sm:$0xff] %vm535_vm2, %v7276_v36  ;;  %v6986_v24 = vadd.f32 %v8894_v6, %v10968_v41  ;;  %v6810_v28 = vpop.f32.mrb[5].mxu1  ;;  %v7848_v6 = vunpack.c.h.bf16 %v7889_v50  ;;  %v7160_v62 = vsel %vm3393_vm7, %v7157_v57, %v7159_v3 }
 0x660   : > { %7310 = vst.msk [vmem:[%s10982_s12 + $0x8] sm:$0xff] %vm535_vm2, %v7274_v10  ;;  %v6984_v20 = vadd.f32 %v10968_v41, %v6810_v28  ;;  %v8895_v14 = vpop.f32.mrb[6].mxu1  ;;  %v7847_v10 = vunpack.c.l.bf16 %v7889_v50 }
 0x661   : > { %v7243_v35 = vadd.f32 %v7142_v38, %v6986_v24  ;;  %v6987_v42 = vadd.f32 %v8895_v14, %v10968_v41  ;;  %v6813_v47 = vpop.f32.mrb[7].mxu1  ;;  %v7844_v24 = vunpack.c.h.bf16 %v7888_v18 }
 0x662   : > { %v7241_v48 = vadd.f32 %v7138_v17, %v6984_v20  ;;  %v6985_v7 = vadd.f32 %v10968_v41, %v6813_v47  ;;  %v7851_v20 = vunpack.c.l.bf16 %v7890_v1 }
 0x663   : > { %v7279_v5 = vmax.f32 %v7243_v35, 0.0  ;;  %v7244_v2 = vadd.f32 %v7144_v26, %v6987_v42  ;;  %v7156_v35 = vsel %vm3393_vm7, %v7153_v31, %v7155_v22  ;;  %v7161_v61 = vrot.slane %v7844_v24, 3 }
 0x664   : > { %v7277_v45 = vmax.f32 %v7241_v48, 0.0  ;;  %v7242_v53 = vadd.f32 %v7140_v30, %v6985_v7  ;;  %v7163_v30 = vrot.slane %v7847_v10, 3  ;;  %v7165_v48 = vrot.slane %v7848_v6, 3 }
 0x665   : > { %7315 = vst.msk [vmem:[%s10982_s12 + $0x30] sm:$0xff] %vm535_vm2, %v7279_v5  ;;  %v7280_v16 = vmax.f32 %v7244_v2, 0.0  ;;  %v7891_v5 = vld [vmem:[%s9662_s30 + $0x60] sm:$0xff]   ;;  %v7167_v56 = vrot.slane %v7851_v20, 3  ;;  %v7162_v49 = vsel %vm3393_vm7, %v7159_v3, %v7161_v61 }
 0x666   : > { %7313 = vst.msk [vmem:[%s10982_s12 + $0x20] sm:$0xff] %vm535_vm2, %v7277_v45  ;;  %v7278_v51 = vmax.f32 %v7242_v53, 0.0  ;;  %v8898_v13 = vpop.f32.mrb[8].mxu1  ;;  %v7892_v53 = vld [vmem:[%s9662_s30 + $0x68] sm:$0xff]   ;;  %v7166_v18 = vsel %vm3393_vm7, %v7163_v30, %v7165_v48 }
 0x667   : > { %7316 = vst.msk [vmem:[%s10982_s12 + $0x38] sm:$0xff] %vm535_vm2, %v7280_v16  ;;  %v6990_v43 = vadd.f32 %v8898_v13, %v10968_v41  ;;  %v6826_v44 = vpop.f32.mrb[9].mxu1  ;;  %v7856_v13 = vunpack.c.h.bf16 %v7891_v5  ;;  %v7168_v54 = vsel %vm3393_vm7, %v7165_v48, %v7167_v56 }
 0x668   : > { %7314 = vst.msk [vmem:[%s10982_s12 + $0x28] sm:$0xff] %vm535_vm2, %v7278_v51  ;;  %v6988_v39 = vadd.f32 %v10968_v41, %v6826_v44  ;;  %v8899_v55 = vpop.f32.mrb[10].mxu1  ;;  %v7855_v51 = vunpack.c.l.bf16 %v7891_v5 }
 0x669   : > { %v7247_v32 = vadd.f32 %v7150_v60, %v6990_v43  ;;  %v6991_v4 = vadd.f32 %v8899_v55, %v10968_v41  ;;  %v6829_v21 = vpop.f32.mrb[11].mxu1  ;;  %v7852_v43 = vunpack.c.h.bf16 %v7890_v1 }
 0x66a   : > { %v7245_v34 = vadd.f32 %v7146_v23, %v6988_v39  ;;  %v6989_v59 = vadd.f32 %v10968_v41, %v6829_v21  ;;  %v7859_v39 = vunpack.c.l.bf16 %v7892_v53 }
 0x66b   : > { %v7283_v58 = vmax.f32 %v7247_v32, 0.0  ;;  %v7248_v15 = vadd.f32 %v7152_v9, %v6991_v4  ;;  %v7164_v32 = vsel %vm3393_vm7, %v7161_v61, %v7163_v30  ;;  %v7169_v57 = vrot.slane %v7852_v43, 3 }
 0x66c   : > { %v7281_v46 = vmax.f32 %v7245_v34, 0.0  ;;  %v7246_v52 = vadd.f32 %v7148_v19, %v6989_v59  ;;  %v7171_v19 = vrot.slane %v7855_v51, 3  ;;  %v7173_v34 = vrot.slane %v7856_v13, 3 }
 0x66d   : > { %7319 = vst.msk [vmem:[%s10982_s12 + $0x50] sm:$0xff] %vm535_vm2, %v7283_v58  ;;  %v7284_v37 = vmax.f32 %v7248_v15, 0.0  ;;  %v7893_v58 = vld [vmem:[%s9662_s30 + $0x70] sm:$0xff]   ;;  %v7175_v50 = vrot.slane %v7859_v39, 3  ;;  %v7170_v6 = vsel %vm3393_vm7, %v7167_v56, %v7169_v57 }
 0x66e   : > { %7317 = vst.msk [vmem:[%s10982_s12 + $0x40] sm:$0xff] %vm535_vm2, %v7281_v46  ;;  %v7282_v0 = vmax.f32 %v7246_v52, 0.0  ;;  %v8902_v36 = vpop.f32.mrb[12].mxu1  ;;  %v7894_v52 = vld [vmem:[%s9662_s30 + $0x78] sm:$0xff]   ;;  %v7174_v1 = vsel %vm3393_vm7, %v7171_v19, %v7173_v34 }
 0x66f   : > { %7320 = vst.msk [vmem:[%s10982_s12 + $0x58] sm:$0xff] %vm535_vm2, %v7284_v37  ;;  %v6994_v38 = vadd.f32 %v8902_v36, %v10968_v41  ;;  %v6842_v12 = vpop.f32.mrb[13].mxu1  ;;  %v7864_v36 = vunpack.c.h.bf16 %v7893_v58  ;;  %v7176_v24 = vsel %vm3393_vm7, %v7173_v34, %v7175_v50 }
 0x670   : > { %7318 = vst.msk [vmem:[%s10982_s12 + $0x48] sm:$0xff] %vm535_vm2, %v7282_v0  ;;  %v6992_v28 = vadd.f32 %v10968_v41, %v6842_v12  ;;  %v8903_v17 = vpop.f32.mrb[14].mxu1  ;;  %v7863_v0 = vunpack.c.l.bf16 %v7893_v58 }
 0x671   : > { %v7251_v14 = vadd.f32 %v7158_v8, %v6994_v38  ;;  %v6995_v26 = vadd.f32 %v8903_v17, %v10968_v41  ;;  %v6845_v25 = vpop.f32.mrb[15].mxu1  ;;  %v7860_v38 = vunpack.c.h.bf16 %v7892_v53 }
 0x672   : > { %v7249_v42 = vadd.f32 %v7154_v40, %v6992_v28  ;;  %v6993_v47 = vadd.f32 %v10968_v41, %v6845_v25  ;;  %v7867_v28 = vunpack.c.l.bf16 %v7894_v52 }
 0x673   : > { %v7287_v7 = vmax.f32 %v7251_v14, 0.0  ;;  %v7252_v63 = vadd.f32 %v7160_v62, %v6995_v26  ;;  %v7172_v14 = vsel %vm3393_vm7, %v7169_v57, %v7171_v19  ;;  %v7177_v48 = vrot.slane %v7860_v38, 3 }
 0x674   : > { %v7285_v2 = vmax.f32 %v7249_v42, 0.0  ;;  %v7250_v33 = vadd.f32 %v7156_v35, %v6993_v47  ;;  %v7179_v35 = vrot.slane %v7863_v0, 3  ;;  %v7181_v42 = vrot.slane %v7864_v36, 3 }
 0x675   : > { %7323 = vst.msk [vmem:[%s10982_s12 + $0x70] sm:$0xff] %vm535_vm2, %v7287_v7  ;;  %v7288_v45 = vmax.f32 %v7252_v63, 0.0  ;;  %v7895_v7 = vld [vmem:[%s9662_s30 + $0x80] sm:$0xff]   ;;  %v7183_v5 = vrot.slane %v7867_v28, 3  ;;  %v7178_v13 = vsel %vm3393_vm7, %v7175_v50, %v7177_v48 }
 0x676   : > { %7321 = vst.msk [vmem:[%s10982_s12 + $0x60] sm:$0xff] %vm535_vm2, %v7285_v2  ;;  %v7286_v11 = vmax.f32 %v7250_v33, 0.0  ;;  %v8906_v16 = vpop.f32.mrb[16].mxu1  ;;  %v7896_v33 = vld [vmem:[%s9662_s30 + $0x88] sm:$0xff]   ;;  %v7182_v53 = vsel %vm3393_vm7, %v7179_v35, %v7181_v42 }
 0x677   : > { %7324 = vst.msk [vmem:[%s10982_s12 + $0x78] sm:$0xff] %vm535_vm2, %v7288_v45  ;;  %v6998_v60 = vadd.f32 %v8906_v16, %v10968_v41  ;;  %v6858_v27 = vpop.f32.mrb[17].mxu1  ;;  %v7872_v16 = vunpack.c.h.bf16 %v7895_v7  ;;  %v7184_v43 = vsel %vm3393_vm7, %v7181_v42, %v7183_v5 }
 0x678   : > { %7322 = vst.msk [vmem:[%s10982_s12 + $0x68] sm:$0xff] %vm535_vm2, %v7286_v11  ;;  %v6996_v44 = vadd.f32 %v10968_v41, %v6858_v27  ;;  %v8907_v23 = vpop.f32.mrb[18].mxu1  ;;  %v7871_v11 = vunpack.c.l.bf16 %v7895_v7 }
 0x679   : > { %v7255_v55 = vadd.f32 %v7166_v18, %v6998_v60  ;;  %v6999_v9 = vadd.f32 %v8907_v23, %v10968_v41  ;;  %v6861_v29 = vpop.f32.mrb[19].mxu1  ;;  %v7868_v60 = vunpack.c.h.bf16 %v7894_v52 }
 0x67a   : > { %v7253_v4 = vadd.f32 %v7162_v49, %v6996_v44  ;;  %v6997_v21 = vadd.f32 %v10968_v41, %v6861_v29  ;;  %v7875_v44 = vunpack.c.l.bf16 %v7896_v33 }
 0x67b   : > { %v7291_v59 = vmax.f32 %v7255_v55, 0.0  ;;  %v7256_v22 = vadd.f32 %v7168_v54, %v6999_v9  ;;  %v7180_v55 = vsel %vm3393_vm7, %v7177_v48, %v7179_v35  ;;  %v7185_v34 = vrot.slane %v7868_v60, 3 }
 0x67c   : > { %v7289_v15 = vmax.f32 %v7253_v4, 0.0  ;;  %v7254_v31 = vadd.f32 %v7164_v32, %v6997_v21  ;;  %v7187_v32 = vrot.slane %v7871_v11, 3  ;;  %v7189_v4 = vrot.slane %v7872_v16, 3 }
 0x67d   : > { %7327 = vst.msk [vmem:[%s10982_s12 + $0x90] sm:$0xff] %vm535_vm2, %v7291_v59  ;;  %v7292_v46 = vmax.f32 %v7256_v22, 0.0  ;;  %v7897_v59 = vld [vmem:[%s9662_s30 + $0x90] sm:$0xff]   ;;  %v7191_v58 = vrot.slane %v7875_v44, 3  ;;  %v7186_v36 = vsel %vm3393_vm7, %v7183_v5, %v7185_v34 }
 0x67e   : > { %7325 = vst.msk [vmem:[%s10982_s12 + $0x80] sm:$0xff] %vm535_vm2, %v7289_v15  ;;  %v7290_v3 = vmax.f32 %v7254_v31, 0.0  ;;  %v8910_v37 = vpop.f32.mrb[20].mxu1  ;;  %v7052_v31 = vld [vmem:[%s9662_s30 + $0x98] sm:$0x3]  ;;  %v7190_v52 = vsel %vm3393_vm7, %v7187_v32, %v7189_v4 }
 0x67f   : > { %7328 = vst.msk [vmem:[%s10982_s12 + $0x98] sm:$0xff] %vm535_vm2, %v7292_v46  ;;  %v7002_v8 = vadd.f32 %v8910_v37, %v10968_v41  ;;  %v6874_v10 = vpop.f32.mrb[21].mxu1  ;;  %v7880_v37 = vunpack.c.h.bf16 %v7897_v59  ;;  %v7192_v38 = vsel %vm3393_vm7, %v7189_v4, %v7191_v58 }
 0x680   : > { %7326 = vst.msk [vmem:[%s10982_s12 + $0x88] sm:$0xff] %vm535_vm2, %v7290_v3  ;;  %v7000_v12 = vadd.f32 %v10968_v41, %v6874_v10  ;;  %v8911_v40 = vpop.f32.mrb[22].mxu1  ;;  %v7879_v3 = vunpack.c.l.bf16 %v7897_v59 }
 0x681   : > { %v7259_v17 = vadd.f32 %v7174_v1, %v7002_v8  ;;  %v7003_v62 = vadd.f32 %v8911_v40, %v10968_v41  ;;  %v6877_v20 = vpop.f32.mrb[23].mxu1  ;;  %v7876_v8 = vunpack.c.h.bf16 %v7896_v33 }
 0x682   : > { %v7257_v26 = vadd.f32 %v7170_v6, %v7000_v12  ;;  %v7001_v25 = vadd.f32 %v10968_v41, %v6877_v20  ;;  %v7089_v12 = vunpack.c.l.bf16 %v7052_v31 }
 0x683   : > { %v7295_v47 = vmax.f32 %v7259_v17, 0.0  ;;  %v7260_v30 = vadd.f32 %v7176_v24, %v7003_v62  ;;  %v7188_v17 = vsel %vm3393_vm7, %v7185_v34, %v7187_v32  ;;  %v7193_v42 = vrot.slane %v7876_v8, 3 }
 0x684   : > { %v7293_v63 = vmax.f32 %v7257_v26, 0.0  ;;  %v7258_v61 = vadd.f32 %v7172_v14, %v7001_v25  ;;  %v7195_v14 = vrot.slane %v7879_v3, 3  ;;  %v7197_v26 = vrot.slane %v7880_v37, 3 }
 0x685   : > { %7331 = vst.msk [vmem:[%s10982_s12 + $0xb0] sm:$0xff] %vm535_vm2, %v7295_v47  ;;  %v7296_v2 = vmax.f32 %v7260_v30, 0.0  ;;  %v7199_v48 = vrot.slane %v7089_v12, 3 }
 0x686   : > { %7329 = vst.msk [vmem:[%s10982_s12 + $0xa0] sm:$0xff] %vm535_vm2, %v7293_v63  ;;  %v7294_v56 = vmax.f32 %v7258_v61, 0.0  ;;  %v8914_v45 = vpop.f32.mrb[24].mxu1  ;;  %v7198_v5 = vsel %vm3393_vm7, %v7195_v14, %v7197_v26 }
 0x687   : > { %7332 = vst.msk [vmem:[%s10982_s12 + $0xb8] sm:$0xff] %vm535_vm2, %v7296_v2  ;;  %v7006_v18 = vadd.f32 %v8914_v45, %v10968_v41  ;;  %v6890_v51 = vpop.f32.mrb[25].mxu1  ;;  %v7200_v11 = vsel %vm3393_vm7, %v7197_v26, %v7199_v48 }
 0x688   : > { %7330 = vst.msk [vmem:[%s10982_s12 + $0xa8] sm:$0xff] %vm535_vm2, %v7294_v56  ;;  %v7004_v27 = vadd.f32 %v10968_v41, %v6890_v51  ;;  %v8915_v49 = vpop.f32.mrb[26].mxu1  ;;  %v7194_v56 = vsel %vm3393_vm7, %v7191_v58, %v7193_v42 }
 0x689   : > { %v7263_v23 = vadd.f32 %v7182_v53, %v7006_v18  ;;  %v7007_v54 = vadd.f32 %v8915_v49, %v10968_v41  ;;  %v6893_v39 = vpop.f32.mrb[27].mxu1 }
 0x68a   : > { %v7261_v9 = vadd.f32 %v7178_v13, %v7004_v27  ;;  %v7005_v29 = vadd.f32 %v10968_v41, %v6893_v39  ;;  %v7196_v13 = vsel %vm3393_vm7, %v7193_v42, %v7195_v14 }
 0x68b   : > { %v7299_v21 = vmax.f32 %v7263_v23, 0.0  ;;  %v7264_v19 = vadd.f32 %v7184_v43, %v7007_v54 }
 0x68c   : > { %v7297_v22 = vmax.f32 %v7261_v9, 0.0  ;;  %v7262_v57 = vadd.f32 %v7180_v55, %v7005_v29 }
 0x68d   : > { %7335 = vst.msk [vmem:[%s10982_s12 + $0xd0] sm:$0xff] %vm535_vm2, %v7299_v21  ;;  %v7300_v15 = vmax.f32 %v7264_v19, 0.0 }
 0x68e   : > { %7333 = vst.msk [vmem:[%s10982_s12 + $0xc0] sm:$0xff] %vm535_vm2, %v7297_v22  ;;  %v7298_v50 = vmax.f32 %v7262_v57, 0.0  ;;  %v8918_v46 = vpop.f32.mrb[28].mxu1 }
 0x68f   : > { %7336 = vst.msk [vmem:[%s10982_s12 + $0xd8] sm:$0xff] %vm535_vm2, %v7300_v15  ;;  %v7010_v1 = vadd.f32 %v8918_v46, %v10968_v41  ;;  %v6906_v0 = vpop.f32.mrb[29].mxu1 }
 0x690   : > { %7334 = vst.msk [vmem:[%s10982_s12 + $0xc8] sm:$0xff] %vm535_vm2, %v7298_v50  ;;  %v7008_v10 = vadd.f32 %v10968_v41, %v6906_v0  ;;  %v8919_v6 = vpop.f32.mrb[30].mxu1 }
 0x691   : > { %v7267_v40 = vadd.f32 %v7190_v52, %v7010_v1  ;;  %v7011_v24 = vadd.f32 %v8919_v6, %v10968_v41  ;;  %v6909_v28 = vpop.f32.mrb[31].mxu1 }
 0x692   : > { %v7265_v62 = vadd.f32 %v7186_v36, %v7008_v10  ;;  %v7009_v20 = vadd.f32 %v10968_v41, %v6909_v28 }
 0x693   : > { %v7303_v25 = vmax.f32 %v7267_v40, 0.0  ;;  %v7268_v35 = vadd.f32 %v7192_v38, %v7011_v24 }
 0x694   : > { %v7301_v47 = vmax.f32 %v7265_v62, 0.0  ;;  %v7266_v30 = vadd.f32 %v7188_v17, %v7009_v20 }
 0x695   : > { %7339 = vst.msk [vmem:[%s10982_s12 + $0xf0] sm:$0xff] %vm535_vm2, %v7303_v25  ;;  %v7304_v7 = vmax.f32 %v7268_v35, 0.0 }
 0x696   : > { %7337 = vst.msk [vmem:[%s10982_s12 + $0xe0] sm:$0xff] %vm535_vm2, %v7301_v47  ;;  %v7302_v63 = vmax.f32 %v7266_v30, 0.0  ;;  %v8922_v61 = vpop.f32.mrb[32].mxu1 }
 0x697   : > { %7340 = vst.msk [vmem:[%s10982_s12 + $0xf8] sm:$0xff] %vm535_vm2, %v7304_v7  ;;  %v7014_v2 = vadd.f32 %v8922_v61, %v10968_v41  ;;  %v6922_v33 = vpop.f32.mrb[33].mxu1 }
 0x698   : > { %7338 = vst.msk [vmem:[%s10982_s12 + $0xe8] sm:$0xff] %vm535_vm2, %v7302_v63  ;;  %v7012_v45 = vadd.f32 %v10968_v41, %v6922_v33  ;;  %v8923_v53 = vpop.f32.mrb[34].mxu1 }
 0x699   : > { %v7271_v16 = vadd.f32 %v7198_v5, %v7014_v2  ;;  %v7015_v18 = vadd.f32 %v8923_v53, %v10968_v41  ;;  %v6925_v51 = vpop.f32.mrb[35].mxu1 }
 0x69a   : > { %v7269_v60 = vadd.f32 %v7194_v56, %v7012_v45  ;;  %v7013_v27 = vadd.f32 %v10968_v41, %v6925_v51 }
 0x69b   : > { %v7307_v49 = vmax.f32 %v7271_v16, 0.0  ;;  %v7272_v43 = vadd.f32 %v7200_v11, %v7015_v18 }
 0x69c   : > { %v7305_v44 = vmax.f32 %v7269_v60, 0.0  ;;  %v7270_v23 = vadd.f32 %v7196_v13, %v7013_v27 }
 0x69d   : > { %7343 = vst.msk [vmem:[%s10982_s12 + $0x110] sm:$0xff] %vm535_vm2, %v7307_v49  ;;  %v7308_v54 = vmax.f32 %v7272_v43, 0.0 }
 0x69e   : > { %7341 = vst.msk [vmem:[%s10982_s12 + $0x100] sm:$0xff] %vm535_vm2, %v7305_v44  ;;  %v7306_v39 = vmax.f32 %v7270_v23, 0.0 }
 0x69f   : > { %7344 = vst.msk [vmem:[%s10982_s12 + $0x118] sm:$0xff] %vm535_vm2, %v7308_v54 }
 0x6a0   : > { %7342 = vst.msk [vmem:[%s10982_s12 + $0x108] sm:$0xff] %vm535_vm2, %v7306_v39 }
 0x6a1 PF: > { %s16_s21 = sadd.s32 1, %s9600_s21  }
 0x6a2   : > { %p13_p4 = scmp.ge.s32.totalorder %s16_s21, 4  }
 0x6a4   :  { %15 = sbr.rel (!%p13_p4) target bundleno = 1 (0x1), region = 90 }

</bundles_post_ra>
